<compile_context>
chip_gen: v7x
topology: tpu7x:2x2x1
jax: 0.10.0
libtpu: 0.0.40
codegen_flags: <defaults>
</compile_context>

<pallas_src>
import functools

import jax
import jax.numpy as jnp
from jax.experimental import pallas as pl
from jax.experimental.pallas import tpu as pltpu


def _round_up(v, m):
    return ((v + m - 1) // m) * m


def _dims(ipVec_dim, x_fdim1, x_fdim2, h_dim, k):
    IP_pad = _round_up(ipVec_dim, 128)
    F1_pad = _round_up(x_fdim1, 128)
    # +1 guarantees at least one spare (always-zero) phi lane; pass 2 packs sum(Dinv) there.
    F_pad = _round_up(x_fdim2 + 1, 128)
    PACK_W = _round_up(2 * h_dim + k + 1, 128)
    return IP_pad, F1_pad, F_pad, PACK_W


def _tpu_tile_config():
    """Generation-specific row-tile cap / scoped-VMEM limit (conservative when unknown)."""
    try:
        kind = jax.devices()[0].device_kind.lower()
    except Exception:
        kind = ""
    if ("v5" in kind) or ("v6" in kind):
        return 2048, 96 * 1024 * 1024          # 128 MiB physical VMEM
    return 1024, 48 * 1024 * 1024              # v7x (64 MiB physical) / unknown


def _leaky(v):
    # LeakyReLU(0.2), kept in f32 on the VPU (v5e has no bf16 VPU path).
    return jnp.where(v >= 0.0, v, 0.2 * v)


# ----------------------------- pass 1: encoder -------------------------------------
def _encoder_kernel(x_ref, w1t_ref, b1_ref, w2t_ref, b2_ref,
                    phi_ref, colsum_ref, *, tile_n, n_true):
    f32 = jnp.float32
    x = x_ref[...]                                             # already bf16 (cast at pad time)
    a1 = _leaky(jnp.dot(x, w1t_ref[...], preferred_element_type=f32) + b1_ref[...])
    phi = _leaky(jnp.dot(a1.astype(jnp.bfloat16), w2t_ref[...],
                         preferred_element_type=f32) + b2_ref[...])   # (TN, F_pad) f32
    # zero out padded batch rows so the full-batch reductions stay exact
    rows = pl.program_id(0) * tile_n + jax.lax.broadcasted_iota(jnp.int32, (tile_n, 1), 0)
    phi = jnp.where(rows < n_true, phi, 0.0)
    phi_ref[...] = phi
    colsum_ref[...] = jnp.sum(phi, axis=0, keepdims=True).reshape(1, 1, -1)


# ----------------------------- pass 2: centering stats ------------------------------
def _stats_kernel(phi_ref, colsum_ref, stats_ref, *, tile_n, n_true, spare_lane):
    phi = phi_ref[...]                                        # (TN, F_pad) f32
    cs = colsum_ref[...]                                      # (1, F_pad)  f32
    d = jnp.sum(phi * cs, axis=1, keepdims=True)              # degree, (TN, 1)
    rows = pl.program_id(0) * tile_n + jax.lax.broadcasted_iota(jnp.int32, (tile_n, 1), 0)
    # NOTE: no epsilon on 1/D, matching torch.pow(D, -1) in the reference.
    dinv = jnp.where(rows < n_true, 1.0 / d, 0.0)             # padded rows contribute 0
    wsum = jnp.sum(phi * dinv, axis=0, keepdims=True)         # (1, F_pad); 0 at padded lanes
    dsum = jnp.sum(dinv)                                      # scalar
    lane = jax.lax.broadcasted_iota(jnp.int32, (1, phi.shape[1]), 1)
    stats = jnp.where(lane == spare_lane, dsum, wsum)         # pack dsum into the spare lane
    stats_ref[...] = stats.reshape(1, 1, -1)


# ----------------------------- pass 3: project + decode -----------------------------
def _decode_kernel(phi_ref, colsum_ref, cent_ref, rhs_ref,
                   b3_ref, w4t_ref, b4_ref, codes_ref,
                   phic_ref, packed_ref, xt_ref, *, tile_n, n_true, h_dim, pack_w):
    f32 = jnp.float32
    phi = phi_ref[...]                                        # (TN, F_pad) f32
    cs = colsum_ref[...]
    cent = cent_ref[...]
    rows = pl.program_id(0) * tile_n + jax.lax.broadcasted_iota(jnp.int32, (tile_n, 1), 0)
    mask = rows < n_true

    d = jnp.sum(phi * cs, axis=1, keepdims=True)              # recompute degree (cheap)
    dinv = jnp.where(mask, 1.0 / d, 0.0)                      # (TN, 1)
    phi_c = jnp.where(mask, phi - cent, 0.0)                  # centered phi
    phic_ref[...] = phi_c

    # single wide matmul: [ e | e (h pre-scale) | 0... || decoder-L1 pre-activation ]
    fused = jnp.dot(phi_c.astype(jnp.bfloat16), rhs_ref[...],
                    preferred_element_type=f32)               # (TN, PACK_W + F1_pad)
    raw = fused[:, :pack_w]                                   # lane-aligned split (pack_w % 128 == 0)
    d1 = _leaky(fused[:, pack_w:] + b3_ref[...])              # decoder L1 (P folded in at prep)
    xt = jax.nn.sigmoid(jnp.dot(d1.astype(jnp.bfloat16), w4t_ref[...],
                                preferred_element_type=f32) + b4_ref[...])
    xt_ref[...] = xt

    # cluster-code distances (k == 2 path) on the VPU -- no 2x2 MXU matmul
    z0 = raw[:, 0:1]
    z1 = raw[:, 1:2]
    c00 = codes_ref[0]
    c01 = codes_ref[1]
    c10 = codes_ref[2]
    c11 = codes_ref[3]
    dc0 = jnp.sqrt((z0 - c00) ** 2 + (z1 - c01) ** 2)         # (TN, 1)
    dc1 = jnp.sqrt((z0 - c10) ** 2 + (z1 - c11) ** 2)         # (TN, 1)

    # lane-dense packed slab: [ e | h | dcos | Dinv | zeros ]
    li = jax.lax.broadcasted_iota(jnp.int32, (1, pack_w), 1)
    packed = jnp.where((li >= h_dim) & (li < 2 * h_dim), raw * dinv, raw)
    packed = jnp.where(li == 2 * h_dim, dc0, packed)
    packed = jnp.where(li == 2 * h_dim + 1, dc1, packed)
    packed = jnp.where(li == 2 * h_dim + 2, dinv, packed)
    packed_ref[...] = packed


# ----------------------------- parameters -------------------------------------------
def make_params(key, ipVec_dim, x_fdim1, x_fdim2, h_dim):
    """PyTorch-Linear-style init (uniform) + orthogonal Ut; k==2 cluster codes."""
    ks = jax.random.split(key, 9)

    def lin(kw, kb, out_dim, in_dim):
        bound = 1.0 / (in_dim ** 0.5)
        w = jax.random.uniform(kw, (out_dim, in_dim), jnp.float32, -bound, bound)
        b = jax.random.uniform(kb, (out_dim,), jnp.float32, -bound, bound)
        return w, b

    w1, b1 = lin(ks[0], ks[1], x_fdim1, ipVec_dim)   # encoder L1
    w2, b2 = lin(ks[2], ks[3], x_fdim2, x_fdim1)     # encoder L2
    w3, b3 = lin(ks[4], ks[5], x_fdim1, x_fdim2)     # decoder L1
    w4, b4 = lin(ks[6], ks[7], ipVec_dim, x_fdim1)   # decoder L2

    a = jax.random.normal(ks[8], (x_fdim2, h_dim), jnp.float32)
    q, _ = jnp.linalg.qr(a)
    ut = q.T                                         # (h_dim, x_fdim2), orthonormal rows

    codes = jnp.array([[1.0, 0.0], [-1.0, 0.0]], dtype=jnp.float32)
    return dict(w1=w1, b1=b1, w2=w2, b2=b2, w3=w3, b3=b3, w4=w4, b4=b4,
                ut=ut, codes=codes)


def prepare_params(params, ipVec_dim, x_fdim1, x_fdim2, h_dim):
    """One-time prep: transpose, zero-pad to lane multiples, cast MXU operands to bf16,
    fold P = Ut.T @ Ut into the decoder-L1 weight (f32 HIGHEST), and build the combined
    RHS [packed Ut.T | P @ W3.T] used by the single wide pass-3 matmul.
    Runs once outside the jitted forward (no per-call HBM transposes)."""
    f32, bf16 = jnp.float32, jnp.bfloat16
    k = params["codes"].shape[0]
    assert k == 2, "only the k == 2 cluster-code path is implemented"
    IP_pad, F1_pad, F_pad, PACK_W = _dims(ipVec_dim, x_fdim1, x_fdim2, h_dim, k)
    assert 2 * h_dim + k + 1 <= PACK_W and h_dim >= k

    w1t = jnp.zeros((IP_pad, F1_pad), f32).at[:ipVec_dim, :x_fdim1].set(params["w1"].T)
    b1 = jnp.zeros((1, F1_pad), f32).at[:, :x_fdim1].set(params["b1"][None, :])
    w2t = jnp.zeros((F1_pad, F_pad), f32).at[:x_fdim1, :x_fdim2].set(params["w2"].T)
    b2 = jnp.zeros((1, F_pad), f32).at[:, :x_fdim2].set(params["b2"][None, :])

    ut = params["ut"]                                              # (h_dim, x_fdim2)
    # Fold P = Ut.T @ Ut into W3.T in full f32 precision (associativity-exact).
    p = jnp.dot(ut.T, ut, precision=jax.lax.Precision.HIGHEST)     # (F, F)
    w3t_eff = jnp.dot(p, params["w3"].T,
                      precision=jax.lax.Precision.HIGHEST)         # (x_fdim2, x_fdim1)
    b3 = jnp.zeros((1, F1_pad), f32).at[:, :x_fdim1].set(params["b3"][None, :])
    w4t = jnp.zeros((F1_pad, IP_pad), f32).at[:x_fdim1, :ipVec_dim].set(params["w4"].T)
    b4 = jnp.zeros((1, IP_pad), f32).at[:, :ipVec_dim].set(params["b4"][None, :])

    # Combined RHS for one wide matmul in pass 3:
    #   lanes [0,h)        : Ut.T                  -> e
    #   lanes [h,2h)       : Ut.T (duplicate)      -> h pre-scale
    #   lanes [PACK_W, +F1): (Ut.T @ Ut) @ W3.T    -> decoder-L1 pre-activation
    rhs = jnp.zeros((F_pad, PACK_W + F1_pad), f32)
    rhs = rhs.at[:x_fdim2, 0:h_dim].set(ut.T)
    rhs = rhs.at[:x_fdim2, h_dim:2 * h_dim].set(ut.T)
    rhs = rhs.at[:x_fdim2, PACK_W:PACK_W + x_fdim1].set(w3t_eff)

    return dict(
        w1t=w1t.astype(bf16), b1=b1,
        w2t=w2t.astype(bf16), b2=b2,
        rhs=rhs.astype(bf16), b3=b3,
        w4t=w4t.astype(bf16), b4=b4,
        codes=params["codes"].reshape(-1).astype(f32),             # SMEM scalars
    )


# ----------------------------- forward ----------------------------------------------
@functools.partial(jax.jit, static_argnames=("ipVec_dim", "x_fdim1", "x_fdim2", "h_dim", "k"))
def rkm_forward(x, prep, *, ipVec_dim, x_fdim1, x_fdim2, h_dim, k=2):
    assert k == 2, "only the k == 2 cluster-code path is implemented"
    f32, bf16 = jnp.float32, jnp.bfloat16
    N = x.shape[0]
    IP_pad, F1_pad, F_pad, PACK_W = _dims(ipVec_dim, x_fdim1, x_fdim2, h_dim, k)
    RHS_W = PACK_W + F1_pad
    assert 2 * h_dim + k + 1 <= PACK_W and h_dim >= k

    # Row tiling: >=128 to fill the MXU M dimension; cap is generation-specific; force
    # >=2 tiles when N >= 256 so the ("parallel",) grid uses both v7x TensorCores.
    MAX_TILE, VMEM_LIMIT = _tpu_tile_config()
    N_128 = _round_up(max(N, 1), 128)
    num_tiles = max(-(-N_128 // MAX_TILE), 2 if N_128 >= 256 else 1)
    TILE_N = _round_up(-(-N_128 // num_tiles), 128)
    N_pad = TILE_N * num_tiles

    # bf16 once, at pad time; skip the XLA pad copy entirely when already aligned.
    x2d = x.reshape(N, -1).astype(bf16)
    if N_pad == N and IP_pad == ipVec_dim:
        x_flat = x2d
    else:
        x_flat = jnp.pad(x2d, ((0, N_pad - N), (0, IP_pad - ipVec_dim)))

    cparams = pltpu.CompilerParams(
        dimension_semantics=("parallel",),            # batch tiles are independent
        vmem_limit_bytes=VMEM_LIMIT,
    )

    def full2(shape):
        return pl.BlockSpec(shape, lambda i: (0,) * len(shape))

    def row_spec(width):
        return pl.BlockSpec((TILE_N, width), lambda i: (i, 0))

    part_spec = pl.BlockSpec((1, 1, F_pad), lambda i: (i, 0, 0))

    # ---- pass 1: encoder + per-tile column sums ------------------------------------
    enc = functools.partial(_encoder_kernel, tile_n=TILE_N, n_true=N)
    flops1 = 2 * N_pad * (IP_pad * F1_pad + F1_pad * F_pad)
    phi_pad, colsum_part = pl.pallas_call(
        enc,
        grid=(num_tiles,),
        in_specs=[
            row_spec(IP_pad),
            full2((IP_pad, F1_pad)),
            full2((1, F1_pad)),
            full2((F1_pad, F_pad)),
            full2((1, F_pad)),
        ],
        out_specs=(row_spec(F_pad), part_spec),
        out_shape=(
            jax.ShapeDtypeStruct((N_pad, F_pad), f32),
            jax.ShapeDtypeStruct((num_tiles, 1, F_pad), f32),
        ),
        compiler_params=cparams,
        cost_estimate=pl.CostEstimate(
            flops=flops1, transcendentals=0,
            bytes_accessed=2 * N_pad * IP_pad + 4 * N_pad * F_pad),
    )(x_flat, prep["w1t"], prep["b1"], prep["w2t"], prep["b2"])

    col_sum = jnp.sum(colsum_part, axis=0)            # (1, F_pad) tiny cross-tile glue

    # ---- pass 2: packed stats pass (partials for the centering term) ---------------
    spare_lane = x_fdim2                               # first always-zero phi lane
    stats = functools.partial(_stats_kernel, tile_n=TILE_N, n_true=N, spare_lane=spare_lane)
    stats_part = pl.pallas_call(
        stats,
        grid=(num_tiles,),
        in_specs=[row_spec(F_pad), full2((1, F_pad))],
        out_specs=part_spec,
        out_shape=jax.ShapeDtypeStruct((num_tiles, 1, F_pad), f32),
        compiler_params=cparams,
        cost_estimate=pl.CostEstimate(
            flops=4 * N_pad * F_pad, transcendentals=0,
            bytes_accessed=4 * N_pad * F_pad),
    )(phi_pad, col_sum)

    stats_total = jnp.sum(stats_part, axis=0)          # (1, F_pad)
    dsum_total = stats_total[0, spare_lane]
    centering = stats_total.at[0, spare_lane].set(0.0) / dsum_total   # (1, F_pad)

    # ---- pass 3: centering + latent projections + decoder + dcos -------------------
    dec = functools.partial(_decode_kernel, tile_n=TILE_N, n_true=N,
                            h_dim=h_dim, pack_w=PACK_W)
    flops3 = 2 * N_pad * (F_pad * RHS_W + F1_pad * IP_pad)
    phi_c_pad, packed, xt_pad = pl.pallas_call(
        dec,
        grid=(num_tiles,),
        in_specs=[
            row_spec(F_pad),                                        # phi
            full2((1, F_pad)),                                      # column sum
            full2((1, F_pad)),                                      # centering term
            full2((F_pad, RHS_W)),                                  # [packed Ut.T | P@W3.T]
            full2((1, F1_pad)),                                     # b3
            full2((F1_pad, IP_pad)),                                # decoder W4.T
            full2((1, IP_pad)),                                     # b4
            pl.BlockSpec(memory_space=pltpu.MemorySpace.SMEM),      # cluster codes
        ],
        out_specs=(row_spec(F_pad), row_spec(PACK_W), row_spec(IP_pad)),
        out_shape=(
            jax.ShapeDtypeStruct((N_pad, F_pad), f32),
            jax.ShapeDtypeStruct((N_pad, PACK_W), f32),
            jax.ShapeDtypeStruct((N_pad, IP_pad), f32),
        ),
        compiler_params=cparams,
        cost_estimate=pl.CostEstimate(
            flops=flops3, transcendentals=N_pad * IP_pad,
            bytes_accessed=4 * N_pad * (2 * F_pad + PACK_W + IP_pad)),
    )(phi_pad, col_sum, centering, prep["rhs"],
      prep["b3"], prep["w4t"], prep["b4"], prep["codes"])

    # ---- unpack lane-dense slabs into the module's return views ---------------------
    def _slice2(a, r, c):
        return a if (a.shape[0] == r and a.shape[1] == c) else a[:r, :c]

    phi = _slice2(phi_c_pad, N, x_fdim2)
    e = packed[:N, 0:h_dim]
    h = packed[:N, h_dim:2 * h_dim]
    dcos = packed[:N, 2 * h_dim:2 * h_dim + k]
    dinv = packed[:N, 2 * h_dim + k]
    x_tilde = _slice2(xt_pad, N, ipVec_dim)
    return phi, e, h, x_tilde, dcos, dinv


if __name__ == "__main__":
    # small shapes consistent with the module
    N, C, H, W = 8, 4, 16, 16
    ipVec_dim = C * H * W                # 1024
    x_fdim1, x_fdim2, h_dim = 64, 32, 16

    key = jax.random.PRNGKey(0)
    kx, kp = jax.random.split(key)
    x = jax.random.normal(kx, (N, C, H, W), dtype=jnp.float32)      # NCHW

    params = make_params(kp, ipVec_dim, x_fdim1, x_fdim2, h_dim)
    prep = prepare_params(params, ipVec_dim, x_fdim1, x_fdim2, h_dim)

    outs = rkm_forward(x, prep, ipVec_dim=ipVec_dim, x_fdim1=x_fdim1,
                       x_fdim2=x_fdim2, h_dim=h_dim, k=2)
    outs = jax.block_until_ready(outs)

    phi, e, h, x_tilde, dcos, dinv = outs
    assert phi.shape == (N, x_fdim2)
    assert e.shape == (N, h_dim)
    assert h.shape == (N, h_dim)
    assert x_tilde.shape == (N, ipVec_dim)
    assert dcos.shape == (N, 2)
    assert dinv.shape == (N,)
    assert bool(jnp.all(jnp.isfinite(dcos)))
    print("KERNEL_OK")
</pallas_src>

<mosaic_0001>
module attributes {stable_mosaic.version = 11 : i64} {
  func.func @_encoder_kernel(%arg0: i32, %arg1: memref<128x1024xbf16, #tpu.memory_space<vmem>>, %arg2: memref<1024x128xbf16, #tpu.memory_space<vmem>>, %arg3: memref<1x128xf32, #tpu.memory_space<vmem>>, %arg4: memref<128x128xbf16, #tpu.memory_space<vmem>>, %arg5: memref<1x128xf32, #tpu.memory_space<vmem>>, %arg6: memref<128x128xf32, #tpu.memory_space<vmem>>, %arg7: memref<1x1x128xf32, #tpu.memory_space<vmem>>) attributes {dimension_semantics = [#tpu.dimension_semantics<parallel>], iteration_bounds = array<i64: 1>, scalar_prefetch = 0 : i64, scratch_operands = 0 : i64, tpu.core_type = #tpu.core_type<tc>, window_params = [{transform_indices = @transform_0, window_bounds = array<i64: 128, 1024>}, {pipeline_mode = #tpu.pipeline_mode<synchronous>, transform_indices = @transform_1, window_bounds = array<i64: 1024, 128>}, {pipeline_mode = #tpu.pipeline_mode<synchronous>, transform_indices = @transform_2, window_bounds = array<i64: 1, 128>}, {pipeline_mode = #tpu.pipeline_mode<synchronous>, transform_indices = @transform_3, window_bounds = array<i64: 128, 128>}, {pipeline_mode = #tpu.pipeline_mode<synchronous>, transform_indices = @transform_4, window_bounds = array<i64: 1, 128>}, {transform_indices = @transform_5, window_bounds = array<i64: 128, 128>}, {transform_indices = @transform_6, window_bounds = array<i64: 1, 1, 128>}]} {
    %c0 = arith.constant 0 : index
    %c0_0 = arith.constant 0 : index
    %0 = vector.load %arg1[%c0, %c0_0] : memref<128x1024xbf16, #tpu.memory_space<vmem>>, vector<128x1024xbf16>
    %c0_1 = arith.constant 0 : index
    %c0_2 = arith.constant 0 : index
    %1 = vector.load %arg2[%c0_1, %c0_2] : memref<1024x128xbf16, #tpu.memory_space<vmem>>, vector<1024x128xbf16>
    %cst = arith.constant dense<0.000000e+00> : vector<128x128xf32>
    %2 = tpu.matmul %0, %1, %cst {dimension_numbers = #tpu.dot_dimension_numbers<[1], [0], [0], [1], [0, 0, 1, 1], [], []>} : vector<128x1024xbf16>, vector<1024x128xbf16>, vector<128x128xf32> -> vector<128x128xf32>
    %c0_3 = arith.constant 0 : index
    %c0_4 = arith.constant 0 : index
    %3 = vector.load %arg3[%c0_3, %c0_4] : memref<1x128xf32, #tpu.memory_space<vmem>>, vector<1x128xf32>
    %4 = vector.broadcast %3 : vector<1x128xf32> to vector<128x128xf32>
    %5 = arith.addf %2, %4 : vector<128x128xf32>
    %cst_5 = arith.constant 0.000000e+00 : f32
    %6 = vector.broadcast %cst_5 : f32 to vector<128x128xf32>
    %7 = arith.cmpf oge, %5, %6 : vector<128x128xf32>
    %cst_6 = arith.constant 2.000000e-01 : f32
    %8 = vector.broadcast %cst_6 : f32 to vector<128x128xf32>
    %9 = arith.mulf %8, %5 : vector<128x128xf32>
    %10 = arith.select %7, %5, %9 : vector<128x128xi1>, vector<128x128xf32>
    %11 = arith.truncf %10 : vector<128x128xf32> to vector<128x128xbf16>
    %c0_7 = arith.constant 0 : index
    %c0_8 = arith.constant 0 : index
    %12 = vector.load %arg4[%c0_7, %c0_8] : memref<128x128xbf16, #tpu.memory_space<vmem>>, vector<128x128xbf16>
    %cst_9 = arith.constant dense<0.000000e+00> : vector<128x128xf32>
    %13 = tpu.matmul %11, %12, %cst_9 {dimension_numbers = #tpu.dot_dimension_numbers<[1], [0], [0], [1], [0, 0, 1, 1], [], []>} : vector<128x128xbf16>, vector<128x128xbf16>, vector<128x128xf32> -> vector<128x128xf32>
    %c0_10 = arith.constant 0 : index
    %c0_11 = arith.constant 0 : index
    %14 = vector.load %arg5[%c0_10, %c0_11] : memref<1x128xf32, #tpu.memory_space<vmem>>, vector<1x128xf32>
    %15 = vector.broadcast %14 : vector<1x128xf32> to vector<128x128xf32>
    %16 = arith.addf %13, %15 : vector<128x128xf32>
    %cst_12 = arith.constant 0.000000e+00 : f32
    %17 = vector.broadcast %cst_12 : f32 to vector<128x128xf32>
    %18 = arith.cmpf oge, %16, %17 : vector<128x128xf32>
    %cst_13 = arith.constant 2.000000e-01 : f32
    %19 = vector.broadcast %cst_13 : f32 to vector<128x128xf32>
    %20 = arith.mulf %19, %16 : vector<128x128xf32>
    %21 = arith.select %18, %16, %20 : vector<128x128xi1>, vector<128x128xf32>
    %c128_i32 = arith.constant 128 : i32
    %22 = arith.muli %arg0, %c128_i32 : i32
    %23 = tpu.iota {dimensions = array<i32: 0>} : vector<128x1xi32>
    %24 = vector.broadcast %22 : i32 to vector<128x1xi32>
    %25 = arith.addi %24, %23 : vector<128x1xi32>
    %c8_i32 = arith.constant 8 : i32
    %26 = vector.broadcast %c8_i32 : i32 to vector<128x1xi32>
    %27 = arith.cmpi slt, %25, %26 : vector<128x1xi32>
    %cst_14 = arith.constant 0.000000e+00 : f32
    %28 = vector.shape_cast %27 : vector<128x1xi1> to vector<128x1xi1>
    %29 = vector.broadcast %28 : vector<128x1xi1> to vector<128x128xi1>
    %30 = vector.broadcast %cst_14 : f32 to vector<128x128xf32>
    %31 = arith.select %29, %21, %30 : vector<128x128xi1>, vector<128x128xf32>
    %c0_15 = arith.constant 0 : index
    %c0_16 = arith.constant 0 : index
    %32 = vector.load %arg6[%c0_15, %c0_16] : memref<128x128xf32, #tpu.memory_space<vmem>>, vector<128x128xf32>
    tpu.vector_store %arg6[%c0_15, %c0_16], %31 {strides = array<i32>} : memref<128x128xf32, #tpu.memory_space<vmem>>, vector<128x128xf32>,
    %cst_17 = arith.constant dense<0.000000e+00> : vector<128xf32>
    %33 = vector.multi_reduction <add>, %31, %cst_17 [0] : vector<128x128xf32> to vector<128xf32>
    %34 = vector.shape_cast %33 : vector<128xf32> to vector<1x128xf32>
    %35 = vector.shape_cast %34 : vector<1x128xf32> to vector<1x1x128xf32>
    %c0_18 = arith.constant 0 : index
    %c0_19 = arith.constant 0 : index
    %c0_20 = arith.constant 0 : index
    %36 = vector.load %arg7[%c0_18, %c0_19, %c0_20] : memref<1x1x128xf32, #tpu.memory_space<vmem>>, vector<1x1x128xf32>
    tpu.vector_store %arg7[%c0_18, %c0_19, %c0_20], %35 {strides = array<i32>} : memref<1x1x128xf32, #tpu.memory_space<vmem>>, vector<1x1x128xf32>,
    return
  }
  func.func @transform_0(%arg0: i32) -> (i32, i32) {
    %c0_i32 = arith.constant 0 : i32
    %c0_i32_0 = arith.constant 0 : i32
    return %arg0, %c0_i32 : i32, i32
  }
  func.func @transform_1(%arg0: i32) -> (i32, i32) {
    %c0_i32 = arith.constant 0 : i32
    %c0_i32_0 = arith.constant 0 : i32
    %c0_i32_1 = arith.constant 0 : i32
    return %c0_i32, %c0_i32_0 : i32, i32
  }
  func.func @transform_2(%arg0: i32) -> (i32, i32) {
    %c0_i32 = arith.constant 0 : i32
    %c0_i32_0 = arith.constant 0 : i32
    %c0_i32_1 = arith.constant 0 : i32
    return %c0_i32, %c0_i32_0 : i32, i32
  }
  func.func @transform_3(%arg0: i32) -> (i32, i32) {
    %c0_i32 = arith.constant 0 : i32
    %c0_i32_0 = arith.constant 0 : i32
    %c0_i32_1 = arith.constant 0 : i32
    return %c0_i32, %c0_i32_0 : i32, i32
  }
  func.func @transform_4(%arg0: i32) -> (i32, i32) {
    %c0_i32 = arith.constant 0 : i32
    %c0_i32_0 = arith.constant 0 : i32
    %c0_i32_1 = arith.constant 0 : i32
    return %c0_i32, %c0_i32_0 : i32, i32
  }
  func.func @transform_5(%arg0: i32) -> (i32, i32) {
    %c0_i32 = arith.constant 0 : i32
    %c0_i32_0 = arith.constant 0 : i32
    return %arg0, %c0_i32 : i32, i32
  }
  func.func @transform_6(%arg0: i32) -> (i32, i32, i32) {
    %c0_i32 = arith.constant 0 : i32
    %c0_i32_0 = arith.constant 0 : i32
    %c0_i32_1 = arith.constant 0 : i32
    return %arg0, %c0_i32, %c0_i32_0 : i32, i32, i32
  }
}

module attributes {stable_mosaic.version = 11 : i64} {
  func.func @_stats_kernel(%arg0: i32, %arg1: memref<128x128xf32, #tpu.memory_space<vmem>>, %arg2: memref<1x128xf32, #tpu.memory_space<vmem>>, %arg3: memref<1x1x128xf32, #tpu.memory_space<vmem>>) attributes {dimension_semantics = [#tpu.dimension_semantics<parallel>], iteration_bounds = array<i64: 1>, scalar_prefetch = 0 : i64, scratch_operands = 0 : i64, tpu.core_type = #tpu.core_type<tc>, window_params = [{transform_indices = @transform_0, window_bounds = array<i64: 128, 128>}, {pipeline_mode = #tpu.pipeline_mode<synchronous>, transform_indices = @transform_1, window_bounds = array<i64: 1, 128>}, {transform_indices = @transform_2, window_bounds = array<i64: 1, 1, 128>}]} {
    %c0 = arith.constant 0 : index
    %c0_0 = arith.constant 0 : index
    %0 = vector.load %arg1[%c0, %c0_0] : memref<128x128xf32, #tpu.memory_space<vmem>>, vector<128x128xf32>
    %c0_1 = arith.constant 0 : index
    %c0_2 = arith.constant 0 : index
    %1 = vector.load %arg2[%c0_1, %c0_2] : memref<1x128xf32, #tpu.memory_space<vmem>>, vector<1x128xf32>
    %2 = vector.broadcast %1 : vector<1x128xf32> to vector<128x128xf32>
    %3 = arith.mulf %0, %2 : vector<128x128xf32>
    %cst = arith.constant dense<0.000000e+00> : vector<128xf32>
    %4 = vector.multi_reduction <add>, %3, %cst [1] : vector<128x128xf32> to vector<128xf32>
    %5 = vector.shape_cast %4 : vector<128xf32> to vector<128x1xf32>
    %c128_i32 = arith.constant 128 : i32
    %6 = arith.muli %arg0, %c128_i32 : i32
    %7 = tpu.iota {dimensions = array<i32: 0>} : vector<128x1xi32>
    %8 = vector.broadcast %6 : i32 to vector<128x1xi32>
    %9 = arith.addi %8, %7 : vector<128x1xi32>
    %c8_i32 = arith.constant 8 : i32
    %10 = vector.broadcast %c8_i32 : i32 to vector<128x1xi32>
    %11 = arith.cmpi slt, %9, %10 : vector<128x1xi32>
    %cst_3 = arith.constant 1.000000e+00 : f32
    %12 = vector.broadcast %cst_3 : f32 to vector<128x1xf32>
    %13 = arith.divf %12, %5 : vector<128x1xf32>
    %cst_4 = arith.constant 0.000000e+00 : f32
    %14 = vector.broadcast %cst_4 : f32 to vector<128x1xf32>
    %15 = arith.select %11, %13, %14 : vector<128x1xi1>, vector<128x1xf32>
    %16 = vector.broadcast %15 : vector<128x1xf32> to vector<128x128xf32>
    %17 = arith.mulf %0, %16 : vector<128x128xf32>
    %cst_5 = arith.constant dense<0.000000e+00> : vector<128xf32>
    %18 = vector.multi_reduction <add>, %17, %cst_5 [0] : vector<128x128xf32> to vector<128xf32>
    %19 = vector.shape_cast %18 : vector<128xf32> to vector<1x128xf32>
    %20 = vector.shape_cast %15 : vector<128x1xf32> to vector<1x128x1xf32>
    %cst_6 = arith.constant dense<0.000000e+00> : vector<1xf32>
    %21 = vector.multi_reduction <add>, %20, %cst_6 [1, 2] : vector<1x128x1xf32> to vector<1xf32>
    %22 = vector.shape_cast %21 : vector<1xf32> to vector<1x1x1xf32>
    %23 = vector.extract %22[0, 0, 0] : f32 from vector<1x1x1xf32>
    %24 = tpu.iota {dimensions = array<i32: 1>} : vector<1x128xi32>
    %c32_i32 = arith.constant 32 : i32
    %25 = vector.broadcast %c32_i32 : i32 to vector<1x128xi32>
    %26 = arith.cmpi eq, %24, %25 : vector<1x128xi32>
    %27 = vector.broadcast %23 : f32 to vector<1x128xf32>
    %28 = arith.select %26, %27, %19 : vector<1x128xi1>, vector<1x128xf32>
    %29 = vector.shape_cast %28 : vector<1x128xf32> to vector<1x1x128xf32>
    %c0_7 = arith.constant 0 : index
    %c0_8 = arith.constant 0 : index
    %c0_9 = arith.constant 0 : index
    %30 = vector.load %arg3[%c0_7, %c0_8, %c0_9] : memref<1x1x128xf32, #tpu.memory_space<vmem>>, vector<1x1x128xf32>
    tpu.vector_store %arg3[%c0_7, %c0_8, %c0_9], %29 {strides = array<i32>} : memref<1x1x128xf32, #tpu.memory_space<vmem>>, vector<1x1x128xf32>,
    return
  }
  func.func @transform_0(%arg0: i32) -> (i32, i32) {
    %c0_i32 = arith.constant 0 : i32
    %c0_i32_0 = arith.constant 0 : i32
    return %arg0, %c0_i32 : i32, i32
  }
  func.func @transform_1(%arg0: i32) -> (i32, i32) {
    %c0_i32 = arith.constant 0 : i32
    %c0_i32_0 = arith.constant 0 : i32
    %c0_i32_1 = arith.constant 0 : i32
    return %c0_i32, %c0_i32_0 : i32, i32
  }
  func.func @transform_2(%arg0: i32) -> (i32, i32, i32) {
    %c0_i32 = arith.constant 0 : i32
    %c0_i32_0 = arith.constant 0 : i32
    %c0_i32_1 = arith.constant 0 : i32
    return %arg0, %c0_i32, %c0_i32_0 : i32, i32, i32
  }
}

module attributes {stable_mosaic.version = 11 : i64} {
  func.func @_decode_kernel(%arg0: i32, %arg1: memref<128x128xf32, #tpu.memory_space<vmem>>, %arg2: memref<1x128xf32, #tpu.memory_space<vmem>>, %arg3: memref<1x128xf32, #tpu.memory_space<vmem>>, %arg4: memref<128x256xbf16, #tpu.memory_space<vmem>>, %arg5: memref<1x128xf32, #tpu.memory_space<vmem>>, %arg6: memref<128x1024xbf16, #tpu.memory_space<vmem>>, %arg7: memref<1x1024xf32, #tpu.memory_space<vmem>>, %arg8: memref<4xf32, #tpu.memory_space<smem>>, %arg9: memref<128x128xf32, #tpu.memory_space<vmem>>, %arg10: memref<128x128xf32, #tpu.memory_space<vmem>>, %arg11: memref<128x1024xf32, #tpu.memory_space<vmem>>) attributes {dimension_semantics = [#tpu.dimension_semantics<parallel>], iteration_bounds = array<i64: 1>, scalar_prefetch = 0 : i64, scratch_operands = 0 : i64, tpu.core_type = #tpu.core_type<tc>, window_params = [{transform_indices = @transform_0, window_bounds = array<i64: 128, 128>}, {pipeline_mode = #tpu.pipeline_mode<synchronous>, transform_indices = @transform_1, window_bounds = array<i64: 1, 128>}, {pipeline_mode = #tpu.pipeline_mode<synchronous>, transform_indices = @transform_2, window_bounds = array<i64: 1, 128>}, {pipeline_mode = #tpu.pipeline_mode<synchronous>, transform_indices = @transform_3, window_bounds = array<i64: 128, 256>}, {pipeline_mode = #tpu.pipeline_mode<synchronous>, transform_indices = @transform_4, window_bounds = array<i64: 1, 128>}, {pipeline_mode = #tpu.pipeline_mode<synchronous>, transform_indices = @transform_5, window_bounds = array<i64: 128, 1024>}, {pipeline_mode = #tpu.pipeline_mode<synchronous>, transform_indices = @transform_6, window_bounds = array<i64: 1, 1024>}, {transform_indices = @transform_7, window_bounds = array<i64: 4>}, {transform_indices = @transform_8, window_bounds = array<i64: 128, 128>}, {transform_indices = @transform_9, window_bounds = array<i64: 128, 128>}, {transform_indices = @transform_10, window_bounds = array<i64: 128, 1024>}]} {
    %c0 = arith.constant 0 : index
    %c0_0 = arith.constant 0 : index
    %0 = vector.load %arg1[%c0, %c0_0] : memref<128x128xf32, #tpu.memory_space<vmem>>, vector<128x128xf32>
    %c0_1 = arith.constant 0 : index
    %c0_2 = arith.constant 0 : index
    %1 = vector.load %arg2[%c0_1, %c0_2] : memref<1x128xf32, #tpu.memory_space<vmem>>, vector<1x128xf32>
    %c0_3 = arith.constant 0 : index
    %c0_4 = arith.constant 0 : index
    %2 = vector.load %arg3[%c0_3, %c0_4] : memref<1x128xf32, #tpu.memory_space<vmem>>, vector<1x128xf32>
    %c128_i32 = arith.constant 128 : i32
    %3 = arith.muli %arg0, %c128_i32 : i32
    %4 = tpu.iota {dimensions = array<i32: 0>} : vector<128x1xi32>
    %5 = vector.broadcast %3 : i32 to vector<128x1xi32>
    %6 = arith.addi %5, %4 : vector<128x1xi32>
    %c8_i32 = arith.constant 8 : i32
    %7 = vector.broadcast %c8_i32 : i32 to vector<128x1xi32>
    %8 = arith.cmpi slt, %6, %7 : vector<128x1xi32>
    %9 = vector.broadcast %1 : vector<1x128xf32> to vector<128x128xf32>
    %10 = arith.mulf %0, %9 : vector<128x128xf32>
    %cst = arith.constant dense<0.000000e+00> : vector<128xf32>
    %11 = vector.multi_reduction <add>, %10, %cst [1] : vector<128x128xf32> to vector<128xf32>
    %12 = vector.shape_cast %11 : vector<128xf32> to vector<128x1xf32>
    %cst_5 = arith.constant 1.000000e+00 : f32
    %13 = vector.broadcast %cst_5 : f32 to vector<128x1xf32>
    %14 = arith.divf %13, %12 : vector<128x1xf32>
    %cst_6 = arith.constant 0.000000e+00 : f32
    %15 = vector.broadcast %cst_6 : f32 to vector<128x1xf32>
    %16 = arith.select %8, %14, %15 : vector<128x1xi1>, vector<128x1xf32>
    %17 = vector.broadcast %2 : vector<1x128xf32> to vector<128x128xf32>
    %18 = arith.subf %0, %17 : vector<128x128xf32>
    %cst_7 = arith.constant 0.000000e+00 : f32
    %19 = vector.shape_cast %8 : vector<128x1xi1> to vector<128x1xi1>
    %20 = vector.broadcast %19 : vector<128x1xi1> to vector<128x128xi1>
    %21 = vector.broadcast %cst_7 : f32 to vector<128x128xf32>
    %22 = arith.select %20, %18, %21 : vector<128x128xi1>, vector<128x128xf32>
    %c0_8 = arith.constant 0 : index
    %c0_9 = arith.constant 0 : index
    %23 = vector.load %arg9[%c0_8, %c0_9] : memref<128x128xf32, #tpu.memory_space<vmem>>, vector<128x128xf32>
    tpu.vector_store %arg9[%c0_8, %c0_9], %22 {strides = array<i32>} : memref<128x128xf32, #tpu.memory_space<vmem>>, vector<128x128xf32>,
    %24 = arith.truncf %22 : vector<128x128xf32> to vector<128x128xbf16>
    %c0_10 = arith.constant 0 : index
    %c0_11 = arith.constant 0 : index
    %25 = vector.load %arg4[%c0_10, %c0_11] : memref<128x256xbf16, #tpu.memory_space<vmem>>, vector<128x256xbf16>
    %cst_12 = arith.constant dense<0.000000e+00> : vector<128x256xf32>
    %26 = tpu.matmul %24, %25, %cst_12 {dimension_numbers = #tpu.dot_dimension_numbers<[1], [0], [0], [1], [0, 0, 1, 1], [], []>} : vector<128x128xbf16>, vector<128x256xbf16>, vector<128x256xf32> -> vector<128x256xf32>
    %27 = vector.extract_strided_slice %26 {offsets = [0, 0], sizes = [128, 128], strides = [1, 1]} : vector<128x256xf32> to vector<128x128xf32>
    %28 = vector.extract_strided_slice %26 {offsets = [0, 128], sizes = [128, 128], strides = [1, 1]} : vector<128x256xf32> to vector<128x128xf32>
    %c0_13 = arith.constant 0 : index
    %c0_14 = arith.constant 0 : index
    %29 = vector.load %arg5[%c0_13, %c0_14] : memref<1x128xf32, #tpu.memory_space<vmem>>, vector<1x128xf32>
    %30 = vector.broadcast %29 : vector<1x128xf32> to vector<128x128xf32>
    %31 = arith.addf %28, %30 : vector<128x128xf32>
    %cst_15 = arith.constant 0.000000e+00 : f32
    %32 = vector.broadcast %cst_15 : f32 to vector<128x128xf32>
    %33 = arith.cmpf oge, %31, %32 : vector<128x128xf32>
    %cst_16 = arith.constant 2.000000e-01 : f32
    %34 = vector.broadcast %cst_16 : f32 to vector<128x128xf32>
    %35 = arith.mulf %34, %31 : vector<128x128xf32>
    %36 = arith.select %33, %31, %35 : vector<128x128xi1>, vector<128x128xf32>
    %37 = arith.truncf %36 : vector<128x128xf32> to vector<128x128xbf16>
    %c0_17 = arith.constant 0 : index
    %c0_18 = arith.constant 0 : index
    %38 = vector.load %arg6[%c0_17, %c0_18] : memref<128x1024xbf16, #tpu.memory_space<vmem>>, vector<128x1024xbf16>
    %cst_19 = arith.constant dense<0.000000e+00> : vector<128x1024xf32>
    %39 = tpu.matmul %37, %38, %cst_19 {dimension_numbers = #tpu.dot_dimension_numbers<[1], [0], [0], [1], [0, 0, 1, 1], [], []>} : vector<128x128xbf16>, vector<128x1024xbf16>, vector<128x1024xf32> -> vector<128x1024xf32>
    %c0_20 = arith.constant 0 : index
    %c0_21 = arith.constant 0 : index
    %40 = vector.load %arg7[%c0_20, %c0_21] : memref<1x1024xf32, #tpu.memory_space<vmem>>, vector<1x1024xf32>
    %41 = vector.broadcast %40 : vector<1x1024xf32> to vector<128x1024xf32>
    %42 = arith.addf %39, %41 : vector<128x1024xf32>
    %43 = arith.negf %42 : vector<128x1024xf32>
    %44 = math.exp %43 : vector<128x1024xf32>
    %cst_22 = arith.constant 1.000000e+00 : f32
    %45 = vector.broadcast %cst_22 : f32 to vector<128x1024xf32>
    %46 = arith.addf %45, %44 : vector<128x1024xf32>
    %47 = arith.divf %45, %46 : vector<128x1024xf32>
    %c0_23 = arith.constant 0 : index
    %c0_24 = arith.constant 0 : index
    %48 = vector.load %arg11[%c0_23, %c0_24] : memref<128x1024xf32, #tpu.memory_space<vmem>>, vector<128x1024xf32>
    tpu.vector_store %arg11[%c0_23, %c0_24], %47 {strides = array<i32>} : memref<128x1024xf32, #tpu.memory_space<vmem>>, vector<128x1024xf32>,
    %49 = vector.extract_strided_slice %27 {offsets = [0, 0], sizes = [128, 1], strides = [1, 1]} : vector<128x128xf32> to vector<128x1xf32>
    %50 = vector.extract_strided_slice %27 {offsets = [0, 1], sizes = [128, 1], strides = [1, 1]} : vector<128x128xf32> to vector<128x1xf32>
    %c0_25 = arith.constant 0 : index
    %51 = memref.load %arg8[%c0_25] : memref<4xf32, #tpu.memory_space<smem>>
    %c1 = arith.constant 1 : index
    %52 = memref.load %arg8[%c1] : memref<4xf32, #tpu.memory_space<smem>>
    %c2 = arith.constant 2 : index
    %53 = memref.load %arg8[%c2] : memref<4xf32, #tpu.memory_space<smem>>
    %c3 = arith.constant 3 : index
    %54 = memref.load %arg8[%c3] : memref<4xf32, #tpu.memory_space<smem>>
    %55 = vector.broadcast %51 : f32 to vector<128x1xf32>
    %56 = arith.subf %49, %55 : vector<128x1xf32>
    %57 = arith.mulf %56, %56 : vector<128x1xf32>
    %58 = vector.broadcast %52 : f32 to vector<128x1xf32>
    %59 = arith.subf %50, %58 : vector<128x1xf32>
    %60 = arith.mulf %59, %59 : vector<128x1xf32>
    %61 = arith.addf %57, %60 : vector<128x1xf32>
    %62 = math.sqrt %61 : vector<128x1xf32>
    %63 = vector.broadcast %53 : f32 to vector<128x1xf32>
    %64 = arith.subf %49, %63 : vector<128x1xf32>
    %65 = arith.mulf %64, %64 : vector<128x1xf32>
    %66 = vector.broadcast %54 : f32 to vector<128x1xf32>
    %67 = arith.subf %50, %66 : vector<128x1xf32>
    %68 = arith.mulf %67, %67 : vector<128x1xf32>
    %69 = arith.addf %65, %68 : vector<128x1xf32>
    %70 = math.sqrt %69 : vector<128x1xf32>
    %71 = tpu.iota {dimensions = array<i32: 1>} : vector<1x128xi32>
    %c16_i32 = arith.constant 16 : i32
    %72 = vector.broadcast %c16_i32 : i32 to vector<1x128xi32>
    %73 = arith.cmpi sge, %71, %72 : vector<1x128xi32>
    %c32_i32 = arith.constant 32 : i32
    %74 = vector.broadcast %c32_i32 : i32 to vector<1x128xi32>
    %75 = arith.cmpi slt, %71, %74 : vector<1x128xi32>
    %76 = arith.andi %73, %75 : vector<1x128xi1>
    %77 = vector.broadcast %16 : vector<128x1xf32> to vector<128x128xf32>
    %78 = arith.mulf %27, %77 : vector<128x128xf32>
    %79 = vector.shape_cast %76 : vector<1x128xi1> to vector<1x128xi1>
    %80 = vector.broadcast %79 : vector<1x128xi1> to vector<128x128xi1>
    %81 = arith.select %80, %78, %27 : vector<128x128xi1>, vector<128x128xf32>
    %c32_i32_26 = arith.constant 32 : i32
    %82 = vector.broadcast %c32_i32_26 : i32 to vector<1x128xi32>
    %83 = arith.cmpi eq, %71, %82 : vector<1x128xi32>
    %84 = vector.shape_cast %83 : vector<1x128xi1> to vector<1x128xi1>
    %85 = vector.broadcast %84 : vector<1x128xi1> to vector<128x128xi1>
    %86 = vector.shape_cast %62 : vector<128x1xf32> to vector<128x1xf32>
    %87 = vector.broadcast %86 : vector<128x1xf32> to vector<128x128xf32>
    %88 = arith.select %85, %87, %81 : vector<128x128xi1>, vector<128x128xf32>
    %c33_i32 = arith.constant 33 : i32
    %89 = vector.broadcast %c33_i32 : i32 to vector<1x128xi32>
    %90 = arith.cmpi eq, %71, %89 : vector<1x128xi32>
    %91 = vector.shape_cast %90 : vector<1x128xi1> to vector<1x128xi1>
    %92 = vector.broadcast %91 : vector<1x128xi1> to vector<128x128xi1>
    %93 = vector.shape_cast %70 : vector<128x1xf32> to vector<128x1xf32>
    %94 = vector.broadcast %93 : vector<128x1xf32> to vector<128x128xf32>
    %95 = arith.select %92, %94, %88 : vector<128x128xi1>, vector<128x128xf32>
    %c34_i32 = arith.constant 34 : i32
    %96 = vector.broadcast %c34_i32 : i32 to vector<1x128xi32>
    %97 = arith.cmpi eq, %71, %96 : vector<1x128xi32>
    %98 = vector.shape_cast %97 : vector<1x128xi1> to vector<1x128xi1>
    %99 = vector.broadcast %98 : vector<1x128xi1> to vector<128x128xi1>
    %100 = vector.shape_cast %16 : vector<128x1xf32> to vector<128x1xf32>
    %101 = vector.broadcast %100 : vector<128x1xf32> to vector<128x128xf32>
    %102 = arith.select %99, %101, %95 : vector<128x128xi1>, vector<128x128xf32>
    %c0_27 = arith.constant 0 : index
    %c0_28 = arith.constant 0 : index
    %103 = vector.load %arg10[%c0_27, %c0_28] : memref<128x128xf32, #tpu.memory_space<vmem>>, vector<128x128xf32>
    tpu.vector_store %arg10[%c0_27, %c0_28], %102 {strides = array<i32>} : memref<128x128xf32, #tpu.memory_space<vmem>>, vector<128x128xf32>,
    return
  }
  func.func @transform_0(%arg0: i32) -> (i32, i32) {
    %c0_i32 = arith.constant 0 : i32
    %c0_i32_0 = arith.constant 0 : i32
    return %arg0, %c0_i32 : i32, i32
  }
  func.func @transform_1(%arg0: i32) -> (i32, i32) {
    %c0_i32 = arith.constant 0 : i32
    %c0_i32_0 = arith.constant 0 : i32
    %c0_i32_1 = arith.constant 0 : i32
    return %c0_i32, %c0_i32_0 : i32, i32
  }
  func.func @transform_2(%arg0: i32) -> (i32, i32) {
    %c0_i32 = arith.constant 0 : i32
    %c0_i32_0 = arith.constant 0 : i32
    %c0_i32_1 = arith.constant 0 : i32
    return %c0_i32, %c0_i32_0 : i32, i32
  }
  func.func @transform_3(%arg0: i32) -> (i32, i32) {
    %c0_i32 = arith.constant 0 : i32
    %c0_i32_0 = arith.constant 0 : i32
    %c0_i32_1 = arith.constant 0 : i32
    return %c0_i32, %c0_i32_0 : i32, i32
  }
  func.func @transform_4(%arg0: i32) -> (i32, i32) {
    %c0_i32 = arith.constant 0 : i32
    %c0_i32_0 = arith.constant 0 : i32
    %c0_i32_1 = arith.constant 0 : i32
    return %c0_i32, %c0_i32_0 : i32, i32
  }
  func.func @transform_5(%arg0: i32) -> (i32, i32) {
    %c0_i32 = arith.constant 0 : i32
    %c0_i32_0 = arith.constant 0 : i32
    %c0_i32_1 = arith.constant 0 : i32
    return %c0_i32, %c0_i32_0 : i32, i32
  }
  func.func @transform_6(%arg0: i32) -> (i32, i32) {
    %c0_i32 = arith.constant 0 : i32
    %c0_i32_0 = arith.constant 0 : i32
    %c0_i32_1 = arith.constant 0 : i32
    return %c0_i32, %c0_i32_0 : i32, i32
  }
  func.func @transform_7(%arg0: i32) -> i32 {
    %c0_i32 = arith.constant 0 : i32
    %c0_i32_0 = arith.constant 0 : i32
    return %c0_i32 : i32
  }
  func.func @transform_8(%arg0: i32) -> (i32, i32) {
    %c0_i32 = arith.constant 0 : i32
    %c0_i32_0 = arith.constant 0 : i32
    return %arg0, %c0_i32 : i32, i32
  }
  func.func @transform_9(%arg0: i32) -> (i32, i32) {
    %c0_i32 = arith.constant 0 : i32
    %c0_i32_0 = arith.constant 0 : i32
    return %arg0, %c0_i32 : i32, i32
  }
  func.func @transform_10(%arg0: i32) -> (i32, i32) {
    %c0_i32 = arith.constant 0 : i32
    %c0_i32_0 = arith.constant 0 : i32
    return %arg0, %c0_i32 : i32, i32
  }
}

</mosaic_0001>

<bundles_post_ra>
// kernel: rkm_forward.4
= control target key start
LH: loop header
LB: loop body
LE: loop exit
PB: predicated region body
PF: predicated region fallthrough
CT: control target
= control target key end

     0   :  { %vm218_vm0 = vcmask 7168   ;;  %v259_v62 = vlaneseq  ;;  %s343_s0 = inlined_call_operand.vmem [shape: f32[128,128], index: 0, kind: input, shape index: {}]   ;;  %s344_s1 = inlined_call_operand.vmem [shape: f32[1,128], index: 1, kind: input, shape index: {}]   ;;  %s345_s2 = inlined_call_operand.vmem [shape: f32[1,1,128], index: 2, kind: output, shape index: {}]  }
   0x1   :  { %v11_v0 = vld [vmem:[%s343_s0] sm:$0xff]  ;;  %v12_v4 = vld [vmem:[%s343_s0 + $0x8] sm:$0xff]  ;;  %v13_v5 = vld [vmem:[%s343_s0 + $0x10] sm:$0xff] }
   0x2   :  { %v269_v1 = vld [vmem:[%s344_s1] ss:$0 sm:$0xff]  ;;  %v182_v6 = vmul.f32 0.0, %v12_v4  ;;  %v14_v8 = vld [vmem:[%s343_s0 + $0x18] sm:$0xff]  ;;  %v183_v9 = vmul.f32 0.0, %v13_v5  ;;  %v16_v15 = vld [vmem:[%s343_s0 + $0x28] sm:$0xff] }
   0x3   :  { %v34_v2 = vmul.f32 %v269_v1, %v11_v0  ;;  %v15_v12 = vld [vmem:[%s343_s0 + $0x20] sm:$0xff]  ;;  %v184_v13 = vmul.f32 0.0, %v14_v8  ;;  %v17_v18 = vld [vmem:[%s343_s0 + $0x30] sm:$0xff]  ;;  %v186_v19 = vmul.f32 0.0, %v16_v15  ;;  %v18_v21 = vld [vmem:[%s343_s0 + $0x38] sm:$0xff] }
   0x4   :  { %v185_v16 = vmul.f32 0.0, %v15_v12  ;;  %v187_v22 = vmul.f32 0.0, %v17_v18  ;;  %v19_v24 = vld [vmem:[%s343_s0 + $0x40] sm:$0xff]  ;;  %v188_v25 = vmul.f32 0.0, %v18_v21  ;;  %v20_v27 = vld [vmem:[%s343_s0 + $0x48] sm:$0xff]  ;;  %v21_v30 = vld [vmem:[%s343_s0 + $0x50] sm:$0xff] }
   0x5   :  { %50 = vadd.xlane.f32.xlu0 %v34_v2  ;;  %v189_v29 = vmul.f32 0.0, %v19_v24  ;;  %v190_v32 = vmul.f32 0.0, %v20_v27  ;;  %v22_v33 = vld [vmem:[%s343_s0 + $0x58] sm:$0xff]  ;;  %v191_v34 = vmul.f32 0.0, %v21_v30  ;;  %v23_v36 = vld [vmem:[%s343_s0 + $0x60] sm:$0xff]  ;;  %v24_v39 = vld [vmem:[%s343_s0 + $0x68] sm:$0xff] }
   0x6   :  { %v192_v37 = vmul.f32 0.0, %v22_v33  ;;  %v193_v40 = vmul.f32 0.0, %v23_v36  ;;  %v25_v42 = vld [vmem:[%s343_s0 + $0x70] sm:$0xff]  ;;  %v194_v43 = vmul.f32 0.0, %v24_v39  ;;  %v26_v45 = vld [vmem:[%s343_s0 + $0x78] sm:$0xff] }
   0x7   :  { %v195_v46 = vmul.f32 0.0, %v25_v42  ;;  %v196_v48 = vmul.f32 0.0, %v26_v45 }
  0x92   :  { %v51_v3 = vpop.xlane.xlu0 %50 }
  0x93   :  { %272 = vrcp.f32 %v51_v3 }
  0x9d   :  { %v273_v7 = vpop.eup %272 }
  0x9e   :  { %v181_v10 = vmul.f32 %v273_v7, %v11_v0  ;;  %v219_v11 = vsel %vm218_vm0, %v273_v7, 0.0  ;;  %v260_v0 = vand.u32 127, %v259_v62 }
  0x9f   :  { %250 = vadd.xlane.f32.xlu0 %v219_v11 }
  0xa0   :  { %v197_v14 = vadd.f32 %v182_v6, %v181_v10  ;;  %vm261_vm1 = vcmp.eq.s32.totalorder %v260_v0, 32 }
  0xa2   :  { %v198_v17 = vadd.f32 %v197_v14, %v183_v9 }
  0xa4   :  { %v199_v20 = vadd.f32 %v198_v17, %v184_v13 }
  0xa6   :  { %v200_v23 = vadd.f32 %v199_v20, %v185_v16 }
  0xa8   :  { %v201_v26 = vadd.f32 %v200_v23, %v186_v19 }
  0xaa   :  { %v202_v28 = vadd.f32 %v201_v26, %v187_v22 }
  0xac   :  { %v203_v31 = vadd.f32 %v202_v28, %v188_v25 }
  0xae   :  { %v204_v35 = vadd.f32 %v203_v31, %v189_v29 }
  0xb0   :  { %v205_v38 = vadd.f32 %v204_v35, %v190_v32 }
  0xb2   :  { %v206_v41 = vadd.f32 %v205_v38, %v191_v34 }
  0xb4   :  { %v207_v44 = vadd.f32 %v206_v41, %v192_v37 }
  0xb6   :  { %v208_v47 = vadd.f32 %v207_v44, %v193_v40 }
  0xb8   :  { %v209_v49 = vadd.f32 %v208_v47, %v194_v43 }
  0xba   :  { %v210_v50 = vadd.f32 %v209_v49, %v195_v46 }
  0xbc   :  { %v211_v51 = vadd.f32 %v210_v50, %v196_v48 }
  0xbe   :  { %v212_v59 = vrot.slane %v211_v51, 4 }
  0xc0   :  { %v213_v60 = vadd.f32 %v212_v59, %v211_v51 }
  0xc2   :  { %v214_v61 = vrot.slane %v213_v60, 2 }
  0xc4   :  { %v215_v63 = vadd.f32 %v214_v61, %v213_v60 }
  0xc6   :  { %v216_v1 = vrot.slane %v215_v63, 1 }
  0xc8   :  { %v217_v2 = vadd.f32 %v216_v1, %v215_v63 }
 0x12c   :  { %v251_v52 = vpop.xlane.xlu0 %250 }
 0x12d   :  { %v252_v53 = vrot.slane %v251_v52, 4 }
 0x12f   :  { %v253_v54 = vadd.f32 %v252_v53, %v251_v52 }
 0x131   :  { %v254_v55 = vrot.slane %v253_v54, 2 }
 0x133   :  { %v255_v56 = vadd.f32 %v254_v55, %v253_v54 }
 0x135   :  { %v256_v57 = vrot.slane %v255_v56, 1 }
 0x137   :  { %v257_v58 = vadd.f32 %v256_v57, %v255_v56 }
 0x139   :  { %270 = vpush %v257_v58 }
 0x16a   :  { %s271_s0 = spop %270 }
 0x16b   :  { %v262_v3 = vstv %s271_s0 }
 0x16c   :  { %v263_v4 = vsel %vm261_vm1, %v262_v3, %v217_v2 }
 0x16d   :  { %264 = vst [vmem:[%s345_s2] sm:$0x1] %v263_v4 }

// kernel: rkm_forward.3
= control target key start
LH: loop header
LB: loop body
LE: loop exit
PB: predicated region body
PF: predicated region fallthrough
CT: control target
= control target key end

     0   :  { %s2829_s1 = inlined_call_operand.vmem [shape: bf16[1024,128], index: 1, kind: input, shape index: {}]   ;;  %s2830_s0 = inlined_call_operand.vmem [shape: bf16[128,1024], index: 0, kind: input, shape index: {}]   ;;  %s2831_s3 = inlined_call_operand.vmem [shape: bf16[128,128], index: 3, kind: input, shape index: {}]   ;;  %s2832_s2 = inlined_call_operand.vmem [shape: f32[1,128], index: 2, kind: input, shape index: {}]   ;;  %s2833_s5 = inlined_call_operand.vmem [shape: f32[128,128], index: 5, kind: output, shape index: {0}]   ;;  %s2834_s4 = inlined_call_operand.vmem [shape: f32[1,128], index: 4, kind: input, shape index: {}]   ;;  %s2835_s6 = inlined_call_operand.vmem [shape: f32[1,1,128], index: 6, kind: output, shape index: {1}]  }
   0x1   :  { %v2190_v0 = vld [vmem:[%s2829_s1 + $0x40] sm:$0xff]   ;;  %v2194_v4 = vld [vmem:[%s2829_s1 + $0x48] sm:$0xff]   ;;  %v2198_v8 = vld [vmem:[%s2829_s1 + $0x50] sm:$0xff]  }
   0x2   :  { %v2191_v1 = vld [vmem:[%s2829_s1 + $0xc0] sm:$0xff]   ;;  %1869 = vmatprep.subr.bf16.mxu0 %v2190_v0  ;;  %v2195_v5 = vld [vmem:[%s2829_s1 + $0xc8] sm:$0xff]   ;;  %v2199_v9 = vld [vmem:[%s2829_s1 + $0xd0] sm:$0xff]  }
   0x3   :  { %v2192_v2 = vld [vmem:[%s2829_s1] sm:$0xff]   ;;  %1933 = vmatprep.subr.bf16.mxu1 %v2191_v1  ;;  %v2196_v6 = vld [vmem:[%s2829_s1 + $0x8] sm:$0xff]   ;;  %v2200_v10 = vld [vmem:[%s2829_s1 + $0x10] sm:$0xff]  }
   0x4   :  { %v2193_v3 = vld [vmem:[%s2829_s1 + $0x80] sm:$0xff]   ;;  %1870 = vmatpush3.bf16.msra.mxu0 %v2192_v2  ;;  %v2197_v7 = vld [vmem:[%s2829_s1 + $0x88] sm:$0xff]   ;;  %v2201_v11 = vld [vmem:[%s2829_s1 + $0x90] sm:$0xff]  }
   0x5   :  { %1934 = vmatpush3.bf16.msra.mxu1 %v2193_v3  ;;  %1871 = vmatprep.subr.bf16.mxu0 %v2194_v4  ;;  %v2202_v12 = vld [vmem:[%s2829_s1 + $0x58] sm:$0xff]   ;;  %v2206_v16 = vld [vmem:[%s2829_s1 + $0x60] sm:$0xff]   ;;  %v2210_v20 = vld [vmem:[%s2829_s1 + $0x68] sm:$0xff]  }
   0x6   :  { %1935 = vmatprep.subr.bf16.mxu1 %v2195_v5  ;;  %v2203_v13 = vld [vmem:[%s2829_s1 + $0xd8] sm:$0xff]   ;;  %v2207_v17 = vld [vmem:[%s2829_s1 + $0xe0] sm:$0xff]   ;;  %v2211_v21 = vld [vmem:[%s2829_s1 + $0xe8] sm:$0xff]  }
   0x7   :  { %v2204_v14 = vld [vmem:[%s2829_s1 + $0x18] sm:$0xff]   ;;  %v2208_v18 = vld [vmem:[%s2829_s1 + $0x20] sm:$0xff]   ;;  %v2212_v22 = vld [vmem:[%s2829_s1 + $0x28] sm:$0xff]  }
   0x8   :  { %1872 = vmatpush3.bf16.msra.mxu0 %v2196_v6  ;;  %v2205_v15 = vld [vmem:[%s2829_s1 + $0x98] sm:$0xff]   ;;  %v2209_v19 = vld [vmem:[%s2829_s1 + $0xa0] sm:$0xff]   ;;  %v2213_v23 = vld [vmem:[%s2829_s1 + $0xa8] sm:$0xff]  }
   0x9   :  { %1936 = vmatpush3.bf16.msra.mxu1 %v2197_v7  ;;  %1873 = vmatprep.subr.bf16.mxu0 %v2198_v8  ;;  %v2214_v24 = vld [vmem:[%s2829_s1 + $0x70] sm:$0xff]   ;;  %v2218_v28 = vld [vmem:[%s2829_s1 + $0x78] sm:$0xff]   ;;  %v23_v32 = vld [vmem:[%s2830_s0] sm:$0xff] }
   0xa   :  { %1937 = vmatprep.subr.bf16.mxu1 %v2199_v9  ;;  %v2215_v25 = vld [vmem:[%s2829_s1 + $0xf0] sm:$0xff]   ;;  %v2219_v29 = vld [vmem:[%s2829_s1 + $0xf8] sm:$0xff]   ;;  %v27_v33 = vld [vmem:[%s2830_s0 + $0x20] sm:$0xff] }
   0xb   :  { %v2216_v26 = vld [vmem:[%s2829_s1 + $0x30] sm:$0xff]   ;;  %v2220_v30 = vld [vmem:[%s2829_s1 + $0x38] sm:$0xff]   ;;  %v24_v34 = vld [vmem:[%s2830_s0 + $0x8] sm:$0xff]  ;;  %v1732_v35 = vcombine.low %v23_v32, %v27_v33  ;;  %v1733_v36 = vcombine.high %v23_v32, %v27_v33 }
   0xc   :  { %1874 = vmatpush3.bf16.msra.mxu0 %v2200_v10  ;;  %v2217_v27 = vld [vmem:[%s2829_s1 + $0xb0] sm:$0xff]   ;;  %v2221_v31 = vld [vmem:[%s2829_s1 + $0xb8] sm:$0xff]   ;;  %v28_v37 = vld [vmem:[%s2830_s0 + $0x28] sm:$0xff] }
   0xd   :  { %1938 = vmatpush3.bf16.msra.mxu1 %v2201_v11  ;;  %1875 = vmatprep.subr.bf16.mxu0 %v2202_v12  ;;  %v1734_v38 = vcombine.low %v24_v34, %v28_v37  ;;  %v1735_v39 = vcombine.high %v24_v34, %v28_v37  ;;  %v2222_v40 = vld [vmem:[%s2829_s1 + $0x140] sm:$0xff]   ;;  %v32_v47 = vld [vmem:[%s2830_s0 + $0x48] sm:$0xff]  ;;  %v2230_v62 = vld [vmem:[%s2829_s1 + $0x150] sm:$0xff]  }
   0xe   :  { %1939 = vmatprep.subr.bf16.mxu1 %v2203_v13  ;;  %958 = vmatprep.mubr.bf16.mxu0 %v1733_v36  ;;  %v2223_v41 = vld [vmem:[%s2829_s1 + $0x100] sm:$0xff]   ;;  %v36_v48 = vld [vmem:[%s2830_s0 + $0x68] sm:$0xff]  ;;  %v2231_v63 = vld [vmem:[%s2829_s1 + $0x110] sm:$0xff]  }
   0xf   :  { %1055 = vmatprep.mubr.bf16.mxu1 %v1735_v39  ;;  %v2224_v42 = vld [vmem:[%s2829_s1 + $0x1c0] sm:$0xff]   ;;  %v1743_v49 = vcombine.high %v32_v47, %v36_v48  ;;  %v2226_v50 = vld [vmem:[%s2829_s1 + $0x148] sm:$0xff]   ;;  %v1742_v53 = vcombine.low %v32_v47, %v36_v48  ;;  %v2232_v0 = vld [vmem:[%s2829_s1 + $0x1d0] sm:$0xff]  }
  0x10   :  { %1876 = vmatpush3.bf16.msra.mxu0 %v2204_v14  ;;  %v2225_v43 = vld [vmem:[%s2829_s1 + $0x180] sm:$0xff]   ;;  %v2227_v52 = vld [vmem:[%s2829_s1 + $0x108] sm:$0xff]   ;;  %v2233_v1 = vld [vmem:[%s2829_s1 + $0x190] sm:$0xff]  }
  0x11   :  { %1940 = vmatpush3.bf16.msra.mxu1 %v2205_v15  ;;  %1877 = vmatprep.subr.bf16.mxu0 %v2206_v16  ;;  %v31_v44 = vld [vmem:[%s2830_s0 + $0x40] sm:$0xff]  ;;  %v2228_v54 = vld [vmem:[%s2829_s1 + $0x1c8] sm:$0xff]   ;;  %v2234_v10 = vld [vmem:[%s2829_s1 + $0x158] sm:$0xff]  }
  0x12   :  { %1941 = vmatprep.subr.bf16.mxu1 %v2207_v17  ;;  %v35_v45 = vld [vmem:[%s2830_s0 + $0x60] sm:$0xff]  ;;  %v2229_v55 = vld [vmem:[%s2829_s1 + $0x188] sm:$0xff]   ;;  %v2235_v11 = vld [vmem:[%s2829_s1 + $0x118] sm:$0xff]  }
  0x13   :  { %v1741_v46 = vcombine.high %v31_v44, %v35_v45  ;;  %v1740_v51 = vcombine.low %v31_v44, %v35_v45  ;;  %v39_v56 = vld [vmem:[%s2830_s0 + $0x80] sm:$0xff]  ;;  %v40_v58 = vld [vmem:[%s2830_s0 + $0x88] sm:$0xff]  ;;  %v2236_v12 = vld [vmem:[%s2829_s1 + $0x1d8] sm:$0xff]  }
  0x14   :  { %1878 = vmatpush3.bf16.msra.mxu0 %v2208_v18  ;;  %v43_v57 = vld [vmem:[%s2830_s0 + $0xa0] sm:$0xff]  ;;  %v44_v59 = vld [vmem:[%s2830_s0 + $0xa8] sm:$0xff]  ;;  %v2237_v13 = vld [vmem:[%s2829_s1 + $0x198] sm:$0xff]  }
  0x15   :  { %1942 = vmatpush3.bf16.msra.mxu1 %v2209_v19  ;;  %1879 = vmatprep.subr.bf16.mxu0 %v2210_v20  ;;  %v1749_v60 = vcombine.high %v39_v56, %v43_v57  ;;  %v1751_v61 = vcombine.high %v40_v58, %v44_v59  ;;  %v1748_v2 = vcombine.low %v39_v56, %v43_v57  ;;  %v47_v3 = vld [vmem:[%s2830_s0 + $0xc0] sm:$0xff]  ;;  %v48_v5 = vld [vmem:[%s2830_s0 + $0xc8] sm:$0xff]  ;;  %v2247_v39 = vld [vmem:[%s2829_s1 + $0x130] sm:$0xff]  }
  0x16   :  { %1943 = vmatprep.subr.bf16.mxu1 %v2211_v21  ;;  %v51_v4 = vld [vmem:[%s2830_s0 + $0xe0] sm:$0xff]  ;;  %v1750_v6 = vcombine.low %v40_v58, %v44_v59  ;;  %v52_v8 = vld [vmem:[%s2830_s0 + $0xe8] sm:$0xff]  ;;  %v2251_v48 = vld [vmem:[%s2829_s1 + $0x138] sm:$0xff]  }
  0x17   :  { %v1757_v7 = vcombine.high %v47_v3, %v51_v4  ;;  %v1759_v9 = vcombine.high %v48_v5, %v52_v8  ;;  %v55_v14 = vld [vmem:[%s2830_s0 + $0x100] sm:$0xff]  ;;  %v56_v16 = vld [vmem:[%s2830_s0 + $0x108] sm:$0xff]  ;;  %v1756_v19 = vcombine.low %v47_v3, %v51_v4  ;;  %v1758_v21 = vcombine.low %v48_v5, %v52_v8  ;;  %v34_v8 = vld [vmem:[%s2830_s0 + $0x58] sm:$0xff] }
  0x18   :  { %1880 = vmatpush3.bf16.msra.mxu0 %v2212_v22  ;;  %v59_v15 = vld [vmem:[%s2830_s0 + $0x120] sm:$0xff]  ;;  %v60_v17 = vld [vmem:[%s2830_s0 + $0x128] sm:$0xff] }
  0x19   :  { %1944 = vmatpush3.bf16.msra.mxu1 %v2213_v23  ;;  %1881 = vmatprep.subr.bf16.mxu0 %v2214_v24  ;;  %v2238_v18 = vld [vmem:[%s2829_s1 + $0x160] sm:$0xff]   ;;  %v1765_v22 = vcombine.high %v55_v14, %v59_v15  ;;  %v1767_v24 = vcombine.high %v56_v16, %v60_v17  ;;  %v2244_v32 = vld [vmem:[%s2829_s1 + $0x1e8] sm:$0xff]   ;;  %v1764_v34 = vcombine.low %v55_v14, %v59_v15  ;;  %v41_v14 = vld [vmem:[%s2830_s0 + $0x90] sm:$0xff] }
  0x1a   :  { %1945 = vmatprep.subr.bf16.mxu1 %v2215_v25  ;;  %v2239_v20 = vld [vmem:[%s2829_s1 + $0x120] sm:$0xff]   ;;  %v2245_v33 = vld [vmem:[%s2829_s1 + $0x1a8] sm:$0xff]   ;;  %v45_v15 = vld [vmem:[%s2830_s0 + $0xb0] sm:$0xff] }
  0x1b   :  { %v2240_v23 = vld [vmem:[%s2829_s1 + $0x1e0] sm:$0xff]   ;;  %v72_v44 = vld [vmem:[%s2830_s0 + $0x188] sm:$0xff] }
  0x1c   :  { %1882 = vmatpush3.bf16.msra.mxu0 %v2216_v26  ;;  %v2241_v25 = vld [vmem:[%s2829_s1 + $0x1a0] sm:$0xff]   ;;  %v76_v45 = vld [vmem:[%s2830_s0 + $0x1a8] sm:$0xff] }
  0x1d   :  { %1946 = vmatpush3.bf16.msra.mxu1 %v2217_v27  ;;  %1883 = vmatprep.subr.bf16.mxu0 %v2218_v28  ;;  %v63_v26 = vld [vmem:[%s2830_s0 + $0x140] sm:$0xff]  ;;  %v2242_v28 = vld [vmem:[%s2829_s1 + $0x168] sm:$0xff]   ;;  %v1782_v59 = vcombine.low %v72_v44, %v76_v45 }
  0x1e   :  { %1947 = vmatprep.subr.bf16.mxu1 %v2219_v29  ;;  %v67_v27 = vld [vmem:[%s2830_s0 + $0x160] sm:$0xff]  ;;  %v64_v29 = vld [vmem:[%s2830_s0 + $0x148] sm:$0xff] }
  0x1f   :  { %v1773_v36 = vcombine.high %v63_v26, %v67_v27  ;;  %v1772_v47 = vcombine.low %v63_v26, %v67_v27  ;;  %v80_v56 = vld [vmem:[%s2830_s0 + $0x1c8] sm:$0xff]  ;;  %v1752_v26 = vcombine.low %v41_v14, %v45_v15 }
  0x20   :  { %1884 = vmatpush3.bf16.msra.mxu0 %v2220_v30  ;;  %v68_v30 = vld [vmem:[%s2830_s0 + $0x168] sm:$0xff] }
  0x21   :  { %1948 = vmatpush3.bf16.msra.mxu1 %v2221_v31  ;;  %1997 = vmatprep.subr.bf16.mxu0 %v2222_v40  ;;  %v2243_v31 = vld [vmem:[%s2829_s1 + $0x128] sm:$0xff]   ;;  %v1775_v37 = vcombine.high %v64_v29, %v68_v30  ;;  %v2248_v40 = vld [vmem:[%s2829_s1 + $0x1f0] sm:$0xff]  }
  0x22   :  { %2061 = vmatprep.subr.bf16.mxu1 %v2224_v42  ;;  %v75_v42 = vld [vmem:[%s2830_s0 + $0x1a0] sm:$0xff]  ;;  %v84_v57 = vld [vmem:[%s2830_s0 + $0x1e8] sm:$0xff] }
  0x23   :  { %959 = vmatmul.mubr.bf16.vlgmr.msra.gmra.mrb[0].mxu0 %v1732_v35  ;;  %v1766_v35 = vcombine.low %v56_v16, %v60_v17  ;;  %v1790_v3 = vcombine.low %v80_v56, %v84_v57  ;;  %v42_v16 = vld [vmem:[%s2830_s0 + $0x98] sm:$0xff] }
  0x24   :  { %1056 = vmatmul.mubr.bf16.vlgmr.msra.gmra.mrb[0].mxu1 %v1734_v38  ;;  %1998 = vmatpush3.bf16.msra.mxu0 %v2223_v41  ;;  %v2246_v38 = vld [vmem:[%s2829_s1 + $0x170] sm:$0xff]   ;;  %v71_v41 = vld [vmem:[%s2830_s0 + $0x180] sm:$0xff]  ;;  %v46_v17 = vld [vmem:[%s2830_s0 + $0xb8] sm:$0xff] }
  0x25   :  { %2062 = vmatpush3.bf16.msra.mxu1 %v2225_v43  ;;  %966 = vmatprep.mubr.bf16.mxu0 %v1741_v46  ;;  %v2249_v43 = vld [vmem:[%s2829_s1 + $0x1b0] sm:$0xff]   ;;  %v2250_v46 = vld [vmem:[%s2829_s1 + $0x178] sm:$0xff]   ;;  %v1780_v58 = vcombine.low %v71_v41, %v75_v42  ;;  %v1754_v27 = vcombine.low %v42_v16, %v46_v17 }
  0x26   :  { %1063 = vmatprep.mubr.bf16.mxu1 %v1743_v49  ;;  %1999 = vmatprep.subr.bf16.mxu0 %v2226_v50  ;;  %v1774_v49 = vcombine.low %v64_v29, %v68_v30  ;;  %v1781_v50 = vcombine.high %v71_v41, %v75_v42  ;;  %v57_v30 = vld [vmem:[%s2830_s0 + $0x110] sm:$0xff]  ;;  %v70_v41 = vld [vmem:[%s2830_s0 + $0x178] sm:$0xff] }
  0x27   :  { %2063 = vmatprep.subr.bf16.mxu1 %v2228_v54  ;;  %v79_v54 = vld [vmem:[%s2830_s0 + $0x1c0] sm:$0xff] }
  0x28   :  { %2000 = vmatpush3.bf16.msra.mxu0 %v2227_v52  ;;  %v1783_v52 = vcombine.high %v72_v44, %v76_v45 }
  0x29   :  { %2064 = vmatpush3.bf16.msra.mxu1 %v2229_v55  ;;  %2001 = vmatprep.subr.bf16.mxu0 %v2230_v62  ;;  %v83_v55 = vld [vmem:[%s2830_s0 + $0x1e0] sm:$0xff]  ;;  %v25_v62 = vld [vmem:[%s2830_s0 + $0x10] sm:$0xff] }
  0x2a   :  { %2065 = vmatprep.subr.bf16.mxu1 %v2232_v0  ;;  %v26_v0 = vld [vmem:[%s2830_s0 + $0x18] sm:$0xff] }
  0x2b   :  { %967 = vmatmul.mubr.bf16.gmra.mrb[4].mxu0 %v1740_v51  ;;  %v2252_v51 = vld [vmem:[%s2829_s1 + $0x1f8] sm:$0xff]  }
  0x2c   :  { %1064 = vmatmul.mubr.bf16.gmra.mrb[4].mxu1 %v1742_v53  ;;  %974 = vmatprep.mubr.bf16.mxu0 %v1749_v60  ;;  %v2253_v53 = vld [vmem:[%s2829_s1 + $0x1b8] sm:$0xff]   ;;  %v1789_v60 = vcombine.high %v79_v54, %v83_v55 }
  0x2d   :  { %1071 = vmatprep.mubr.bf16.mxu1 %v1751_v61  ;;  %2002 = vmatpush3.bf16.msra.mxu0 %v2231_v63  ;;  %v1791_v61 = vcombine.high %v80_v56, %v84_v57  ;;  %v29_v63 = vld [vmem:[%s2830_s0 + $0x30] sm:$0xff]  ;;  %v82_v56 = vld [vmem:[%s2830_s0 + $0x1d8] sm:$0xff] }
  0x2e   :  { %2066 = vmatpush3.bf16.msra.mxu1 %v2233_v1  ;;  %2003 = vmatprep.subr.bf16.mxu0 %v2234_v10  ;;  %v30_v1 = vld [vmem:[%s2830_s0 + $0x38] sm:$0xff]  ;;  %v1737_v4 = vcombine.high %v25_v62, %v29_v63  ;;  %v1736_v10 = vcombine.low %v25_v62, %v29_v63 }
  0x2f   :  { %2067 = vmatprep.subr.bf16.mxu1 %v2236_v12  ;;  %v1739_v5 = vcombine.high %v26_v0, %v30_v1  ;;  %v86_v57 = vld [vmem:[%s2830_s0 + $0x1f8] sm:$0xff] }
  0x30   :  { %v1794_v63 = vcombine.low %v82_v56, %v86_v57 }
  0x31   :  { %2004 = vmatpush3.bf16.msra.mxu0 %v2235_v11  ;;  %v1738_v11 = vcombine.low %v26_v0, %v30_v1  ;;  %v2254_v0 = vld [vmem:[%s2831_s3] sm:$0xff]   ;;  %v2255_v1 = vld [vmem:[%s2831_s3 + $0x8] sm:$0xff]  }
  0x32   :  { %2068 = vmatpush3.bf16.msra.mxu1 %v2237_v13  ;;  %2005 = vmatprep.subr.bf16.mxu0 %v2238_v18 }
  0x33   :  { %975 = vmatmul.mubr.bf16.gmra.mrb[8].mxu0 %v1748_v2  ;;  %2069 = vmatprep.subr.bf16.mxu1 %v2240_v23  ;;  %v1788_v2 = vcombine.low %v79_v54, %v83_v55  ;;  %v53_v23 = vld [vmem:[%s2830_s0 + $0xf0] sm:$0xff] }
  0x34   :  { %1072 = vmatmul.mubr.bf16.gmra.mrb[8].mxu1 %v1750_v6  ;;  %982 = vmatprep.mubr.bf16.mxu0 %v1757_v7  ;;  %v33_v6 = vld [vmem:[%s2830_s0 + $0x50] sm:$0xff] }
  0x35   :  { %1079 = vmatprep.mubr.bf16.mxu1 %v1759_v9  ;;  %2006 = vmatpush3.bf16.msra.mxu0 %v2239_v20  ;;  %v37_v7 = vld [vmem:[%s2830_s0 + $0x70] sm:$0xff]  ;;  %v38_v9 = vld [vmem:[%s2830_s0 + $0x78] sm:$0xff]  ;;  %v1753_v20 = vcombine.high %v41_v14, %v45_v15 }
  0x36   :  { %2070 = vmatpush3.bf16.msra.mxu1 %v2241_v25  ;;  %2007 = vmatprep.subr.bf16.mxu0 %v2242_v28  ;;  %v1745_v12 = vcombine.high %v33_v6, %v37_v7  ;;  %v1747_v13 = vcombine.high %v34_v8, %v38_v9  ;;  %v1744_v18 = vcombine.low %v33_v6, %v37_v7  ;;  %v54_v25 = vld [vmem:[%s2830_s0 + $0xf8] sm:$0xff]  ;;  %v81_v54 = vld [vmem:[%s2830_s0 + $0x1d0] sm:$0xff] }
  0x37   :  { %2071 = vmatprep.subr.bf16.mxu1 %v2244_v32  ;;  %v58_v32 = vld [vmem:[%s2830_s0 + $0x118] sm:$0xff]  ;;  %v85_v55 = vld [vmem:[%s2830_s0 + $0x1f0] sm:$0xff] }
  0x38   :  { %v1792_v62 = vcombine.low %v81_v54, %v85_v55  ;;  %v2260_v6 = vld [vmem:[%s2831_s3 + $0x30] sm:$0xff]   ;;  %v2261_v7 = vld [vmem:[%s2831_s3 + $0x38] sm:$0xff]  }
  0x39   :  { %2008 = vmatpush3.bf16.msra.mxu0 %v2243_v31  ;;  %v61_v31 = vld [vmem:[%s2830_s0 + $0x130] sm:$0xff] }
  0x3a   :  { %2072 = vmatpush3.bf16.msra.mxu1 %v2245_v33  ;;  %2009 = vmatprep.subr.bf16.mxu0 %v2246_v38  ;;  %v62_v33 = vld [vmem:[%s2830_s0 + $0x138] sm:$0xff]  ;;  %v65_v38 = vld [vmem:[%s2830_s0 + $0x150] sm:$0xff]  ;;  %v1768_v42 = vcombine.low %v57_v30, %v61_v31 }
  0x3b   :  { %983 = vmatmul.mubr.bf16.gmra.mrb[12].mxu0 %v1756_v19  ;;  %2073 = vmatprep.subr.bf16.mxu1 %v2248_v40  ;;  %v1746_v19 = vcombine.low %v34_v8, %v38_v9  ;;  %v66_v40 = vld [vmem:[%s2830_s0 + $0x158] sm:$0xff] }
  0x3c   :  { %1080 = vmatmul.mubr.bf16.gmra.mrb[12].mxu1 %v1758_v21  ;;  %990 = vmatprep.mubr.bf16.mxu0 %v1765_v22  ;;  %v1755_v21 = vcombine.high %v42_v16, %v46_v17  ;;  %v49_v22 = vld [vmem:[%s2830_s0 + $0xd0] sm:$0xff]  ;;  %v1779_v45 = vcombine.high %v66_v40, %v70_v41 }
  0x3d   :  { %1087 = vmatprep.mubr.bf16.mxu1 %v1767_v24  ;;  %2010 = vmatpush3.bf16.msra.mxu0 %v2247_v39  ;;  %v50_v24 = vld [vmem:[%s2830_s0 + $0xd8] sm:$0xff]  ;;  %v1761_v28 = vcombine.high %v49_v22, %v53_v23  ;;  %v69_v39 = vld [vmem:[%s2830_s0 + $0x170] sm:$0xff] }
  0x3e   :  { %2074 = vmatpush3.bf16.msra.mxu1 %v2249_v43  ;;  %2011 = vmatprep.subr.bf16.mxu0 %v2250_v46  ;;  %v1763_v29 = vcombine.high %v50_v24, %v54_v25  ;;  %v1770_v43 = vcombine.low %v58_v32, %v62_v33  ;;  %v1777_v44 = vcombine.high %v65_v38, %v69_v39  ;;  %v73_v46 = vld [vmem:[%s2830_s0 + $0x190] sm:$0xff] }
  0x3f   :  { %2075 = vmatprep.subr.bf16.mxu1 %v2252_v51  ;;  %v1778_v51 = vcombine.low %v66_v40, %v70_v41 }
  0x41   :  { %2012 = vmatpush3.bf16.msra.mxu0 %v2251_v48  ;;  %v74_v48 = vld [vmem:[%s2830_s0 + $0x198] sm:$0xff] }
  0x42   :  { %2076 = vmatpush3.bf16.msra.mxu1 %v2253_v53  ;;  %2141 = vmatprep.subr.bf16.mxu0 %v2254_v0 }
  0x43   :  { %991 = vmatmul.mubr.bf16.gmra.mrb[16].mxu0 %v1764_v34  ;;  %v1760_v34 = vcombine.low %v49_v22, %v53_v23  ;;  %2173 = vmatprep.subr.bf16.mxu1 %v2254_v0 }
  0x44   :  { %1088 = vmatmul.mubr.bf16.gmra.mrb[16].mxu1 %v1766_v35  ;;  %998 = vmatprep.mubr.bf16.mxu0 %v1773_v36  ;;  %v1762_v35 = vcombine.low %v50_v24, %v54_v25  ;;  %v1769_v36 = vcombine.high %v57_v30, %v61_v31 }
  0x45   :  { %1095 = vmatprep.mubr.bf16.mxu1 %v1775_v37  ;;  %v1771_v37 = vcombine.high %v58_v32, %v62_v33 }
  0x4b   :  { %999 = vmatmul.mubr.bf16.gmra.mrb[20].mxu0 %v1772_v47  ;;  %v77_v47 = vld [vmem:[%s2830_s0 + $0x1b0] sm:$0xff] }
  0x4c   :  { %1096 = vmatmul.mubr.bf16.gmra.mrb[20].mxu1 %v1774_v49  ;;  %1006 = vmatprep.mubr.bf16.mxu0 %v1781_v50  ;;  %v78_v49 = vld [vmem:[%s2830_s0 + $0x1b8] sm:$0xff]  ;;  %v1776_v50 = vcombine.low %v65_v38, %v69_v39 }
  0x4d   :  { %1103 = vmatprep.mubr.bf16.mxu1 %v1783_v52  ;;  %v1785_v52 = vcombine.high %v73_v46, %v77_v47  ;;  %v1787_v53 = vcombine.high %v74_v48, %v78_v49 }
  0x53   :  { %1007 = vmatmul.mubr.bf16.gmra.mrb[24].mxu0 %v1780_v58  ;;  %v1784_v58 = vcombine.low %v73_v46, %v77_v47 }
  0x54   :  { %1104 = vmatmul.mubr.bf16.gmra.mrb[24].mxu1 %v1782_v59  ;;  %1014 = vmatprep.mubr.bf16.mxu0 %v1789_v60  ;;  %v1786_v59 = vcombine.low %v74_v48, %v78_v49  ;;  %v1793_v60 = vcombine.high %v81_v54, %v85_v55 }
  0x55   :  { %1111 = vmatprep.mubr.bf16.mxu1 %v1791_v61  ;;  %v1795_v61 = vcombine.high %v82_v56, %v86_v57 }
  0x5b   :  { %1015 = vmatmul.mubr.bf16.gmra.mrb[28].mxu0 %v1788_v2  ;;  %v2256_v2 = vld [vmem:[%s2831_s3 + $0x10] sm:$0xff]  }
  0x5c   :  { %1112 = vmatmul.mubr.bf16.gmra.mrb[28].mxu1 %v1790_v3  ;;  %1152 = vmatprep.mubr.bf16.mxu0 %v1737_v4  ;;  %v2257_v3 = vld [vmem:[%s2831_s3 + $0x18] sm:$0xff]   ;;  %v2258_v4 = vld [vmem:[%s2831_s3 + $0x20] sm:$0xff]  }
  0x5d   :  { %1249 = vmatprep.mubr.bf16.mxu1 %v1739_v5  ;;  %v2259_v5 = vld [vmem:[%s2831_s3 + $0x28] sm:$0xff]  }
  0x63   :  { %1153 = vmatmul.mubr.bf16.vlgmr.msra.gmra.mrb[32].mxu0 %v1736_v10  ;;  %v2709_v10 = vld [vmem:[%s2832_s2] ss:$0 sm:$0xff] }
  0x64   :  { %1250 = vmatmul.mubr.bf16.vlgmr.msra.gmra.mrb[32].mxu1 %v1738_v11  ;;  %1160 = vmatprep.mubr.bf16.mxu0 %v1745_v12 }
  0x65   :  { %1257 = vmatprep.mubr.bf16.mxu1 %v1747_v13  ;;  %2142 = vmatpush3.bf16.msra.mxu0 %v2254_v0 }
  0x66   :  { %2181 = vmatpush3.bf16.msra.mxu1 %v2254_v0  ;;  %2143 = vmatprep.subr.bf16.mxu0 %v2255_v1 }
  0x67   :  { %2174 = vmatprep.subr.bf16.mxu1 %v2255_v1 }
  0x69   :  { %2144 = vmatpush3.bf16.msra.mxu0 %v2255_v1 }
  0x6a   :  { %2182 = vmatpush3.bf16.msra.mxu1 %v2255_v1  ;;  %2145 = vmatprep.subr.bf16.mxu0 %v2256_v2 }
  0x6b   :  { %1161 = vmatmul.mubr.bf16.gmra.mrb[36].mxu0 %v1744_v18  ;;  %2175 = vmatprep.subr.bf16.mxu1 %v2256_v2 }
  0x6c   :  { %1258 = vmatmul.mubr.bf16.gmra.mrb[36].mxu1 %v1746_v19  ;;  %1168 = vmatprep.mubr.bf16.mxu0 %v1753_v20 }
  0x6d   :  { %1265 = vmatprep.mubr.bf16.mxu1 %v1755_v21  ;;  %2146 = vmatpush3.bf16.msra.mxu0 %v2256_v2 }
  0x6e   :  { %2183 = vmatpush3.bf16.msra.mxu1 %v2256_v2  ;;  %2147 = vmatprep.subr.bf16.mxu0 %v2257_v3 }
  0x6f   :  { %2176 = vmatprep.subr.bf16.mxu1 %v2257_v3 }
  0x71   :  { %2148 = vmatpush3.bf16.msra.mxu0 %v2257_v3 }
  0x72   :  { %2184 = vmatpush3.bf16.msra.mxu1 %v2257_v3  ;;  %2149 = vmatprep.subr.bf16.mxu0 %v2258_v4 }
  0x73   :  { %1169 = vmatmul.mubr.bf16.gmra.mrb[40].mxu0 %v1752_v26  ;;  %2177 = vmatprep.subr.bf16.mxu1 %v2258_v4 }
  0x74   :  { %1266 = vmatmul.mubr.bf16.gmra.mrb[40].mxu1 %v1754_v27  ;;  %1176 = vmatprep.mubr.bf16.mxu0 %v1761_v28 }
  0x75   :  { %1273 = vmatprep.mubr.bf16.mxu1 %v1763_v29  ;;  %2150 = vmatpush3.bf16.msra.mxu0 %v2258_v4 }
  0x76   :  { %2185 = vmatpush3.bf16.msra.mxu1 %v2258_v4  ;;  %2151 = vmatprep.subr.bf16.mxu0 %v2259_v5 }
  0x77   :  { %2178 = vmatprep.subr.bf16.mxu1 %v2259_v5 }
  0x79   :  { %2152 = vmatpush3.bf16.msra.mxu0 %v2259_v5 }
  0x7a   :  { %2186 = vmatpush3.bf16.msra.mxu1 %v2259_v5  ;;  %2153 = vmatprep.subr.bf16.mxu0 %v2260_v6 }
  0x7b   :  { %1177 = vmatmul.mubr.bf16.gmra.mrb[44].mxu0 %v1760_v34  ;;  %2179 = vmatprep.subr.bf16.mxu1 %v2260_v6 }
  0x7c   :  { %1274 = vmatmul.mubr.bf16.gmra.mrb[44].mxu1 %v1762_v35  ;;  %1184 = vmatprep.mubr.bf16.mxu0 %v1769_v36 }
  0x7d   :  { %1281 = vmatprep.mubr.bf16.mxu1 %v1771_v37  ;;  %2154 = vmatpush3.bf16.msra.mxu0 %v2260_v6 }
  0x7e   :  { %2187 = vmatpush3.bf16.msra.mxu1 %v2260_v6  ;;  %2155 = vmatprep.subr.bf16.mxu0 %v2261_v7 }
  0x7f   :  { %2180 = vmatprep.subr.bf16.mxu1 %v2261_v7 }
  0x81   :  { %2156 = vmatpush3.bf16.msra.mxu0 %v2261_v7 }
  0x82   :  { %2188 = vmatpush3.bf16.msra.mxu1 %v2261_v7 }
  0x83   :  { %1185 = vmatmul.mubr.bf16.gmra.mrb[48].mxu0 %v1768_v42 }
  0x84   :  { %1282 = vmatmul.mubr.bf16.gmra.mrb[48].mxu1 %v1770_v43  ;;  %1192 = vmatprep.mubr.bf16.mxu0 %v1777_v44 }
  0x85   :  { %1289 = vmatprep.mubr.bf16.mxu1 %v1779_v45 }
  0x8b   :  { %1193 = vmatmul.mubr.bf16.gmra.mrb[52].mxu0 %v1776_v50 }
  0x8c   :  { %1290 = vmatmul.mubr.bf16.gmra.mrb[52].mxu1 %v1778_v51  ;;  %1200 = vmatprep.mubr.bf16.mxu0 %v1785_v52 }
  0x8d   :  { %1297 = vmatprep.mubr.bf16.mxu1 %v1787_v53 }
  0x93   :  { %1201 = vmatmul.mubr.bf16.gmra.mrb[56].mxu0 %v1784_v58 }
  0x94   :  { %1298 = vmatmul.mubr.bf16.gmra.mrb[56].mxu1 %v1786_v59  ;;  %1208 = vmatprep.mubr.bf16.mxu0 %v1793_v60 }
  0x95   :  { %1305 = vmatprep.mubr.bf16.mxu1 %v1795_v61 }
  0x9b   :  { %1209 = vmatmul.mubr.bf16.gmra.mrb[60].mxu0 %v1792_v62 }
  0x9c   :  { %1306 = vmatmul.mubr.bf16.gmra.mrb[60].mxu1 %v1794_v63 }
  0xf6   :  { %v1885_v8 = vpop.f32.mrb[0].mxu0 }
  0xf7   :  { %v1949_v9 = vpop.f32.mrb[0].mxu1  ;;  %v1886_v11 = vpop.f32.mrb[1].mxu0 }
  0xf8   :  { %v1887_v12 = vadd.f32 %v1886_v11, %v1885_v8  ;;  %v1950_v13 = vpop.f32.mrb[1].mxu1  ;;  %v1888_v14 = vpop.f32.mrb[2].mxu0 }
  0xf9   :  { %v1951_v15 = vadd.f32 %v1950_v13, %v1949_v9  ;;  %v1952_v16 = vpop.f32.mrb[2].mxu1  ;;  %v1889_v17 = vpop.f32.mrb[3].mxu0 }
  0xfa   :  { %v961_v18 = vadd.f32 %v1887_v12, %v2709_v10  ;;  %v1890_v19 = vadd.f32 %v1889_v17, %v1888_v14  ;;  %v1953_v20 = vpop.f32.mrb[3].mxu1 }
  0xfb   :  { %v1954_v21 = vadd.f32 %v1953_v20, %v1952_v16 }
  0xfc   :  { %v2712_v22 = vadd.f32 %v1951_v15, %v961_v18  ;;  %v964_v23 = vadd.f32 %v1890_v19, %v2709_v10 }
  0xfe   :  { %v2715_v24 = vadd.f32 %v1954_v21, %v964_v23  ;;  %v1891_v25 = vpop.f32.mrb[4].mxu0 }
  0xff   :  { %v1955_v26 = vpop.f32.mrb[4].mxu1  ;;  %v1892_v27 = vpop.f32.mrb[5].mxu0 }
 0x100   :  { %v1893_v28 = vadd.f32 %v1892_v27, %v1891_v25  ;;  %v1956_v29 = vpop.f32.mrb[5].mxu1  ;;  %v1894_v30 = vpop.f32.mrb[6].mxu0 }
 0x101   :  { %v1957_v31 = vadd.f32 %v1956_v29, %v1955_v26  ;;  %v1958_v32 = vpop.f32.mrb[6].mxu1  ;;  %v1895_v33 = vpop.f32.mrb[7].mxu0 }
 0x102   :  { %v969_v34 = vadd.f32 %v1893_v28, %v2709_v10  ;;  %v1896_v35 = vadd.f32 %v1895_v33, %v1894_v30  ;;  %v1959_v36 = vpop.f32.mrb[7].mxu1 }
 0x103   :  { %v1960_v37 = vadd.f32 %v1959_v36, %v1958_v32 }
 0x104   :  { %v2718_v38 = vadd.f32 %v1957_v31, %v969_v34  ;;  %v972_v39 = vadd.f32 %v1896_v35, %v2709_v10 }
 0x106   :  { %v2721_v40 = vadd.f32 %v1960_v37, %v972_v39  ;;  %v1897_v41 = vpop.f32.mrb[8].mxu0 }
 0x107   :  { %v1961_v42 = vpop.f32.mrb[8].mxu1  ;;  %v1898_v43 = vpop.f32.mrb[9].mxu0 }
 0x108   :  { %v1899_v44 = vadd.f32 %v1898_v43, %v1897_v41  ;;  %v1962_v45 = vpop.f32.mrb[9].mxu1  ;;  %v1900_v46 = vpop.f32.mrb[10].mxu0 }
 0x109   :  { %v1963_v47 = vadd.f32 %v1962_v45, %v1961_v42  ;;  %v1964_v48 = vpop.f32.mrb[10].mxu1  ;;  %v1901_v49 = vpop.f32.mrb[11].mxu0 }
 0x10a   :  { %v977_v50 = vadd.f32 %v1899_v44, %v2709_v10  ;;  %v1902_v51 = vadd.f32 %v1901_v49, %v1900_v46  ;;  %v1965_v52 = vpop.f32.mrb[11].mxu1 }
 0x10b   :  { %v1966_v53 = vadd.f32 %v1965_v52, %v1964_v48 }
 0x10c   :  { %v2724_v54 = vadd.f32 %v1963_v47, %v977_v50  ;;  %v980_v55 = vadd.f32 %v1902_v51, %v2709_v10 }
 0x10e   :  { %v2727_v56 = vadd.f32 %v1966_v53, %v980_v55  ;;  %v1903_v57 = vpop.f32.mrb[12].mxu0 }
 0x10f   :  { %v1967_v58 = vpop.f32.mrb[12].mxu1  ;;  %v1904_v59 = vpop.f32.mrb[13].mxu0 }
 0x110   :  { %v1905_v60 = vadd.f32 %v1904_v59, %v1903_v57  ;;  %v1968_v61 = vpop.f32.mrb[13].mxu1  ;;  %v1906_v62 = vpop.f32.mrb[14].mxu0 }
 0x111   :  { %v1969_v63 = vadd.f32 %v1968_v61, %v1967_v58  ;;  %v1970_v0 = vpop.f32.mrb[14].mxu1  ;;  %v1907_v1 = vpop.f32.mrb[15].mxu0 }
 0x112   :  { %v985_v2 = vadd.f32 %v1905_v60, %v2709_v10  ;;  %v1908_v3 = vadd.f32 %v1907_v1, %v1906_v62  ;;  %v1971_v4 = vpop.f32.mrb[15].mxu1 }
 0x113   :  { %v1972_v5 = vadd.f32 %v1971_v4, %v1970_v0 }
 0x114   :  { %v2730_v6 = vadd.f32 %v1969_v63, %v985_v2  ;;  %v988_v7 = vadd.f32 %v1908_v3, %v2709_v10 }
 0x116   :  { %v2733_v8 = vadd.f32 %v1972_v5, %v988_v7  ;;  %v1909_v9 = vpop.f32.mrb[16].mxu0 }
 0x117   :  { %v1973_v11 = vpop.f32.mrb[16].mxu1  ;;  %v1910_v12 = vpop.f32.mrb[17].mxu0 }
 0x118   :  { %v1911_v13 = vadd.f32 %v1910_v12, %v1909_v9  ;;  %v1974_v14 = vpop.f32.mrb[17].mxu1  ;;  %v1912_v15 = vpop.f32.mrb[18].mxu0 }
 0x119   :  { %v1975_v16 = vadd.f32 %v1974_v14, %v1973_v11  ;;  %v1976_v17 = vpop.f32.mrb[18].mxu1  ;;  %v1913_v18 = vpop.f32.mrb[19].mxu0 }
 0x11a   :  { %v993_v19 = vadd.f32 %v1911_v13, %v2709_v10  ;;  %v1914_v20 = vadd.f32 %v1913_v18, %v1912_v15  ;;  %v1977_v21 = vpop.f32.mrb[19].mxu1 }
 0x11b   :  { %v1978_v23 = vadd.f32 %v1977_v21, %v1976_v17 }
 0x11c   :  { %v2736_v25 = vadd.f32 %v1975_v16, %v993_v19  ;;  %v996_v26 = vadd.f32 %v1914_v20, %v2709_v10 }
 0x11e   :  { %v2739_v27 = vadd.f32 %v1978_v23, %v996_v26  ;;  %v1915_v28 = vpop.f32.mrb[20].mxu0 }
 0x11f   :  { %v1979_v29 = vpop.f32.mrb[20].mxu1  ;;  %v1916_v30 = vpop.f32.mrb[21].mxu0 }
 0x120   :  { %v1917_v31 = vadd.f32 %v1916_v30, %v1915_v28  ;;  %v1980_v32 = vpop.f32.mrb[21].mxu1  ;;  %v1918_v33 = vpop.f32.mrb[22].mxu0 }
 0x121   :  { %v1981_v34 = vadd.f32 %v1980_v32, %v1979_v29  ;;  %v1982_v35 = vpop.f32.mrb[22].mxu1  ;;  %v1919_v36 = vpop.f32.mrb[23].mxu0 }
 0x122   :  { %v1001_v37 = vadd.f32 %v1917_v31, %v2709_v10  ;;  %v1920_v39 = vadd.f32 %v1919_v36, %v1918_v33  ;;  %v1983_v41 = vpop.f32.mrb[23].mxu1 }
 0x123   :  { %v1984_v42 = vadd.f32 %v1983_v41, %v1982_v35 }
 0x124   :  { %v2742_v43 = vadd.f32 %v1981_v34, %v1001_v37  ;;  %v1004_v44 = vadd.f32 %v1920_v39, %v2709_v10 }
 0x126   :  { %v2745_v45 = vadd.f32 %v1984_v42, %v1004_v44  ;;  %v1921_v46 = vpop.f32.mrb[24].mxu0 }
 0x127   :  { %v1985_v47 = vpop.f32.mrb[24].mxu1  ;;  %v1922_v48 = vpop.f32.mrb[25].mxu0 }
 0x128   :  { %v1923_v49 = vadd.f32 %v1922_v48, %v1921_v46  ;;  %v1986_v50 = vpop.f32.mrb[25].mxu1  ;;  %v1924_v51 = vpop.f32.mrb[26].mxu0 }
 0x129   :  { %v1987_v52 = vadd.f32 %v1986_v50, %v1985_v47  ;;  %v1988_v53 = vpop.f32.mrb[26].mxu1  ;;  %v1925_v55 = vpop.f32.mrb[27].mxu0 }
 0x12a   :  { %v1009_v57 = vadd.f32 %v1923_v49, %v2709_v10  ;;  %v1926_v58 = vadd.f32 %v1925_v55, %v1924_v51  ;;  %v1989_v59 = vpop.f32.mrb[27].mxu1 }
 0x12b   :  { %v1990_v60 = vadd.f32 %v1989_v59, %v1988_v53 }
 0x12c   :  { %v2748_v61 = vadd.f32 %v1987_v52, %v1009_v57  ;;  %v1012_v62 = vadd.f32 %v1926_v58, %v2709_v10 }
 0x12e   :  { %v2751_v63 = vadd.f32 %v1990_v60, %v1012_v62  ;;  %v1927_v0 = vpop.f32.mrb[28].mxu0 }
 0x12f   :  { %v1991_v1 = vpop.f32.mrb[28].mxu1  ;;  %v1928_v2 = vpop.f32.mrb[29].mxu0 }
 0x130   :  { %v1929_v3 = vadd.f32 %v1928_v2, %v1927_v0  ;;  %v1992_v4 = vpop.f32.mrb[29].mxu1  ;;  %v1930_v5 = vpop.f32.mrb[30].mxu0 }
 0x131   :  { %v1993_v7 = vadd.f32 %v1992_v4, %v1991_v1  ;;  %v1994_v9 = vpop.f32.mrb[30].mxu1  ;;  %v1931_v11 = vpop.f32.mrb[31].mxu0 }
 0x132   :  { %v1017_v12 = vadd.f32 %v1929_v3, %v2709_v10  ;;  %v1932_v13 = vadd.f32 %v1931_v11, %v1930_v5  ;;  %v1995_v14 = vpop.f32.mrb[31].mxu1 }
 0x133   :  { %v1996_v15 = vadd.f32 %v1995_v14, %v1994_v9 }
 0x134   :  { %v2754_v16 = vadd.f32 %v1993_v7, %v1017_v12  ;;  %v1020_v17 = vadd.f32 %v1932_v13, %v2709_v10 }
 0x136   :  { %v2757_v18 = vadd.f32 %v1996_v15, %v1020_v17  ;;  %v2013_v19 = vpop.f32.mrb[32].mxu0 }
 0x137   :  { %v2077_v20 = vpop.f32.mrb[32].mxu1  ;;  %v2014_v21 = vpop.f32.mrb[33].mxu0 }
 0x138   :  { %v2015_v23 = vadd.f32 %v2014_v21, %v2013_v19  ;;  %v2078_v26 = vpop.f32.mrb[33].mxu1  ;;  %v2016_v28 = vpop.f32.mrb[34].mxu0 }
 0x139   :  { %v2079_v29 = vadd.f32 %v2078_v26, %v2077_v20  ;;  %v2080_v30 = vpop.f32.mrb[34].mxu1  ;;  %v2017_v31 = vpop.f32.mrb[35].mxu0 }
 0x13a   :  { %v1155_v32 = vadd.f32 %v2015_v23, %v2712_v22  ;;  %v2018_v33 = vadd.f32 %v2017_v31, %v2016_v28  ;;  %v2081_v34 = vpop.f32.mrb[35].mxu1 }
 0x13b   :  { %v2082_v35 = vadd.f32 %v2081_v34, %v2080_v30 }
 0x13c   :  { %v1252_v36 = vadd.f32 %v2079_v29, %v1155_v32  ;;  %v1158_v37 = vadd.f32 %v2018_v33, %v2715_v24 }
 0x13e   :  { %v1330_v10 = vmul.f32 0.2, %v1252_v36  ;;  %v1255_v39 = vadd.f32 %v2082_v35, %v1158_v37  ;;  %v2019_v41 = vpop.f32.mrb[36].mxu0  ;;  %vm1314_vm0 = vcmp.ge.f32.partialorder %v1252_v36, 0.0 }
 0x13f   :  { %v2083_v42 = vpop.f32.mrb[36].mxu1  ;;  %v2020_v44 = vpop.f32.mrb[37].mxu0 }
 0x140   :  { %vm1315_vm1 = vcmp.ge.f32.partialorder %v1255_v39, 0.0  ;;  %v1331_v46 = vmul.f32 0.2, %v1255_v39  ;;  %v2021_v47 = vadd.f32 %v2020_v44, %v2019_v41  ;;  %v2084_v48 = vpop.f32.mrb[37].mxu1  ;;  %v2022_v49 = vpop.f32.mrb[38].mxu0  ;;  %v1346_v57 = vsel %vm1314_vm0, %v1252_v36, %v1330_v10 }
 0x141   :  { %v2085_v50 = vadd.f32 %v2084_v48, %v2083_v42  ;;  %v2086_v51 = vpop.f32.mrb[38].mxu1  ;;  %v2023_v22 = vpop.f32.mrb[39].mxu0 }
 0x142   :  { %v1163_v52 = vadd.f32 %v2021_v47, %v2718_v38  ;;  %v2024_v53 = vadd.f32 %v2023_v22, %v2022_v49  ;;  %v2087_v55 = vpop.f32.mrb[39].mxu1  ;;  %v1347_v24 = vsel %vm1315_vm1, %v1255_v39, %v1331_v46 }
 0x143   :  { %v2088_v58 = vadd.f32 %v2087_v55, %v2086_v51  ;;  %v1362_v59 = vpack.c.bf16 %v1347_v24, %v1346_v57 }
 0x144   :  { %v1260_v60 = vadd.f32 %v2085_v50, %v1163_v52  ;;  %v1166_v62 = vadd.f32 %v2024_v53, %v2721_v40 }
 0x145   :  { %2157 = vmatprep.mubr.bf16.mxu0 %v1362_v59 }
 0x146   :  { %v1332_v0 = vmul.f32 0.2, %v1260_v60  ;;  %v1263_v1 = vadd.f32 %v2088_v58, %v1166_v62  ;;  %v2025_v2 = vpop.f32.mrb[40].mxu0  ;;  %vm1316_vm2 = vcmp.ge.f32.partialorder %v1260_v60, 0.0 }
 0x147   :  { %v2089_v3 = vpop.f32.mrb[40].mxu1  ;;  %v2026_v4 = vpop.f32.mrb[41].mxu0 }
 0x148   :  { %vm1317_vm3 = vcmp.ge.f32.partialorder %v1263_v1, 0.0  ;;  %v1333_v5 = vmul.f32 0.2, %v1263_v1  ;;  %v2027_v7 = vadd.f32 %v2026_v4, %v2025_v2  ;;  %v2090_v38 = vpop.f32.mrb[41].mxu1  ;;  %v2028_v9 = vpop.f32.mrb[42].mxu0  ;;  %v1348_v14 = vsel %vm1316_vm2, %v1260_v60, %v1332_v0 }
 0x149   :  { %v2091_v11 = vadd.f32 %v2090_v38, %v2089_v3  ;;  %v2092_v12 = vpop.f32.mrb[42].mxu1  ;;  %v2029_v13 = vpop.f32.mrb[43].mxu0 }
 0x14a   :  { %v1349_v15 = vsel %vm1317_vm3, %v1263_v1, %v1333_v5  ;;  %v1171_v17 = vadd.f32 %v2027_v7, %v2724_v54  ;;  %v2030_v40 = vadd.f32 %v2029_v13, %v2028_v9  ;;  %v2093_v19 = vpop.f32.mrb[43].mxu1 }
 0x14b   :  { %v1363_v20 = vpack.c.bf16 %v1349_v15, %v1348_v14  ;;  %v2094_v21 = vadd.f32 %v2093_v19, %v2092_v12 }
 0x14c   :  { %v1268_v23 = vadd.f32 %v2091_v11, %v1171_v17  ;;  %v1174_v26 = vadd.f32 %v2030_v40, %v2727_v56 }
 0x14d   :  { %2158 = vmatmul.mubr.bf16.vlgmr.msra.gmra.mrb[64].mxu0 %v1363_v20 }
 0x14e   :  { %v1334_v28 = vmul.f32 0.2, %v1268_v23  ;;  %v1271_v29 = vadd.f32 %v2094_v21, %v1174_v26  ;;  %v2031_v30 = vpop.f32.mrb[44].mxu0  ;;  %vm1318_vm4 = vcmp.ge.f32.partialorder %v1268_v23, 0.0 }
 0x14f   :  { %v2095_v31 = vpop.f32.mrb[44].mxu1  ;;  %v2032_v32 = vpop.f32.mrb[45].mxu0 }
 0x150   :  { %vm1319_vm5 = vcmp.ge.f32.partialorder %v1271_v29, 0.0  ;;  %v1335_v33 = vmul.f32 0.2, %v1271_v29  ;;  %v2033_v34 = vadd.f32 %v2032_v32, %v2031_v30  ;;  %v2096_v35 = vpop.f32.mrb[45].mxu1  ;;  %v2034_v36 = vpop.f32.mrb[46].mxu0  ;;  %v1350_v56 = vsel %vm1318_vm4, %v1268_v23, %v1334_v28 }
 0x151   :  { %v2097_v54 = vadd.f32 %v2096_v35, %v2095_v31  ;;  %v2098_v37 = vpop.f32.mrb[46].mxu1  ;;  %v2035_v10 = vpop.f32.mrb[47].mxu0 }
 0x152   :  { %v1179_v39 = vadd.f32 %v2033_v34, %v2730_v6  ;;  %v2036_v41 = vadd.f32 %v2035_v10, %v2034_v36  ;;  %v2099_v42 = vpop.f32.mrb[47].mxu1  ;;  %v1351_v44 = vsel %vm1319_vm5, %v1271_v29, %v1335_v33 }
 0x153   :  { %v2100_v46 = vadd.f32 %v2099_v42, %v2098_v37  ;;  %v1364_v47 = vpack.c.bf16 %v1351_v44, %v1350_v56 }
 0x154   :  { %v1276_v48 = vadd.f32 %v2097_v54, %v1179_v39  ;;  %v1182_v49 = vadd.f32 %v2036_v41, %v2733_v8 }
 0x155   :  { %2161 = vmatprep.mubr.bf16.mxu0 %v1364_v47 }
 0x156   :  { %v1336_v50 = vmul.f32 0.2, %v1276_v48  ;;  %v1279_v51 = vadd.f32 %v2100_v46, %v1182_v49  ;;  %v2037_v22 = vpop.f32.mrb[48].mxu0  ;;  %vm1320_vm6 = vcmp.ge.f32.partialorder %v1276_v48, 0.0 }
 0x157   :  { %v2101_v52 = vpop.f32.mrb[48].mxu1  ;;  %v2038_v53 = vpop.f32.mrb[49].mxu0 }
 0x158   :  { %vm1321_vm7 = vcmp.ge.f32.partialorder %v1279_v51, 0.0  ;;  %v1337_v55 = vmul.f32 0.2, %v1279_v51  ;;  %v2039_v57 = vadd.f32 %v2038_v53, %v2037_v22  ;;  %v2102_v6 = vpop.f32.mrb[49].mxu1  ;;  %v2040_v24 = vpop.f32.mrb[50].mxu0  ;;  %v1352_v8 = vsel %vm1320_vm6, %v1276_v48, %v1336_v50 }
 0x159   :  { %v2103_v58 = vadd.f32 %v2102_v6, %v2101_v52  ;;  %v2104_v59 = vpop.f32.mrb[50].mxu1  ;;  %v2041_v60 = vpop.f32.mrb[51].mxu0 }
 0x15a   :  { %v1187_v62 = vadd.f32 %v2039_v57, %v2736_v25  ;;  %v2042_v0 = vadd.f32 %v2041_v60, %v2040_v24  ;;  %v2105_v1 = vpop.f32.mrb[51].mxu1  ;;  %v1353_v2 = vsel %vm1321_vm7, %v1279_v51, %v1337_v55 }
 0x15b   :  { %v2106_v3 = vadd.f32 %v2105_v1, %v2104_v59  ;;  %v1365_v4 = vpack.c.bf16 %v1353_v2, %v1352_v8 }
 0x15c   :  { %v1284_v5 = vadd.f32 %v2103_v58, %v1187_v62  ;;  %v1190_v7 = vadd.f32 %v2042_v0, %v2739_v27 }
 0x15d   :  { %2162 = vmatmul.mubr.bf16.gmra.mrb[68].mxu0 %v1365_v4 }
 0x15e   :  { %v1338_v38 = vmul.f32 0.2, %v1284_v5  ;;  %v1287_v9 = vadd.f32 %v2106_v3, %v1190_v7  ;;  %v2043_v11 = vpop.f32.mrb[52].mxu0  ;;  %vm1322_vm8 = vcmp.ge.f32.partialorder %v1284_v5, 0.0 }
 0x15f   :  { %v2107_v12 = vpop.f32.mrb[52].mxu1  ;;  %v2044_v13 = vpop.f32.mrb[53].mxu0 }
 0x160   :  { %vm1323_vm9 = vcmp.ge.f32.partialorder %v1287_v9, 0.0  ;;  %v1339_v14 = vmul.f32 0.2, %v1287_v9  ;;  %v2045_v15 = vadd.f32 %v2044_v13, %v2043_v11  ;;  %v2108_v25 = vpop.f32.mrb[53].mxu1  ;;  %v2046_v17 = vpop.f32.mrb[54].mxu0  ;;  %v1354_v27 = vsel %vm1322_vm8, %v1284_v5, %v1338_v38 }
 0x161   :  { %v2109_v40 = vadd.f32 %v2108_v25, %v2107_v12  ;;  %v2110_v19 = vpop.f32.mrb[54].mxu1  ;;  %v2047_v20 = vpop.f32.mrb[55].mxu0 }
 0x162   :  { %v1195_v21 = vadd.f32 %v2045_v15, %v2742_v43  ;;  %v2048_v23 = vadd.f32 %v2047_v20, %v2046_v17  ;;  %v2111_v26 = vpop.f32.mrb[55].mxu1  ;;  %v1355_v28 = vsel %vm1323_vm9, %v1287_v9, %v1339_v14 }
 0x163   :  { %v2112_v29 = vadd.f32 %v2111_v26, %v2110_v19  ;;  %v1366_v30 = vpack.c.bf16 %v1355_v28, %v1354_v27 }
 0x164   :  { %v1292_v31 = vadd.f32 %v2109_v40, %v1195_v21  ;;  %v1198_v32 = vadd.f32 %v2048_v23, %v2745_v45 }
 0x165   :  { %2165 = vmatprep.mubr.bf16.mxu1 %v1366_v30 }
 0x166   :  { %v1340_v33 = vmul.f32 0.2, %v1292_v31  ;;  %v1295_v34 = vadd.f32 %v2112_v29, %v1198_v32  ;;  %v2049_v35 = vpop.f32.mrb[56].mxu0  ;;  %vm1324_vm10 = vcmp.ge.f32.partialorder %v1292_v31, 0.0 }
 0x167   :  { %v2113_v36 = vpop.f32.mrb[56].mxu1  ;;  %v2050_v54 = vpop.f32.mrb[57].mxu0 }
 0x168   :  { %vm1325_vm11 = vcmp.ge.f32.partialorder %v1295_v34, 0.0  ;;  %v1341_v37 = vmul.f32 0.2, %v1295_v34  ;;  %v2051_v10 = vadd.f32 %v2050_v54, %v2049_v35  ;;  %v2114_v43 = vpop.f32.mrb[57].mxu1  ;;  %v2052_v39 = vpop.f32.mrb[58].mxu0  ;;  %v1356_v44 = vsel %vm1324_vm10, %v1292_v31, %v1340_v33 }
 0x169   :  { %v2115_v41 = vadd.f32 %v2114_v43, %v2113_v36  ;;  %v2116_v42 = vpop.f32.mrb[58].mxu1  ;;  %v2053_v56 = vpop.f32.mrb[59].mxu0 }
 0x16a   :  { %v1357_v46 = vsel %vm1325_vm11, %v1295_v34, %v1341_v37  ;;  %v1203_v47 = vadd.f32 %v2051_v10, %v2748_v61  ;;  %v2054_v45 = vadd.f32 %v2053_v56, %v2052_v39  ;;  %v2117_v48 = vpop.f32.mrb[59].mxu1 }
 0x16b   :  { %v1367_v49 = vpack.c.bf16 %v1357_v46, %v1356_v44  ;;  %v2118_v50 = vadd.f32 %v2117_v48, %v2116_v42 }
 0x16c   :  { %v1300_v51 = vadd.f32 %v2115_v41, %v1203_v47  ;;  %v1206_v22 = vadd.f32 %v2054_v45, %v2751_v63 }
 0x16d   :  { %2166 = vmatmul.mubr.bf16.vlgmr.msra.gmra.mrb[64].mxu1 %v1367_v49 }
 0x16e   :  { %v1342_v52 = vmul.f32 0.2, %v1300_v51  ;;  %v1303_v53 = vadd.f32 %v2118_v50, %v1206_v22  ;;  %v2055_v55 = vpop.f32.mrb[60].mxu0  ;;  %vm1326_vm12 = vcmp.ge.f32.partialorder %v1300_v51, 0.0 }
 0x16f   :  { %v2119_v57 = vpop.f32.mrb[60].mxu1  ;;  %v2056_v6 = vpop.f32.mrb[61].mxu0 }
 0x170   :  { %vm1327_vm13 = vcmp.ge.f32.partialorder %v1303_v53, 0.0  ;;  %v1343_v24 = vmul.f32 0.2, %v1303_v53  ;;  %v2057_v58 = vadd.f32 %v2056_v6, %v2055_v55  ;;  %v2120_v59 = vpop.f32.mrb[61].mxu1  ;;  %v2058_v60 = vpop.f32.mrb[62].mxu0  ;;  %v1358_v63 = vsel %vm1326_vm12, %v1300_v51, %v1342_v52 }
 0x171   :  { %v2121_v61 = vadd.f32 %v2120_v59, %v2119_v57  ;;  %v2122_v62 = vpop.f32.mrb[62].mxu1  ;;  %v2059_v0 = vpop.f32.mrb[63].mxu0 }
 0x172   :  { %v1211_v1 = vadd.f32 %v2057_v58, %v2754_v16  ;;  %v2060_v8 = vadd.f32 %v2059_v0, %v2058_v60  ;;  %v2123_v2 = vpop.f32.mrb[63].mxu1  ;;  %v1359_v3 = vsel %vm1327_vm13, %v1303_v53, %v1343_v24  ;;  %v2262_v16 = vmov 0.0  }
 0x173   :  { %v2124_v4 = vadd.f32 %v2123_v2, %v2122_v62  ;;  %v1368_v5 = vpack.c.bf16 %v1359_v3, %v1358_v63  ;;  %1686 = vst [vmem:[%s2833_s5 + $0x8] sm:$0xff] %v2262_v16  ;;  %1687 = vst [vmem:[%s2833_s5 + $0x10] sm:$0xff] %v2262_v16 }
 0x174   :  { %v1308_v7 = vadd.f32 %v2121_v61, %v1211_v1  ;;  %v1214_v38 = vadd.f32 %v2060_v8, %v2757_v18  ;;  %1688 = vst [vmem:[%s2833_s5 + $0x18] sm:$0xff] %v2262_v16  ;;  %1689 = vst [vmem:[%s2833_s5 + $0x20] sm:$0xff] %v2262_v16  ;;  %v1860_v18 = vld [vmem:[%s2834_s4] ss:$0 sm:$0xff] }
 0x175   :  { %2169 = vmatprep.mubr.bf16.mxu1 %v1368_v5  ;;  %1690 = vst [vmem:[%s2833_s5 + $0x28] sm:$0xff] %v2262_v16  ;;  %1691 = vst [vmem:[%s2833_s5 + $0x30] sm:$0xff] %v2262_v16 }
 0x176   :  { %v1344_v9 = vmul.f32 0.2, %v1308_v7  ;;  %v1311_v11 = vadd.f32 %v2124_v4, %v1214_v38  ;;  %vm1328_vm14 = vcmp.ge.f32.partialorder %v1308_v7, 0.0  ;;  %1692 = vst [vmem:[%s2833_s5 + $0x38] sm:$0xff] %v2262_v16  ;;  %1693 = vst [vmem:[%s2833_s5 + $0x40] sm:$0xff] %v2262_v16 }
 0x177   :  { %1694 = vst [vmem:[%s2833_s5 + $0x48] sm:$0xff] %v2262_v16  ;;  %1695 = vst [vmem:[%s2833_s5 + $0x50] sm:$0xff] %v2262_v16 }
 0x178   :  { %vm1329_vm15 = vcmp.ge.f32.partialorder %v1311_v11, 0.0  ;;  %v1345_v12 = vmul.f32 0.2, %v1311_v11  ;;  %v1360_v13 = vsel %vm1328_vm14, %v1308_v7, %v1344_v9  ;;  %1696 = vst [vmem:[%s2833_s5 + $0x58] sm:$0xff] %v2262_v16  ;;  %1697 = vst [vmem:[%s2833_s5 + $0x60] sm:$0xff] %v2262_v16 }
 0x179   :  { %1698 = vst [vmem:[%s2833_s5 + $0x68] sm:$0xff] %v2262_v16  ;;  %1699 = vst [vmem:[%s2833_s5 + $0x70] sm:$0xff] %v2262_v16 }
 0x17a   :  { %v1361_v14 = vsel %vm1329_vm15, %v1311_v11, %v1345_v12  ;;  %1700 = vst [vmem:[%s2833_s5 + $0x78] sm:$0xff] %v2262_v16 }
 0x17b   :  { %v1369_v15 = vpack.c.bf16 %v1361_v14, %v1360_v13 }
 0x17d   :  { %2170 = vmatmul.mubr.bf16.gmra.mrb[68].mxu1 %v1369_v15 }
 0x220   :  { %v2159_v25 = vpop.f32.mrb[64].mxu0 }
 0x221   :  { %v1475_v17 = vpop.f32.mrb[65].mxu0 }
 0x222   :  { %v1476_v40 = vadd.f32 %v1860_v18, %v1475_v17  ;;  %v2160_v19 = vpop.f32.mrb[66].mxu0 }
 0x223   :  { %v1478_v20 = vpop.f32.mrb[67].mxu0 }
 0x224   :  { %vm1538_vm0 = vcmp.ge.f32.partialorder %v1476_v40, 0.0  ;;  %v1554_v21 = vmul.f32 0.2, %v1476_v40 }
 0x226   :  { %v1570_v23 = vsel %vm1538_vm0, %v1476_v40, %v1554_v21 }
 0x227   :  { %1685 = vst [vmem:[%s2833_s5] sm:$0xff] %v1570_v23  ;;  %v1716_v26 = vrot.slane %v1570_v23, 4 }
 0x229   :  { %v1717_v27 = vadd.f32 %v1716_v26, %v1570_v23 }
 0x22b   :  { %v1718_v28 = vrot.slane %v1717_v27, 2 }
 0x22d   :  { %v1719_v29 = vadd.f32 %v1718_v28, %v1717_v27 }
 0x22f   :  { %v1720_v30 = vrot.slane %v1719_v29, 1 }
 0x230   :  { %v2163_v31 = vpop.f32.mrb[68].mxu0 }
 0x231   :  { %v1721_v32 = vadd.f32 %v1720_v30, %v1719_v29  ;;  %v1491_v33 = vpop.f32.mrb[69].mxu0 }
 0x232   :  { %v2164_v34 = vpop.f32.mrb[70].mxu0 }
 0x233   :  { %1722 = vst [vmem:[%s2835_s6] sm:$0x1] %v1721_v32  ;;  %v1494_v35 = vpop.f32.mrb[71].mxu0 }
 0x240   :  { %v2167_v36 = vpop.f32.mrb[64].mxu1 }
 0x241   :  { %v1507_v54 = vpop.f32.mrb[65].mxu1 }
 0x242   :  { %v2168_v37 = vpop.f32.mrb[66].mxu1 }
 0x243   :  { %v1510_v10 = vpop.f32.mrb[67].mxu1 }
 0x250   :  { %v2171_v43 = vpop.f32.mrb[68].mxu1 }
 0x251   :  { %v1523_v39 = vpop.f32.mrb[69].mxu1 }
 0x252   :  { %v2172_v41 = vpop.f32.mrb[70].mxu1 }
 0x253   :  { %v1526_v42 = vpop.f32.mrb[71].mxu1 }

// kernel: rkm_forward.5
= control target key start
LH: loop header
LB: loop body
LE: loop exit
PB: predicated region body
PF: predicated region fallthrough
CT: control target
= control target key end

     0   :  { %16 = vsyncpa [#allocation3], 0  ;;  %s6387_s0 = inlined_call_operand.vmem [shape: f32[128,128], index: 0, kind: input, shape index: {}]   ;;  %s6388_s1 = inlined_call_operand.vmem [shape: f32[1,128], index: 1, kind: input, shape index: {}]   ;;  %s6389_s2 = inlined_call_operand.vmem [shape: f32[1,128], index: 2, kind: input, shape index: {}]   ;;  %s6390_s3 = inlined_call_operand.vmem [shape: bf16[128,256], index: 3, kind: input, shape index: {}]   ;;  %s6391_s4 = inlined_call_operand.vmem [shape: f32[1,128], index: 4, kind: input, shape index: {}]   ;;  %s6392_s5 = inlined_call_operand.vmem [shape: bf16[128,1024], index: 5, kind: input, shape index: {}]   ;;  %s6393_s6 = inlined_call_operand.vmem [shape: f32[1,1024], index: 6, kind: input, shape index: {}]   ;;  %s6394_s7 = inlined_call_operand.vmem [shape: f32[4], index: 7, kind: input, shape index: {}]   ;;  %s6395_s8 = inlined_call_operand.vmem [shape: f32[128,128], index: 8, kind: output, shape index: {0}]   ;;  %s6396_s9 = inlined_call_operand.vmem [shape: f32[128,128], index: 9, kind: output, shape index: {1}]   ;;  %s6397_s10 = inlined_call_operand.vmem [shape: f32[128,1024], index: 10, kind: output, shape index: {2}]  }
   0x1   :  { %s37_s15 = sshll.u32 %s6394_s7, 4  ;;  %s38_s15 = int_to_ptr.vmem [resolvable:$true] %s37_s15 }
   0x2   :  { %s4018_s16 = scalar_lea.vmem %s38_s15, 16  ;;  %p4023_p1 = scmp.lt.s32.totalorder %s38_s15, %s38_s15 }
   0x3   :  { %p4019_p0 = scmp.ne.s32.totalorder %s38_s15, %s4018_s16  ;;  %p4024_p2 = scmp.lt.s32.totalorder %s4018_s16, %s4018_s16 }
   0x5   :  { %p4025_p3 = por %p4024_p2, %p4023_p1 }
   0x7   :  { %p4026_p4 = pnand %p4025_p3, %p4019_p0 }
   0x9   :  { %4029 = shalt.err (!%p4026_p4)
}
   0xa   :  { %s4032_s17 = smov [#allocation2]  }
   0xb   :  { %40 = dma.vmem_to_smem %s38_s15, 16, %s4032_s17, [#allocation3]  }
   0xc   :  { %4030 = dma.done.wait [#allocation3], 16  }
   0xd   :  { %4031 = vsyncadd [#allocation3], 4294967280 }
   0xe   :  { %44 = sfence }
   0xf   :  { %v3415_v0 = vld [vmem:[%s6390_s3 + $0x4] ss:$8 sps:$4 sm:$0xff]   ;;  %v3417_v1 = vld [vmem:[%s6390_s3] ss:$8 sps:$4 sm:$0xff]   ;;  %v4033_v2 = vmov 0   ;;  %v4034_v3 = vmov 0.0  }
  0x10   :  { %439 = vmatprep.mubr.bf16.mxu0 %v4033_v2  ;;  %288 = vst [vmem:[%s6395_s8 + $0x8] sm:$0xff] %v4034_v3  ;;  %289 = vst [vmem:[%s6395_s8 + $0x10] sm:$0xff] %v4034_v3  ;;  %479 = vmatprep.mubr.bf16.mxu1 %v4033_v2  ;;  %v3418_v4 = vld [vmem:[%s6390_s3 + $0x14] ss:$8 sps:$4 sm:$0xff]   ;;  %v3420_v5 = vld [vmem:[%s6390_s3 + $0x10] ss:$8 sps:$4 sm:$0xff]  }
  0x11   :  { %290 = vst [vmem:[%s6395_s8 + $0x18] sm:$0xff] %v4034_v3  ;;  %291 = vst [vmem:[%s6395_s8 + $0x20] sm:$0xff] %v4034_v3  ;;  %407 = vmatprep.subr.bf16.mxu0 %v3415_v0  ;;  %3392 = vmatprep.subr.bf16.mxu1 %v3415_v0  ;;  %v3421_v6 = vld [vmem:[%s6390_s3 + $0x24] ss:$8 sps:$4 sm:$0xff]   ;;  %v3423_v7 = vld [vmem:[%s6390_s3 + $0x20] ss:$8 sps:$4 sm:$0xff]  }
  0x12   :  { %292 = vst [vmem:[%s6395_s8 + $0x28] sm:$0xff] %v4034_v3  ;;  %293 = vst [vmem:[%s6395_s8 + $0x30] sm:$0xff] %v4034_v3  ;;  %408 = vmatpush1.bf16.msra.mxu0 %v3417_v1  ;;  %3400 = vmatpush1.bf16.msra.mxu1 %v3417_v1  ;;  %v3424_v8 = vld [vmem:[%s6390_s3 + $0x34] ss:$8 sps:$4 sm:$0xff]   ;;  %v46_v9 = vld [vmem:[%s6387_s0] sm:$0xff]  ;;  %v4035_v39 = vmov 0.0|0.0  }
  0x13   :  { %294 = vst [vmem:[%s6395_s8 + $0x38] sm:$0xff] %v4034_v3  ;;  %295 = vst [vmem:[%s6395_s8 + $0x40] sm:$0xff] %v4034_v3  ;;  %409 = vmatprep.subr.bf16.mxu0 %v3418_v4  ;;  %3393 = vmatprep.subr.bf16.mxu1 %v3418_v4  ;;  %v3426_v10 = vld [vmem:[%s6390_s3 + $0x30] ss:$8 sps:$4 sm:$0xff]   ;;  %v3179_v11 = vld [vmem:[%s6389_s2] ss:$0 sm:$0xff] }
  0x14   :  { %296 = vst [vmem:[%s6395_s8 + $0x48] sm:$0xff] %v4034_v3  ;;  %297 = vst [vmem:[%s6395_s8 + $0x50] sm:$0xff] %v4034_v3  ;;  %3413 = vset.pattern.permute.xlu0 %v4033_v2  ;;  %3414 = vset.pattern.permute.xlu1 %v4033_v2  ;;  %v3178_v12 = vld [vmem:[%s6388_s1] ss:$0 sm:$0xff]  ;;  %v3427_v13 = vld [vmem:[%s6390_s3 + $0x44] ss:$8 sps:$4 sm:$0xff]   ;;  %v223_v14 = vsub.f32 %v46_v9, %v3179_v11 }
  0x15   :  { %298 = vst [vmem:[%s6395_s8 + $0x58] sm:$0xff] %v4034_v3  ;;  %299 = vst [vmem:[%s6395_s8 + $0x60] sm:$0xff] %v4034_v3  ;;  %v121_v15 = vmul.f32 %v3178_v12, %v46_v9  ;;  %v3429_v16 = vld [vmem:[%s6390_s3 + $0x40] ss:$8 sps:$4 sm:$0xff]   ;;  %v3430_v17 = vld [vmem:[%s6390_s3 + $0x54] ss:$8 sps:$4 sm:$0xff]  }
  0x16   :  { %300 = vst [vmem:[%s6395_s8 + $0x68] sm:$0xff] %v4034_v3  ;;  %301 = vst [vmem:[%s6395_s8 + $0x70] sm:$0xff] %v4034_v3  ;;  %410 = vmatpush1.bf16.msra.mxu0 %v3420_v5  ;;  %3401 = vmatpush1.bf16.msra.mxu1 %v3420_v5  ;;  %v3432_v18 = vld [vmem:[%s6390_s3 + $0x50] ss:$8 sps:$4 sm:$0xff]   ;;  %v3433_v19 = vld [vmem:[%s6390_s3 + $0x64] ss:$8 sps:$4 sm:$0xff]   ;;  %v303_v30 = vpack.c.bf16 %v4034_v3, %v223_v14 }
  0x17   :  { %302 = vst [vmem:[%s6395_s8 + $0x78] sm:$0xff] %v4034_v3  ;;  %411 = vmatprep.subr.bf16.mxu0 %v3421_v6  ;;  %3394 = vmatprep.subr.bf16.mxu1 %v3421_v6  ;;  %287 = vst [vmem:[%s6395_s8] sm:$0xff] %v223_v14  ;;  %v3435_v20 = vld [vmem:[%s6390_s3 + $0x60] ss:$8 sps:$4 sm:$0xff]   ;;  %v3436_v21 = vld [vmem:[%s6390_s3 + $0x74] ss:$8 sps:$4 sm:$0xff]   ;;  %s3389_s15 = sld [smem:[#allocation2 + $0x1]] }
  0x18   :  { %137 = vadd.xlane.f32.xlu0 %v121_v15  ;;  %v599_v22 = vld [vmem:[%s6392_s5] sm:$0xff]  ;;  %v600_v24 = vld [vmem:[%s6392_s5 + $0x8] sm:$0xff]  ;;  %v3438_v26 = vld [vmem:[%s6390_s3 + $0x70] ss:$8 sps:$4 sm:$0xff]   ;;  %s3391_s16 = sld [smem:[#allocation2 + $0x3]]  ;;  %s4036_s1 = smov 127  }
  0x19   :  { %v603_v23 = vld [vmem:[%s6392_s5 + $0x20] sm:$0xff]  ;;  %v604_v25 = vld [vmem:[%s6392_s5 + $0x28] sm:$0xff]  ;;  %s3390_s22 = sld [smem:[#allocation2 + $0x2]] }
  0x1a   :  { %412 = vmatpush1.bf16.msra.mxu0 %v3423_v7  ;;  %3402 = vmatpush1.bf16.msra.mxu1 %v3423_v7  ;;  %v3198_v27 = vcombine.high %v599_v22, %v603_v23  ;;  %v3200_v28 = vcombine.high %v600_v24, %v604_v25  ;;  %v607_v29 = vld [vmem:[%s6392_s5 + $0x40] sm:$0xff]  ;;  %v608_v32 = vld [vmem:[%s6392_s5 + $0x48] sm:$0xff]  ;;  %v3197_v34 = vcombine.low %v599_v22, %v603_v23 }
  0x1b   :  { %413 = vmatprep.subr.bf16.mxu0 %v3424_v8  ;;  %3395 = vmatprep.subr.bf16.mxu1 %v3424_v8  ;;  %v611_v31 = vld [vmem:[%s6392_s5 + $0x60] sm:$0xff]  ;;  %v612_v33 = vld [vmem:[%s6392_s5 + $0x68] sm:$0xff]  ;;  %v3199_v35 = vcombine.low %v600_v24, %v604_v25 }
  0x1c   :  { %v3206_v36 = vcombine.high %v607_v29, %v611_v31  ;;  %v3208_v37 = vcombine.high %v608_v32, %v612_v33  ;;  %v615_v38 = vld [vmem:[%s6392_s5 + $0x80] sm:$0xff]  ;;  %v616_v41 = vld [vmem:[%s6392_s5 + $0x88] sm:$0xff]  ;;  %v3205_v43 = vcombine.low %v607_v29, %v611_v31  ;;  %v3207_v44 = vcombine.low %v608_v32, %v612_v33  ;;  %v4353_v31 = vld [vmem:[%s6392_s5 + $0x38] sm:$0xff] }
  0x1d   :  { %v619_v40 = vld [vmem:[%s6392_s5 + $0xa0] sm:$0xff]  ;;  %v620_v42 = vld [vmem:[%s6392_s5 + $0xa8] sm:$0xff] }
  0x1e   :  { %414 = vmatpush1.bf16.msra.mxu0 %v3426_v10  ;;  %3403 = vmatpush1.bf16.msra.mxu1 %v3426_v10  ;;  %v3214_v45 = vcombine.high %v615_v38, %v619_v40  ;;  %v3216_v46 = vcombine.high %v616_v41, %v620_v42  ;;  %v623_v47 = vld [vmem:[%s6392_s5 + $0xc0] sm:$0xff]  ;;  %v624_v49 = vld [vmem:[%s6392_s5 + $0xc8] sm:$0xff]  ;;  %v3213_v51 = vcombine.low %v615_v38, %v619_v40  ;;  %v4379_v38 = vld [vmem:[%s6392_s5 + $0x78] sm:$0xff] }
  0x1f   :  { %415 = vmatprep.subr.bf16.mxu0 %v3427_v13  ;;  %3396 = vmatprep.subr.bf16.mxu1 %v3427_v13  ;;  %v627_v48 = vld [vmem:[%s6392_s5 + $0xe0] sm:$0xff]  ;;  %v628_v50 = vld [vmem:[%s6392_s5 + $0xe8] sm:$0xff]  ;;  %v3215_v52 = vcombine.low %v616_v41, %v620_v42  ;;  %v4389_v40 = vld [vmem:[%s6392_s5 + $0x90] sm:$0xff] }
  0x20   :  { %v3222_v53 = vcombine.high %v623_v47, %v627_v48  ;;  %v3224_v54 = vcombine.high %v624_v49, %v628_v50  ;;  %v631_v55 = vld [vmem:[%s6392_s5 + $0x100] sm:$0xff]  ;;  %v632_v57 = vld [vmem:[%s6392_s5 + $0x108] sm:$0xff]  ;;  %v3221_v59 = vcombine.low %v623_v47, %v627_v48  ;;  %v3223_v60 = vcombine.low %v624_v49, %v628_v50  ;;  %v4394_v41 = vld [vmem:[%s6392_s5 + $0xb0] sm:$0xff] }
  0x21   :  { %v635_v56 = vld [vmem:[%s6392_s5 + $0x120] sm:$0xff]  ;;  %v636_v58 = vld [vmem:[%s6392_s5 + $0x128] sm:$0xff] }
  0x22   :  { %416 = vmatpush1.bf16.msra.mxu0 %v3429_v16  ;;  %3404 = vmatpush1.bf16.msra.mxu1 %v3429_v16  ;;  %v3230_v61 = vcombine.high %v631_v55, %v635_v56  ;;  %v3232_v62 = vcombine.high %v632_v57, %v636_v58  ;;  %v639_v63 = vld [vmem:[%s6392_s5 + $0x140] sm:$0xff]  ;;  %v640_v1 = vld [vmem:[%s6392_s5 + $0x148] sm:$0xff]  ;;  %v3229_v4 = vcombine.low %v631_v55, %v635_v56 }
  0x23   :  { %417 = vmatprep.subr.bf16.mxu0 %v3430_v17  ;;  %3397 = vmatprep.subr.bf16.mxu1 %v3430_v17  ;;  %v643_v0 = vld [vmem:[%s6392_s5 + $0x160] sm:$0xff]  ;;  %v644_v3 = vld [vmem:[%s6392_s5 + $0x168] sm:$0xff]  ;;  %v3231_v5 = vcombine.low %v632_v57, %v636_v58  ;;  %v3217_v57 = vcombine.low %v4389_v40, %v4394_v41  ;;  %v4425_v58 = vld [vmem:[%s6392_s5 + $0x98] sm:$0xff] }
  0x24   :  { %v3238_v6 = vcombine.high %v639_v63, %v643_v0  ;;  %v3240_v7 = vcombine.high %v640_v1, %v644_v3  ;;  %v3237_v8 = vcombine.low %v639_v63, %v643_v0  ;;  %v3239_v9 = vcombine.low %v640_v1, %v644_v3  ;;  %v647_v10 = vld [vmem:[%s6392_s5 + $0x180] sm:$0xff]  ;;  %v648_v12 = vld [vmem:[%s6392_s5 + $0x188] sm:$0xff] }
  0x25   :  { %v651_v11 = vld [vmem:[%s6392_s5 + $0x1a0] sm:$0xff]  ;;  %v652_v14 = vld [vmem:[%s6392_s5 + $0x1a8] sm:$0xff]  ;;  %v3218_v1 = vcombine.high %v4389_v40, %v4394_v41  ;;  %v4604_v40 = vld [vmem:[%s6392_s5 + $0x150] sm:$0xff] }
  0x26   :  { %418 = vmatpush1.bf16.msra.mxu0 %v3432_v18  ;;  %3405 = vmatpush1.bf16.msra.mxu1 %v3432_v18  ;;  %v3246_v13 = vcombine.high %v647_v10, %v651_v11  ;;  %v3245_v15 = vcombine.low %v647_v10, %v651_v11  ;;  %v3247_v16 = vcombine.low %v648_v12, %v652_v14  ;;  %v655_v18 = vld [vmem:[%s6392_s5 + $0x1c0] sm:$0xff]  ;;  %v660_v22 = vld [vmem:[%s6392_s5 + $0x1e8] sm:$0xff]  ;;  %v4609_v41 = vld [vmem:[%s6392_s5 + $0x170] sm:$0xff] }
  0x27   :  { %419 = vmatprep.subr.bf16.mxu0 %v3433_v19  ;;  %3398 = vmatprep.subr.bf16.mxu1 %v3433_v19  ;;  %v3248_v17 = vcombine.high %v648_v12, %v652_v14  ;;  %v659_v19 = vld [vmem:[%s6392_s5 + $0x1e0] sm:$0xff]  ;;  %v4448_v12 = vld [vmem:[%s6392_s5 + $0xd0] sm:$0xff] }
  0x28   :  { %v3253_v23 = vcombine.low %v655_v18, %v659_v19 }
  0x2a   :  { %420 = vmatpush1.bf16.msra.mxu0 %v3435_v20  ;;  %3406 = vmatpush1.bf16.msra.mxu1 %v3435_v20  ;;  %v656_v20 = vld [vmem:[%s6392_s5 + $0x1c8] sm:$0xff] }
  0x2b   :  { %421 = vmatprep.subr.bf16.mxu0 %v3436_v21  ;;  %3399 = vmatprep.subr.bf16.mxu1 %v3436_v21  ;;  %v3254_v21 = vcombine.high %v655_v18, %v659_v19  ;;  %v3255_v24 = vcombine.low %v656_v20, %v660_v22  ;;  %v3256_v25 = vcombine.high %v656_v20, %v660_v22 }
  0x2e   :  { %422 = vmatpush1.bf16.msra.mxu0 %v3438_v26  ;;  %3407 = vmatpush1.bf16.msra.mxu1 %v3438_v26  ;;  %v4334_v26 = vld [vmem:[%s6392_s5 + $0x10] sm:$0xff] }
  0x2f   :  { %1025 = vmatprep.subr.bf16.mxu1 %v3198_v27  ;;  %1138 = vmatprep.subr.bf16.mxu0 %v3200_v28  ;;  %v4339_v27 = vld [vmem:[%s6392_s5 + $0x30] sm:$0xff]  ;;  %v4344_v28 = vld [vmem:[%s6392_s5 + $0x18] sm:$0xff] }
  0x30   :  { %v3201_v29 = vcombine.low %v4334_v26, %v4339_v27  ;;  %v3203_v32 = vcombine.low %v4344_v28, %v4353_v31  ;;  %v3204_v33 = vcombine.high %v4344_v28, %v4353_v31 }
  0x31   :  { %440 = vmatmul.mubr.bf16.vlgmr.msra.gmra.mrb[0].mxu0 %v303_v30  ;;  %480 = vmatmul.mubr.bf16.vlgmr.msra.gmra.mrb[0].mxu1 %v4035_v39  ;;  %v3202_v30 = vcombine.high %v4334_v26, %v4339_v27 }
  0x32   :  { %449 = vmatprep.mubr.bf16.mxu0 %v4033_v2  ;;  %489 = vmatprep.mubr.bf16.mxu1 %v4033_v2 }
  0x33   :  { %1026 = vmatpush1.bf16.msra.mxu1 %v3197_v34  ;;  %1139 = vmatpush1.bf16.msra.mxu0 %v3199_v35  ;;  %v4362_v34 = vld [vmem:[%s6392_s5 + $0x50] sm:$0xff] }
  0x34   :  { %1027 = vmatprep.subr.bf16.mxu1 %v3206_v36  ;;  %1140 = vmatprep.subr.bf16.mxu0 %v3208_v37  ;;  %v4367_v35 = vld [vmem:[%s6392_s5 + $0x70] sm:$0xff]  ;;  %v4369_v36 = vstv %s3389_s15  ;;  %v4374_v37 = vld [vmem:[%s6392_s5 + $0x58] sm:$0xff] }
  0x35   :  { %v3210_v50 = vcombine.high %v4362_v34, %v4367_v35  ;;  %v3212_v56 = vcombine.high %v4374_v37, %v4379_v38 }
  0x37   :  { %1028 = vmatpush1.bf16.msra.mxu1 %v3205_v43  ;;  %1141 = vmatpush1.bf16.msra.mxu0 %v3207_v44  ;;  %v4400_v44 = vstv %s3391_s16 }
  0x38   :  { %1029 = vmatprep.subr.bf16.mxu1 %v3214_v45  ;;  %1142 = vmatprep.subr.bf16.mxu0 %v3216_v46  ;;  %v3209_v45 = vcombine.low %v4362_v34, %v4367_v35 }
  0x39   :  { %450 = vmatmul.mubr.bf16.gmra.mrb[4].mxu0 %v4035_v39  ;;  %490 = vmatmul.mubr.bf16.gmra.mrb[4].mxu1 %v4035_v39 }
  0x3a   :  { %459 = vmatprep.mubr.bf16.mxu0 %v4033_v2  ;;  %499 = vmatprep.mubr.bf16.mxu1 %v4033_v2 }
  0x3b   :  { %1030 = vmatpush1.bf16.msra.mxu1 %v3213_v51  ;;  %1143 = vmatpush1.bf16.msra.mxu0 %v3215_v52  ;;  %v3211_v51 = vcombine.low %v4374_v37, %v4379_v38  ;;  %v4563_v38 = vld [vmem:[%s6392_s5 + $0x118] sm:$0xff] }
  0x3c   :  { %1031 = vmatprep.subr.bf16.mxu1 %v3222_v53  ;;  %1144 = vmatprep.subr.bf16.mxu0 %v3224_v54 }
  0x3f   :  { %1032 = vmatpush1.bf16.msra.mxu1 %v3221_v59  ;;  %1145 = vmatpush1.bf16.msra.mxu0 %v3223_v60  ;;  %v4430_v59 = vld [vmem:[%s6392_s5 + $0xb8] sm:$0xff] }
  0x40   :  { %1033 = vmatprep.subr.bf16.mxu1 %v3230_v61  ;;  %1146 = vmatprep.subr.bf16.mxu0 %v3232_v62 }
  0x41   :  { %460 = vmatmul.mubr.bf16.gmra.mrb[8].mxu0 %v4035_v39  ;;  %500 = vmatmul.mubr.bf16.gmra.mrb[8].mxu1 %v4035_v39 }
  0x42   :  { %469 = vmatprep.mubr.bf16.mxu0 %v4033_v2  ;;  %509 = vmatprep.mubr.bf16.mxu1 %v4033_v2 }
  0x43   :  { %1034 = vmatpush1.bf16.msra.mxu1 %v3229_v4  ;;  %1147 = vmatpush1.bf16.msra.mxu0 %v3231_v5 }
  0x44   :  { %1035 = vmatprep.subr.bf16.mxu1 %v3238_v6  ;;  %1148 = vmatprep.subr.bf16.mxu0 %v3240_v7 }
  0x47   :  { %1036 = vmatpush1.bf16.msra.mxu1 %v3237_v8  ;;  %1149 = vmatpush1.bf16.msra.mxu0 %v3239_v9  ;;  %v3219_v8 = vcombine.low %v4425_v58, %v4430_v59 }
  0x48   :  { %1037 = vmatprep.subr.bf16.mxu1 %v3246_v13  ;;  %1150 = vmatprep.subr.bf16.mxu0 %v3248_v17  ;;  %v4453_v13 = vld [vmem:[%s6392_s5 + $0xf0] sm:$0xff] }
  0x49   :  { %470 = vmatmul.mubr.bf16.gmra.mrb[12].mxu0 %v4035_v39  ;;  %510 = vmatmul.mubr.bf16.gmra.mrb[12].mxu1 %v4035_v39  ;;  %v4384_v39 = vld [vmem:[%s6391_s4] ss:$0 sm:$0xff] }
  0x4a   :  { %1057 = vmatprep.mubr.bf16.mxu1 %v4033_v2  ;;  %1170 = vmatprep.mubr.bf16.mxu0 %v4033_v2 }
  0x4b   :  { %1038 = vmatpush1.bf16.msra.mxu1 %v3245_v15  ;;  %1151 = vmatpush1.bf16.msra.mxu0 %v3247_v16 }
  0x4c   :  { %1039 = vmatprep.subr.bf16.mxu1 %v3254_v21  ;;  %1152 = vmatprep.subr.bf16.mxu0 %v3256_v25 }
  0x4f   :  { %1040 = vmatpush1.bf16.msra.mxu1 %v3253_v23  ;;  %1153 = vmatpush1.bf16.msra.mxu0 %v3255_v24 }
  0x50   :  { %1251 = vmatprep.subr.bf16.mxu1 %v3202_v30  ;;  %1364 = vmatprep.subr.bf16.mxu0 %v3204_v33  ;;  %v3220_v30 = vcombine.high %v4425_v58, %v4430_v59  ;;  %v3225_v33 = vcombine.low %v4448_v12, %v4453_v13 }
 0x104   :  { %v4396_v42 = vpop.f32.mrb[0].mxu0  ;;  %v4398_v43 = vpop.f32.mrb[0].mxu1 }
 0x105   :  { %v443_v46 = vpop.f32.mrb[1].mxu0  ;;  %v483_v47 = vpop.f32.mrb[1].mxu1  ;;  %v2411_v48 = vsub.f32 %v4396_v42, %v4369_v36  ;;  %v2419_v49 = vsub.f32 %v4398_v43, %v4369_v36  ;;  %v2669_v10 = vsub.f32 %v4396_v42, %v4400_v44  ;;  %v2677_v17 = vsub.f32 %v4398_v43, %v4400_v44 }
 0x106   :  { %v527_v52 = vadd.f32 %v4384_v39, %v443_v46  ;;  %v4413_v53 = vpop.f32.mrb[2].mxu0  ;;  %v535_v54 = vadd.f32 %v4384_v39, %v483_v47  ;;  %v4416_v55 = vpop.f32.mrb[2].mxu1  ;;  %v3226_v46 = vcombine.high %v4448_v12, %v4453_v13  ;;  %v4646_v12 = vld [vmem:[%s6392_s5 + $0x178] sm:$0xff] }
 0x107   :  { %v447_v60 = vpop.f32.mrb[3].mxu0  ;;  %v2427_v61 = vmul.f32 %v2411_v48, %v2411_v48  ;;  %v2412_v62 = vsub.f32 %v4413_v53, %v4369_v36  ;;  %v2420_v63 = vsub.f32 %v4416_v55, %v4369_v36  ;;  %v487_v0 = vpop.f32.mrb[3].mxu1  ;;  %v2435_v7 = vmul.f32 %v2419_v49, %v2419_v49 }
 0x108   :  { %vm543_vm0 = vcmp.ge.f32.partialorder %v527_v52, 0.0  ;;  %v559_v3 = vmul.f32 0.2, %v527_v52  ;;  %v528_v4 = vadd.f32 %v4384_v39, %v447_v60  ;;  %vm551_vm1 = vcmp.ge.f32.partialorder %v535_v54, 0.0 }
 0x109   :  { %v567_v5 = vmul.f32 0.2, %v535_v54  ;;  %2459 = vrot.lane.b32.xlu0 %v2427_v61, %s4036_s1  ;;  %v2428_v6 = vmul.f32 %v2412_v62, %v2412_v62  ;;  %v536_v11 = vadd.f32 %v4384_v39, %v487_v0  ;;  %v2436_v16 = vmul.f32 %v2420_v63, %v2420_v63 }
 0x10a   :  { %vm544_vm2 = vcmp.ge.f32.partialorder %v528_v4, 0.0  ;;  %v560_v9 = vmul.f32 0.2, %v528_v4  ;;  %v575_v14 = vsel %vm543_vm0, %v527_v52, %v559_v3  ;;  %v2670_v21 = vsub.f32 %v4413_v53, %v4400_v44 }
 0x10b   :  { %v583_v15 = vsel %vm551_vm1, %v535_v54, %v567_v5  ;;  %2461 = vrot.lane.b32.xlu1 %v2428_v6, %s4036_s1  ;;  %vm552_vm3 = vcmp.ge.f32.partialorder %v536_v11, 0.0  ;;  %v568_v20 = vmul.f32 0.2, %v536_v11  ;;  %v2685_v49 = vmul.f32 %v2669_v10, %v2669_v10  ;;  %v4494_v5 = vld [vmem:[%s6392_s5 + $0xf8] sm:$0xff] }
 0x10c   :  { %v576_v18 = vsel %vm544_vm2, %v528_v4, %v560_v9  ;;  %v4459_v19 = vpop.f32.mrb[4].mxu0  ;;  %v4463_v22 = vpop.f32.mrb[4].mxu1  ;;  %v2693_v63 = vmul.f32 %v2677_v17, %v2677_v17  ;;  %v2678_v0 = vsub.f32 %v4416_v55, %v4400_v44  ;;  %v4489_v4 = vld [vmem:[%s6392_s5 + $0xd8] sm:$0xff]  ;;  %v2686_v9 = vmul.f32 %v2670_v21, %v2670_v21  ;;  %v4539_v21 = vld [vmem:[%s6392_s5 + $0x130] sm:$0xff] }
 0x10d   :  { %v4465_v23 = vpack.c.bf16 %v576_v18, %v575_v14  ;;  %v453_v24 = vpop.f32.mrb[5].mxu0  ;;  %2475 = vrot.lane.b32.xlu0 %v2435_v7, %s4036_s1  ;;  %v493_v25 = vpop.f32.mrb[5].mxu1  ;;  %v584_v52 = vsel %vm552_vm3, %v536_v11, %v568_v20  ;;  %v2421_v10 = vsub.f32 %v4463_v22, %v4369_v36  ;;  %v3227_v26 = vcombine.low %v4489_v4, %v4494_v5  ;;  %v4534_v20 = vld [vmem:[%s6392_s5 + $0x110] sm:$0xff] }
 0x10e   :  { %v529_v47 = vadd.f32 %v4384_v39, %v453_v24  ;;  %v4475_v48 = vpop.f32.mrb[6].mxu0  ;;  %v537_v54 = vadd.f32 %v4384_v39, %v493_v25  ;;  %v4478_v60 = vpop.f32.mrb[6].mxu1  ;;  %v4482_v62 = vpack.c.bf16 %v584_v52, %v583_v15  ;;  %v3228_v27 = vcombine.high %v4489_v4, %v4494_v5 }
 0x10f   :  { %2477 = vrot.lane.b32.xlu1 %v2436_v16, %s4036_s1  ;;  %v457_v61 = vpop.f32.mrb[7].mxu0  ;;  %1058 = vmatmul.mubr.bf16.vlgmr.msra.gmra.mrb[16].mxu1 %v4465_v23  ;;  %v497_v3 = vpop.f32.mrb[7].mxu1  ;;  %v2694_v28 = vmul.f32 %v2678_v0, %v2678_v0  ;;  %v2437_v34 = vmul.f32 %v2421_v10, %v2421_v10 }
 0x110   :  { %v561_v6 = vmul.f32 0.2, %v529_v47  ;;  %v530_v7 = vadd.f32 %v4384_v39, %v457_v61  ;;  %1171 = vmatmul.mubr.bf16.vlgmr.msra.gmra.mrb[16].mxu0 %v4465_v23  ;;  %1252 = vmatpush1.bf16.msra.mxu1 %v3201_v29  ;;  %vm545_vm4 = vcmp.ge.f32.partialorder %v529_v47, 0.0  ;;  %vm553_vm5 = vcmp.ge.f32.partialorder %v537_v54, 0.0 }
 0x111   :  { %1365 = vmatpush1.bf16.msra.mxu0 %v3203_v32  ;;  %2717 = vrot.lane.b32.xlu0 %v2685_v49, %s4036_s1  ;;  %v569_v11 = vmul.f32 0.2, %v537_v54  ;;  %v538_v14 = vadd.f32 %v4384_v39, %v497_v3  ;;  %v2671_v49 = vsub.f32 %v4459_v19, %v4400_v44 }
 0x112   :  { %vm546_vm6 = vcmp.ge.f32.partialorder %v530_v7, 0.0  ;;  %v562_v15 = vmul.f32 0.2, %v530_v7  ;;  %1067 = vmatprep.mubr.bf16.mxu1 %v4033_v2  ;;  %1180 = vmatprep.mubr.bf16.mxu0 %v4033_v2  ;;  %v577_v32 = vsel %vm545_vm4, %v529_v47, %v561_v6  ;;  %v2679_v6 = vsub.f32 %v4463_v22, %v4400_v44 }
 0x113   :  { %2719 = vrot.lane.b32.xlu1 %v2686_v9, %s4036_s1  ;;  %1253 = vmatprep.subr.bf16.mxu1 %v3210_v50  ;;  %v585_v29 = vsel %vm553_vm5, %v537_v54, %v569_v11  ;;  %vm554_vm7 = vcmp.ge.f32.partialorder %v538_v14, 0.0  ;;  %v570_v31 = vmul.f32 0.2, %v538_v14  ;;  %v2413_v50 = vsub.f32 %v4459_v19, %v4369_v36 }
 0x114   :  { %v578_v16 = vsel %vm546_vm6, %v530_v7, %v562_v15  ;;  %v4519_v17 = vpop.f32.mrb[8].mxu0  ;;  %1366 = vmatprep.subr.bf16.mxu0 %v3212_v56  ;;  %1254 = vmatpush1.bf16.msra.mxu1 %v3209_v45  ;;  %v4529_v18 = vpop.f32.mrb[8].mxu1  ;;  %v3234_v7 = vcombine.high %v4534_v20, %v4539_v21  ;;  %v2687_v15 = vmul.f32 %v2671_v49, %v2671_v49 }
 0x115   :  { %6414 = vst [vmem:[#allocation5_spill] sm:$0xff] %v4529_v18  ;;  %v4541_v56 = vpack.c.bf16 %v578_v16, %v577_v32  ;;  %v463_v24 = vpop.f32.mrb[9].mxu0  ;;  %2733 = vrot.lane.b32.xlu0 %v2693_v63, %s4036_s1  ;;  %1367 = vmatpush1.bf16.msra.mxu0 %v3211_v51  ;;  %v586_v35 = vsel %vm554_vm7, %v538_v14, %v570_v31  ;;  %v503_v45 = vpop.f32.mrb[9].mxu1  ;;  %v4568_v51 = vld [vmem:[%s6392_s5 + $0x138] sm:$0xff] }
 0x116   :  { %v531_v25 = vadd.f32 %v4384_v39, %v463_v24  ;;  %v4549_v47 = vpop.f32.mrb[10].mxu0  ;;  %1255 = vmatprep.subr.bf16.mxu1 %v3218_v1  ;;  %1368 = vmatprep.subr.bf16.mxu0 %v3220_v30  ;;  %v4556_v52 = vpack.c.bf16 %v586_v35, %v585_v29  ;;  %v4558_v37 = vpop.f32.mrb[10].mxu1  ;;  %v2414_v1 = vsub.f32 %v4475_v48, %v4369_v36 }
 0x117   :  { %6415 = vst [vmem:[#allocation6_spill] sm:$0xff] %v4549_v47  ;;  %6416 = vst [vmem:[#allocation7_spill] sm:$0xff] %v4558_v37  ;;  %2735 = vrot.lane.b32.xlu1 %v2694_v28, %s4036_s1  ;;  %v467_v54 = vpop.f32.mrb[11].mxu0  ;;  %1068 = vmatmul.mubr.bf16.gmra.mrb[20].mxu1 %v4541_v56  ;;  %v539_v30 = vadd.f32 %v4384_v39, %v503_v45  ;;  %v507_v61 = vpop.f32.mrb[11].mxu1  ;;  %v3233_v63 = vcombine.low %v4534_v20, %v4539_v21  ;;  %v650_v20 = vld [vmem:[%s6392_s5 + $0x198] sm:$0xff] }
 0x118   :  { %v563_v0 = vmul.f32 0.2, %v531_v25  ;;  %v532_v3 = vadd.f32 %v4384_v39, %v467_v54  ;;  %1181 = vmatmul.mubr.bf16.gmra.mrb[20].mxu0 %v4541_v56  ;;  %1077 = vmatprep.mubr.bf16.mxu1 %v4033_v2  ;;  %vm547_vm8 = vcmp.ge.f32.partialorder %v531_v25, 0.0  ;;  %v2429_v9 = vmul.f32 %v2413_v50, %v2413_v50  ;;  %v4641_v54 = vld [vmem:[%s6392_s5 + $0x158] sm:$0xff] }
 0x119   :  { %2479 = vrot.lane.b32.xlu0 %v2437_v34, %s4036_s1  ;;  %1190 = vmatprep.mubr.bf16.mxu0 %v4033_v2  ;;  %v571_v10 = vmul.f32 0.2, %v539_v30  ;;  %v3235_v11 = vcombine.low %v4563_v38, %v4568_v51  ;;  %vm555_vm10 = vcmp.ge.f32.partialorder %v539_v30, 0.0  ;;  %v2430_v28 = vmul.f32 %v2414_v1, %v2414_v1  ;;  %v654_v21 = vld [vmem:[%s6392_s5 + $0x1b8] sm:$0xff] }
 0x11a   :  { %vm548_vm9 = vcmp.ge.f32.partialorder %v532_v3, 0.0  ;;  %v564_v14 = vmul.f32 0.2, %v532_v3  ;;  %1256 = vmatpush1.bf16.msra.mxu1 %v3217_v57  ;;  %1369 = vmatpush1.bf16.msra.mxu0 %v3219_v8  ;;  %v2422_v29 = vsub.f32 %v4478_v60, %v4369_v36  ;;  %v540_v31 = vadd.f32 %v4384_v39, %v507_v61 }
 0x11b   :  { %2463 = vrot.lane.b32.xlu1 %v2429_v9, %s4036_s1  ;;  %1257 = vmatprep.subr.bf16.mxu1 %v3226_v46  ;;  %v579_v57 = vsel %vm547_vm8, %v531_v25, %v563_v0  ;;  %v2695_v8 = vmul.f32 %v2679_v6, %v2679_v6  ;;  %v2423_v46 = vsub.f32 %v4529_v18, %v4369_v36 }
 0x11c   :  { %v580_v58 = vsel %vm548_vm9, %v532_v3, %v564_v14  ;;  %v4612_v59 = vpop.f32.mrb[12].mxu0  ;;  %1370 = vmatprep.subr.bf16.mxu0 %v3228_v27  ;;  %v4619_v32 = vpop.f32.mrb[12].mxu1  ;;  %v587_v24 = vsel %vm555_vm10, %v539_v30, %v571_v10  ;;  %vm556_vm11 = vcmp.ge.f32.partialorder %v540_v31, 0.0  ;;  %v572_v34 = vmul.f32 0.2, %v540_v31 }
 0x11d   :  { %6417 = vst [vmem:[#allocation8_spill] sm:$0xff] %v4612_v59  ;;  %6418 = vst [vmem:[#allocation9_spill] sm:$0xff] %v4619_v32  ;;  %v4621_v16 = vpack.c.bf16 %v580_v58, %v579_v57  ;;  %v473_v50 = vpop.f32.mrb[13].mxu0  ;;  %2721 = vrot.lane.b32.xlu0 %v2687_v15, %s4036_s1  ;;  %v513_v35 = vpop.f32.mrb[13].mxu1  ;;  %v3236_v27 = vcombine.high %v4563_v38, %v4568_v51  ;;  %v3241_v49 = vcombine.low %v4604_v40, %v4609_v41  ;;  %v653_v57 = vld [vmem:[%s6392_s5 + $0x1b0] sm:$0xff] }
 0x11e   :  { %v533_v45 = vadd.f32 %v4384_v39, %v473_v50  ;;  %v4626_v25 = vpop.f32.mrb[14].mxu0  ;;  %1258 = vmatpush1.bf16.msra.mxu1 %v3225_v33  ;;  %1371 = vmatpush1.bf16.msra.mxu0 %v3227_v26  ;;  %v4648_v13 = vpop.f32.mrb[14].mxu1  ;;  %v2438_v4 = vmul.f32 %v2422_v29, %v2422_v29  ;;  %v588_v5 = vsel %vm556_vm11, %v540_v31, %v572_v34 }
 0x11f   :  { %6419 = vst [vmem:[#allocation10_spill] sm:$0xff] %v4626_v25  ;;  %6420 = vst [vmem:[#allocation11_spill] sm:$0xff] %v4648_v13  ;;  %2465 = vrot.lane.b32.xlu1 %v2430_v28, %s4036_s1  ;;  %v477_v33 = vpop.f32.mrb[15].mxu0  ;;  %1078 = vmatmul.mubr.bf16.gmra.mrb[24].mxu1 %v4621_v16  ;;  %v3242_v26 = vcombine.high %v4604_v40, %v4609_v41  ;;  %v517_v1 = vpop.f32.mrb[15].mxu1  ;;  %v4658_v0 = vpack.c.bf16 %v588_v5, %v587_v24  ;;  %v658_v40 = vld [vmem:[%s6392_s5 + $0x1d8] sm:$0xff] }
 0x120   :  { %vm549_vm12 = vcmp.ge.f32.partialorder %v533_v45, 0.0  ;;  %v565_v30 = vmul.f32 0.2, %v533_v45  ;;  %v534_v61 = vadd.f32 %v4384_v39, %v477_v33  ;;  %1191 = vmatmul.mubr.bf16.gmra.mrb[24].mxu0 %v4621_v16  ;;  %1087 = vmatprep.mubr.bf16.mxu1 %v4033_v2  ;;  %v2439_v3 = vmul.f32 %v2423_v46, %v2423_v46  ;;  %v662_v41 = vld [vmem:[%s6392_s5 + $0x1f8] sm:$0xff] }
 0x121   :  { %2737 = vrot.lane.b32.xlu0 %v2695_v8, %s4036_s1  ;;  %1200 = vmatprep.mubr.bf16.mxu0 %v4033_v2  ;;  %v2672_v6 = vsub.f32 %v4475_v48, %v4400_v44  ;;  %v3244_v9 = vcombine.high %v4641_v54, %v4646_v12  ;;  %v3243_v14 = vcombine.low %v4641_v54, %v4646_v12 }
 0x122   :  { %vm550_vm13 = vcmp.ge.f32.partialorder %v534_v61, 0.0  ;;  %v566_v10 = vmul.f32 0.2, %v534_v61  ;;  %1259 = vmatprep.subr.bf16.mxu1 %v3234_v7  ;;  %1372 = vmatprep.subr.bf16.mxu0 %v3236_v27  ;;  %v541_v15 = vadd.f32 %v4384_v39, %v513_v35  ;;  %v581_v28 = vsel %vm549_vm12, %v533_v45, %v565_v30  ;;  %v649_v7 = vld [vmem:[%s6392_s5 + $0x190] sm:$0xff] }
 0x123   :  { %2481 = vrot.lane.b32.xlu1 %v2438_v4, %s4036_s1  ;;  %v2673_v29 = vsub.f32 %v4519_v17, %v4400_v44  ;;  %v2680_v31 = vsub.f32 %v4478_v60, %v4400_v44  ;;  %1260 = vmatpush1.bf16.msra.mxu1 %v3233_v63  ;;  %v542_v46 = vadd.f32 %v4384_v39, %v517_v1  ;;  %v657_v1 = vld [vmem:[%s6392_s5 + $0x1d0] sm:$0xff] }
 0x124   :  { %v582_v58 = vsel %vm550_vm13, %v534_v61, %v566_v10  ;;  %1373 = vmatpush1.bf16.msra.mxu0 %v3235_v11  ;;  %1261 = vmatprep.subr.bf16.mxu1 %v3242_v26  ;;  %vm557_vm14 = vcmp.ge.f32.partialorder %v541_v15, 0.0  ;;  %v573_v8 = vmul.f32 0.2, %v541_v15  ;;  %v2688_v50 = vmul.f32 %v2672_v6, %v2672_v6  ;;  %v661_v61 = vld [vmem:[%s6392_s5 + $0x1f0] sm:$0xff]  ;;  %s2373_s5 = sld [smem:[#allocation2]] }
 0x125   :  { %v4694_v63 = vpack.c.bf16 %v582_v58, %v581_v28  ;;  %2483 = vrot.lane.b32.xlu0 %v2439_v3, %s4036_s1  ;;  %v2681_v38 = vsub.f32 %v4529_v18, %v4400_v44  ;;  %1374 = vmatprep.subr.bf16.mxu0 %v3244_v9  ;;  %vm558_vm15 = vcmp.ge.f32.partialorder %v542_v46, 0.0  ;;  %v574_v39 = vmul.f32 0.2, %v542_v46 }
 0x126   :  { %v589_v51 = vsel %vm557_vm14, %v541_v15, %v573_v8  ;;  %v3250_v11 = vcombine.high %v649_v7, %v653_v57  ;;  %v2689_v24 = vmul.f32 %v2673_v29, %v2673_v29  ;;  %v2696_v34 = vmul.f32 %v2680_v31, %v2680_v31 }
 0x127   :  { %2723 = vrot.lane.b32.xlu1 %v2688_v50, %s4036_s1  ;;  %1088 = vmatmul.mubr.bf16.gmra.mrb[28].mxu1 %v4694_v63  ;;  %v3252_v35 = vcombine.high %v650_v20, %v654_v21  ;;  %v2415_v45 = vsub.f32 %v4519_v17, %v4369_v36  ;;  %v590_v27 = vsel %vm558_vm15, %v542_v46, %v574_v39  ;;  %v665_v8 = vlaneseq }
 0x128   :  { %1201 = vmatmul.mubr.bf16.gmra.mrb[28].mxu0 %v4694_v63  ;;  %1097 = vmatprep.mubr.bf16.mxu1 %v4033_v2  ;;  %v4707_v54 = vsub.f32 %v4648_v13, %v4369_v36  ;;  %v2697_v12 = vmul.f32 %v2681_v38, %v2681_v38  ;;  %v2425_v33 = vsub.f32 %v4619_v32, %v4369_v36 }
 0x129   :  { %2725 = vrot.lane.b32.xlu0 %v2689_v24, %s4036_s1  ;;  %1210 = vmatprep.mubr.bf16.mxu0 %v4033_v2  ;;  %v4713_v4 = vpack.c.bf16 %v590_v27, %v589_v51  ;;  %v3249_v5 = vcombine.low %v649_v7, %v653_v57  ;;  %v3251_v26 = vcombine.low %v650_v20, %v654_v21  ;;  %v4759_v21 = vand.u32 127, %v665_v8 }
 0x12a   :  { %1262 = vmatpush1.bf16.msra.mxu1 %v3241_v49  ;;  %1375 = vmatpush1.bf16.msra.mxu0 %v3243_v14  ;;  %v4723_v30 = vsub.f32 %v4648_v13, %v4400_v44  ;;  %v2431_v49 = vmul.f32 %v2415_v45, %v2415_v45  ;;  %v2441_v3 = vmul.f32 %v2425_v33, %v2425_v33  ;;  %v4765_v51 = vstv %s2373_s5 }
 0x12b   :  { %2739 = vrot.lane.b32.xlu1 %v2696_v34, %s4036_s1  ;;  %1263 = vmatprep.subr.bf16.mxu1 %v3250_v11  ;;  %v2416_v6 = vsub.f32 %v4549_v47, %v4369_v36  ;;  %v3258_v9 = vcombine.high %v657_v1, %v661_v61  ;;  %v3260_v10 = vcombine.high %v658_v40, %v662_v41  ;;  %v4772_v11 = vstv %s3390_s22 }
 0x12c   :  { %1376 = vmatprep.subr.bf16.mxu0 %v3252_v35  ;;  %v2675_v14 = vsub.f32 %v4612_v59, %v4400_v44  ;;  %v2424_v15 = vsub.f32 %v4558_v37, %v4369_v36  ;;  %v3257_v28 = vcombine.low %v657_v1, %v661_v61  ;;  %v3259_v29 = vcombine.low %v658_v40, %v662_v41 }
 0x12d   :  { %2741 = vrot.lane.b32.xlu0 %v2697_v12, %s4036_s1  ;;  %v2432_v31 = vmul.f32 %v2416_v6, %v2416_v6  ;;  %v2683_v7 = vsub.f32 %v4619_v32, %v4400_v44  ;;  %v2674_v20 = vsub.f32 %v4549_v47, %v4400_v44  ;;  %v2682_v38 = vsub.f32 %v4558_v37, %v4400_v44 }
 0x12e   :  { %1264 = vmatpush1.bf16.msra.mxu1 %v3249_v5  ;;  %1377 = vmatpush1.bf16.msra.mxu0 %v3251_v26  ;;  %v2691_v57 = vmul.f32 %v2675_v14, %v2675_v14  ;;  %v2440_v58 = vmul.f32 %v2424_v15, %v2424_v15  ;;  %v4769_v39 = vsub.f32 %v4648_v13, %v4765_v51  ;;  %vm2895_vm0 = vcmp.ge.s32.totalorder %v4759_v21, 16 }
 0x12f   :  { %2467 = vrot.lane.b32.xlu1 %v2431_v49, %s4036_s1  ;;  %1098 = vmatmul.mubr.bf16.gmra.mrb[32].mxu1 %v4482_v62  ;;  %v2699_v46 = vmul.f32 %v2683_v7, %v2683_v7  ;;  %v2690_v50 = vmul.f32 %v2674_v20, %v2674_v20  ;;  %v4776_v24 = vsub.f32 %v4648_v13, %v4772_v11  ;;  %vm2896_vm1 = vcmp.lt.s32.totalorder %v4759_v21, 32 }
 0x130   :  { %1211 = vmatmul.mubr.bf16.gmra.mrb[32].mxu0 %v4482_v62  ;;  %1107 = vmatprep.mubr.bf16.mxu1 %v4033_v2  ;;  %v2698_v34 = vmul.f32 %v2682_v38, %v2682_v38  ;;  %v2417_v35 = vsub.f32 %v4612_v59, %v4369_v36  ;;  %v4783_v45 = vmul.f32 0.0, %v4648_v13  ;;  %vm4789_vm2 = vmand %vm2895_vm0, %vm2896_vm1  ;;  %v2418_v33 = vsub.f32 %v4626_v25, %v4369_v36 }
 0x131   :  { %2487 = vrot.lane.b32.xlu0 %v2441_v3, %s4036_s1  ;;  %1220 = vmatprep.mubr.bf16.mxu0 %v4033_v2  ;;  %v2442_v1 = vmul.f32 %v4707_v54, %v4707_v54  ;;  %v2676_v36 = vsub.f32 %v4626_v25, %v4400_v44  ;;  %v2700_v40 = vmul.f32 %v4723_v30, %v4723_v30 }
 0x132   :  { %1265 = vmatprep.subr.bf16.mxu1 %v3258_v9  ;;  %1378 = vmatprep.subr.bf16.mxu0 %v3260_v10  ;;  %6421 = vst [vmem:[#allocation12_spill] sm:$0xff] %v4783_v45  ;;  %v2433_v12 = vmul.f32 %v2417_v35, %v2417_v35  ;;  %v2434_v26 = vmul.f32 %v2418_v33, %v2418_v33 }
 0x133   :  { %2469 = vrot.lane.b32.xlu1 %v2432_v31, %s4036_s1  ;;  %1266 = vmatpush1.bf16.msra.mxu1 %v3257_v28  ;;  %v2692_v61 = vmul.f32 %v2676_v36, %v2676_v36  ;;  %v2378_v44 = vsub.f32 %v4396_v42, %v4765_v51  ;;  %v2387_v54 = vsub.f32 %v4416_v55, %v4765_v51 }
 0x134   :  { %1379 = vmatpush1.bf16.msra.mxu0 %v3259_v29  ;;  %v2379_v41 = vsub.f32 %v4413_v53, %v4765_v51  ;;  %v2637_v6 = vsub.f32 %v4413_v53, %v4772_v11  ;;  %v2644_v29 = vsub.f32 %v4398_v43, %v4772_v11  ;;  %v2645_v31 = vsub.f32 %v4416_v55, %v4772_v11 }
 0x135   :  { %2729 = vrot.lane.b32.xlu0 %v2691_v57, %s4036_s1  ;;  %v2403_v10 = vmul.f32 %v2387_v54, %v2387_v54  ;;  %v2380_v57 = vsub.f32 %v4459_v19, %v4765_v51  ;;  %v2638_v20 = vsub.f32 %v4459_v19, %v4772_v11  ;;  %v2389_v35 = vsub.f32 %v4478_v60, %v4765_v51 }
 0x136   :  { %v2395_v14 = vmul.f32 %v2379_v41, %v2379_v41  ;;  %v2660_v33 = vmul.f32 %v2644_v29, %v2644_v29 }
 0x137   :  { %2485 = vrot.lane.b32.xlu1 %v2440_v58, %s4036_s1  ;;  %1108 = vmatmul.mubr.bf16.gmra.mrb[36].mxu1 %v4556_v52 }
 0x138   :  { %1221 = vmatmul.mubr.bf16.gmra.mrb[36].mxu0 %v4556_v52  ;;  %1117 = vmatprep.mubr.bf16.mxu1 %v4033_v2 }
 0x139   :  { %2745 = vrot.lane.b32.xlu0 %v2699_v46, %s4036_s1  ;;  %1230 = vmatprep.mubr.bf16.mxu0 %v4033_v2 }
 0x13b   :  { %2727 = vrot.lane.b32.xlu1 %v2690_v50, %s4036_s1  ;;  %v2381_v50 = vsub.f32 %v4475_v48, %v4765_v51 }
 0x13f   :  { %2743 = vrot.lane.b32.xlu1 %v2698_v34, %s4036_s1  ;;  %1118 = vmatmul.mubr.bf16.gmra.mrb[40].mxu1 %v4658_v0  ;;  %v2646_v34 = vsub.f32 %v4463_v22, %v4772_v11 }
 0x140   :  { %1231 = vmatmul.mubr.bf16.gmra.mrb[40].mxu0 %v4658_v0  ;;  %1127 = vmatprep.mubr.bf16.mxu1 %v4033_v2 }
 0x141   :  { %1240 = vmatprep.mubr.bf16.mxu0 %v4033_v2  ;;  %v4899_v41 = vmul.f32 %v2646_v34, %v2646_v34 }
 0x143   :  { %2471 = vrot.lane.b32.xlu1 %v2433_v12, %s4036_s1 }
 0x147   :  { %2473 = vrot.lane.b32.xlu1 %v2434_v26, %s4036_s1  ;;  %1128 = vmatmul.mubr.bf16.gmra.mrb[44].mxu1 %v4713_v4  ;;  %v2661_v26 = vmul.f32 %v2645_v31, %v2645_v31 }
 0x148   :  { %1241 = vmatmul.mubr.bf16.gmra.mrb[44].mxu0 %v4713_v4  ;;  %1283 = vmatprep.mubr.bf16.mxu1 %v4033_v2 }
 0x149   :  { %1396 = vmatprep.mubr.bf16.mxu0 %v4033_v2 }
 0x14b   :  { %2489 = vrot.lane.b32.xlu1 %v2442_v1, %s4036_s1  ;;  %v2390_v1 = vsub.f32 %v4529_v18, %v4765_v51 }
 0x14f   :  { %2731 = vrot.lane.b32.xlu1 %v2692_v61, %s4036_s1  ;;  %1284 = vmatmul.mubr.bf16.vlgmr.msra.gmra.mrb[48].mxu1 %v4465_v23 }
 0x150   :  { %1397 = vmatmul.mubr.bf16.vlgmr.msra.gmra.mrb[48].mxu0 %v4465_v23  ;;  %1293 = vmatprep.mubr.bf16.mxu1 %v4033_v2  ;;  %v4837_v23 = vpop.xlane.xlu0 %137 }
 0x151   :  { %1406 = vmatprep.mubr.bf16.mxu0 %v4033_v2 }
 0x153   :  { %2747 = vrot.lane.b32.xlu1 %v2700_v40, %s4036_s1  ;;  %v2396_v40 = vmul.f32 %v2380_v57, %v2380_v57 }
 0x157   :  { %1294 = vmatmul.mubr.bf16.gmra.mrb[52].mxu1 %v4541_v56 }
 0x158   :  { %1407 = vmatmul.mubr.bf16.gmra.mrb[52].mxu0 %v4541_v56  ;;  %1303 = vmatprep.mubr.bf16.mxu1 %v4033_v2  ;;  %v2394_v56 = vmul.f32 %v2378_v44, %v2378_v44 }
 0x159   :  { %1416 = vmatprep.mubr.bf16.mxu0 %v4033_v2 }
 0x15f   :  { %1304 = vmatmul.mubr.bf16.gmra.mrb[56].mxu1 %v4621_v16 }
 0x160   :  { %1417 = vmatmul.mubr.bf16.gmra.mrb[56].mxu0 %v4621_v16  ;;  %1313 = vmatprep.mubr.bf16.mxu1 %v4033_v2 }
 0x161   :  { %1426 = vmatprep.mubr.bf16.mxu0 %v4033_v2 }
 0x167   :  { %1314 = vmatmul.mubr.bf16.gmra.mrb[60].mxu1 %v4694_v63 }
 0x168   :  { %1427 = vmatmul.mubr.bf16.gmra.mrb[60].mxu0 %v4694_v63  ;;  %1323 = vmatprep.mubr.bf16.mxu1 %v4033_v2 }
 0x169   :  { %1436 = vmatprep.mubr.bf16.mxu0 %v4033_v2 }
 0x16f   :  { %1324 = vmatmul.mubr.bf16.gmra.mrb[64].mxu1 %v4482_v62 }
 0x170   :  { %1437 = vmatmul.mubr.bf16.gmra.mrb[64].mxu0 %v4482_v62  ;;  %1333 = vmatprep.mubr.bf16.mxu1 %v4033_v2  ;;  %v2386_v62 = vsub.f32 %v4398_v43, %v4765_v51 }
 0x171   :  { %1446 = vmatprep.mubr.bf16.mxu0 %v4033_v2 }
 0x172   :  { %v2402_v49 = vmul.f32 %v2386_v62, %v2386_v62  ;;  %v2397_v62 = vmul.f32 %v2381_v50, %v2381_v50 }
 0x177   :  { %1334 = vmatmul.mubr.bf16.gmra.mrb[68].mxu1 %v4556_v52 }
 0x178   :  { %1447 = vmatmul.mubr.bf16.gmra.mrb[68].mxu0 %v4556_v52  ;;  %1343 = vmatprep.mubr.bf16.mxu1 %v4033_v2  ;;  %v2636_v52 = vsub.f32 %v4396_v42, %v4772_v11 }
 0x179   :  { %1456 = vmatprep.mubr.bf16.mxu0 %v4033_v2 }
 0x17a   :  { %v2652_v28 = vmul.f32 %v2636_v52, %v2636_v52  ;;  %v4901_v52 = vmul.f32 %v2389_v35, %v2389_v35  ;;  %v4937_v35 = vsub.f32 %v4619_v32, %v4765_v51 }
 0x17b   :  { %v2460_v16 = vpop.permute.xlu0 %2459 }
 0x17c   :  { %v4845_v63 = vadd.f32 %v2460_v16, %v2394_v56  ;;  %v2654_v56 = vmul.f32 %v2638_v20, %v2638_v20  ;;  %v2639_v16 = vsub.f32 %v4475_v48, %v4772_v11  ;;  %v4930_v20 = vsub.f32 %v4519_v17, %v4765_v51 }
 0x17d   :  { %v2462_v30 = vpop.permute.xlu1 %2461 }
 0x17e   :  { %3439 = vrsqrt.f32 %v4845_v63  ;;  %v4873_v58 = vadd.f32 %v2462_v30, %v2395_v14  ;;  %v4910_v14 = vsub.f32 %v4478_v60, %v4772_v11  ;;  %vm2525_vm3 = vcmp.eq.f32.partialorder %v4845_v63, inf }
 0x17f   :  { %1344 = vmatmul.mubr.bf16.gmra.mrb[72].mxu1 %v4658_v0  ;;  %v2476_v3 = vpop.permute.xlu0 %2475  ;;  %vm2527_vm4 = vcmp.eq.f32.partialorder %v4845_v63, 0.0  ;;  %v4919_v31 = vmul.f32 %v2639_v16, %v2639_v16 }
 0x180   :  { %1457 = vmatmul.mubr.bf16.gmra.mrb[72].mxu0 %v4658_v0  ;;  %v4858_v9 = vadd.f32 %v2476_v3, %v2402_v49  ;;  %1353 = vmatprep.mubr.bf16.mxu1 %v4033_v2  ;;  %v2388_v0 = vsub.f32 %v4463_v22, %v4765_v51  ;;  %vm2532_vm8 = vcmp.eq.f32.partialorder %v4873_v58, inf }
 0x181   :  { %v2478_v15 = vpop.permute.xlu1 %2477  ;;  %1466 = vmatprep.mubr.bf16.mxu0 %v4033_v2  ;;  %v2653_v2 = vmul.f32 %v2637_v6, %v2637_v6  ;;  %v4904_v6 = vmul.f32 %v2390_v1, %v2390_v1 }
 0x182   :  { %3441 = vrsqrt.f32 %v4858_v9  ;;  %v4867_v7 = vadd.f32 %v2478_v15, %v2403_v10  ;;  %v2404_v61 = vmul.f32 %v2388_v0, %v2388_v0  ;;  %v2640_v10 = vsub.f32 %v4519_v17, %v4772_v11 }
 0x183   :  { %v2718_v46 = vpop.permute.xlu0 %2717  ;;  %v2528_v15 = vand.u32 2147483648, %v4845_v63  ;;  %v4923_v0 = vsub.f32 %v4529_v18, %v4772_v11  ;;  %vm2581_vm5 = vcmp.eq.f32.partialorder %v4858_v9, inf  ;;  %vm2583_vm6 = vcmp.eq.f32.partialorder %v4858_v9, 0.0 }
 0x184   :  { %3443 = vrsqrt.f32 %v4867_v7  ;;  %v4880_v38 = vadd.f32 %v2718_v46, %v2652_v28  ;;  %v4933_v34 = vmul.f32 %v2640_v10, %v2640_v10  ;;  %v2584_v1 = vand.u32 2147483648, %v4858_v9 }
 0x185   :  { %v2720_v12 = vpop.permute.xlu1 %2719  ;;  %vm2588_vm7 = vcmp.eq.f32.partialorder %v4867_v7, inf  ;;  %vm2590_vm9 = vcmp.eq.f32.partialorder %v4867_v7, 0.0 }
 0x186   :  { %3445 = vrsqrt.f32 %v4880_v38  ;;  %v4889_v36 = vadd.f32 %v2720_v12, %v2653_v2  ;;  %v4941_v12 = vsub.f32 %v4549_v47, %v4765_v51  ;;  %vm2783_vm10 = vcmp.eq.f32.partialorder %v4880_v38, inf }
 0x187   :  { %3447 = vrsqrt.f32 %v4873_v58  ;;  %1354 = vmatmul.mubr.bf16.gmra.mrb[76].mxu1 %v4713_v4  ;;  %v2734_v44 = vpop.permute.xlu0 %2733  ;;  %vm2785_vm11 = vcmp.eq.f32.partialorder %v4880_v38, 0.0 }
 0x188   :  { %v3440_v54 = vpop.eup %3439  ;;  %3449 = vrsqrt.f32 %v4889_v36  ;;  %1467 = vmatmul.mubr.bf16.gmra.mrb[76].mxu0 %v4713_v4  ;;  %v4897_v30 = vadd.f32 %v2734_v44, %v2660_v33  ;;  %vm2790_vm12 = vcmp.eq.f32.partialorder %v4889_v36, inf  ;;  %vm2792_vm13 = vcmp.eq.f32.partialorder %v4889_v36, 0.0 }
 0x189   :  { %v2736_v49 = vpop.permute.xlu1 %2735  ;;  %v2524_v3 = vmul.f32 %v3440_v54, %v4845_v63 }
 0x18a   :  { %3451 = vrsqrt.f32 %v4897_v30  ;;  %v4913_v4 = vadd.f32 %v2736_v49, %v2661_v26  ;;  %vm2839_vm14 = vcmp.eq.f32.partialorder %v4897_v30, inf  ;;  %vm2841_vm15 = vcmp.eq.f32.partialorder %v4897_v30, 0.0 }
 0x18b   :  { %v2480_v28 = vpop.permute.xlu0 %2479  ;;  %v2526_v29 = vsel %vm2525_vm3, %v4845_v63, %v2524_v3  ;;  %v2591_v3 = vand.u32 2147483648, %v4867_v7  ;;  %vm2534_vm3 = vcmp.eq.f32.partialorder %v4873_v58, 0.0 }
 0x18c   :  { %v3442_v57 = vpop.eup %3441  ;;  %3453 = vrsqrt.f32 %v4913_v4  ;;  %v4926_v46 = vadd.f32 %v2480_v28, %v2404_v61  ;;  %v2529_v2 = vsel %vm2527_vm4, %v2528_v15, %v2526_v29  ;;  %vm2846_vm0 = vcmp.eq.f32.partialorder %v4913_v4, inf }
 0x18d   :  { %v2464_v50 = vpop.permute.xlu1 %2463  ;;  %2937 = vperm.xlu0 %3413, %v2529_v2   ;;  %v2580_v63 = vmul.f32 %v3442_v57, %v4858_v9  ;;  %v2786_v2 = vand.u32 2147483648, %v4880_v38  ;;  %vm2848_vm1 = vcmp.eq.f32.partialorder %v4913_v4, 0.0 }
 0x18e   :  { %v3444_v33 = vpop.eup %3443  ;;  %v4943_v26 = vadd.f32 %v2464_v50, %v2396_v40  ;;  %3455 = vrsqrt.f32 %v4926_v46 }
 0x18f   :  { %v2722_v61 = vpop.permute.xlu0 %2721  ;;  %v2582_v44 = vsel %vm2581_vm5, %v4858_v9, %v2580_v63  ;;  %v2587_v16 = vmul.f32 %v3444_v33, %v4867_v7 }
 0x190   :  { %v3446_v54 = vpop.eup %3445  ;;  %3457 = vrsqrt.f32 %v4943_v26  ;;  %v4953_v40 = vadd.f32 %v2722_v61, %v2654_v56  ;;  %v2585_v49 = vsel %vm2583_vm6, %v2584_v1, %v2582_v44  ;;  %v2793_v61 = vand.u32 2147483648, %v4889_v36 }
 0x191   :  { %v3448_v10 = vpop.eup %3447  ;;  %v2466_v15 = vpop.permute.xlu1 %2465  ;;  %2977 = vperm.xlu1 %3414, %v2585_v49   ;;  %v2589_v28 = vsel %vm2588_vm7, %v4867_v7, %v2587_v16  ;;  %v2782_v9 = vmul.f32 %v3446_v54, %v4880_v38  ;;  %vm2539_vm4 = vcmp.eq.f32.partialorder %v4943_v26, inf  ;;  %vm2541_vm5 = vcmp.eq.f32.partialorder %v4943_v26, 0.0 }
 0x192   :  { %v3450_v29 = vpop.eup %3449  ;;  %v4961_v57 = vadd.f32 %v2466_v15, %v2397_v62  ;;  %v2592_v56 = vsel %vm2590_vm9, %v2591_v3, %v2589_v28  ;;  %3459 = vrsqrt.f32 %v4953_v40  ;;  %v2531_v54 = vmul.f32 %v3448_v10, %v4873_v58 }
 0x193   :  { %2982 = vperm.xlu0 %3413, %v2592_v56   ;;  %v2738_v50 = vpop.permute.xlu0 %2737  ;;  %v2784_v63 = vsel %vm2783_vm10, %v4880_v38, %v2782_v9  ;;  %v2789_v7 = vmul.f32 %v3450_v29, %v4889_v36  ;;  %vm2595_vm6 = vcmp.eq.f32.partialorder %v4926_v46, inf  ;;  %vm2597_vm9 = vcmp.eq.f32.partialorder %v4926_v46, 0.0 }
 0x194   :  { %v3452_v33 = vpop.eup %3451  ;;  %3461 = vrsqrt.f32 %v4961_v57  ;;  %v4971_v62 = vadd.f32 %v2738_v50, %v4899_v41  ;;  %v2787_v1 = vsel %vm2785_vm11, %v2786_v2, %v2784_v63  ;;  %v2842_v41 = vand.u32 2147483648, %v4897_v30 }
 0x195   :  { %v2482_v44 = vpop.permute.xlu1 %2481  ;;  %3036 = vperm.xlu1 %3414, %v2787_v1   ;;  %v2791_v16 = vsel %vm2790_vm12, %v4889_v36, %v2789_v7  ;;  %v2838_v38 = vmul.f32 %v3452_v33, %v4897_v30  ;;  %v2663_v50 = vmul.f32 %v4910_v14, %v4910_v14  ;;  %v2535_v1 = vand.u32 2147483648, %v4873_v58 }
 0x196   :  { %v3454_v49 = vpop.eup %3453  ;;  %v4979_v3 = vadd.f32 %v2482_v44, %v4901_v52  ;;  %v2794_v15 = vsel %vm2792_vm13, %v2793_v61, %v2791_v16  ;;  %3463 = vrsqrt.f32 %v4971_v62  ;;  %v2849_v52 = vand.u32 2147483648, %v4913_v4 }
 0x197   :  { %3041 = vperm.xlu0 %3413, %v2794_v15   ;;  %v2484_v28 = vpop.permute.xlu0 %2483  ;;  %v2840_v9 = vsel %vm2839_vm14, %v4897_v30, %v2838_v38  ;;  %v2845_v36 = vmul.f32 %v3454_v49, %v4913_v4  ;;  %v2533_v30 = vsel %vm2532_vm8, %v4873_v58, %v2531_v54  ;;  %v2664_v61 = vmul.f32 %v4923_v0, %v4923_v0 }
 0x198   :  { %3465 = vrsqrt.f32 %v4979_v3  ;;  %v2843_v10 = vsel %vm2841_vm15, %v2842_v41, %v2840_v9  ;;  %v3456_v29 = vpop.eup %3455  ;;  %v2398_v14 = vmul.f32 %v4930_v20, %v4930_v20  ;;  %v5009_v44 = vsub.f32 %v4612_v59, %v4772_v11 }
 0x199   :  { %v2724_v56 = vpop.permute.xlu1 %2723  ;;  %3076 = vperm.xlu1 %3414, %v2843_v10   ;;  %v2847_v2 = vsel %vm2846_vm0, %v4913_v4, %v2845_v36  ;;  %v2399_v0 = vmul.f32 %v4941_v12, %v4941_v12  ;;  %v2594_v54 = vmul.f32 %v3456_v29, %v4926_v46  ;;  %v2391_v49 = vsub.f32 %v4558_v37, %v4765_v51 }
 0x19a   :  { %v3458_v63 = vpop.eup %3457  ;;  %v4998_v7 = vadd.f32 %v2724_v56, %v4919_v31  ;;  %v2850_v33 = vsel %vm2848_vm1, %v2849_v52, %v2847_v2  ;;  %v2536_v31 = vsel %vm2534_vm3, %v2535_v1, %v2533_v30  ;;  %v5021_v15 = vsub.f32 %v4619_v32, %v4772_v11 }
 0x19b   :  { %3081 = vperm.xlu0 %3413, %v2850_v33   ;;  %v2538_v4 = vmul.f32 %v3458_v63, %v4943_v26  ;;  %v2726_v38 = vpop.permute.xlu0 %2725  ;;  %v5024_v9 = vadd.f32 %v2484_v28, %v4904_v6  ;;  %v2542_v36 = vand.u32 2147483648, %v4943_v26  ;;  %v5031_v10 = vsub.f32 %v4549_v47, %v4772_v11 }
 0x19c   :  { %3467 = vrsqrt.f32 %v4998_v7  ;;  %v3460_v16 = vpop.eup %3459  ;;  %v2598_v29 = vand.u32 2147483648, %v4926_v46  ;;  %vm2546_vm7 = vcmp.eq.f32.partialorder %v4961_v57, inf  ;;  %v2549_v28 = vand.u32 2147483648, %v4961_v57 }
 0x19d   :  { %v2740_v58 = vpop.permute.xlu1 %2739  ;;  %2942 = vperm.xlu1 %3414, %v2536_v31   ;;  %v2540_v20 = vsel %vm2539_vm4, %v4943_v26, %v2538_v4  ;;  %vm2548_vm8 = vcmp.eq.f32.partialorder %v4961_v57, 0.0  ;;  %v2596_v26 = vsel %vm2595_vm6, %v4926_v46, %v2594_v54  ;;  %v2796_v30 = vmul.f32 %v3460_v16, %v4953_v40 }
 0x19e   :  { %v3462_v41 = vpop.eup %3461  ;;  %v5026_v12 = vadd.f32 %v2740_v58, %v2663_v50  ;;  %v2543_v6 = vsel %vm2541_vm5, %v2542_v36, %v2540_v20  ;;  %v5046_v33 = vadd.f32 %v2726_v38, %v4933_v34  ;;  %vm2797_vm10 = vcmp.eq.f32.partialorder %v4953_v40, inf }
 0x19f   :  { %v2545_v52 = vmul.f32 %v3462_v41, %v4961_v57  ;;  %v2742_v31 = vpop.permute.xlu0 %2741  ;;  %v2599_v16 = vsel %vm2597_vm9, %v2598_v29, %v2596_v26  ;;  %vm2602_vm11 = vcmp.eq.f32.partialorder %v4979_v3, inf  ;;  %v2605_v34 = vand.u32 2147483648, %v4979_v3 }
 0x1a0   :  { %3469 = vrsqrt.f32 %v5026_v12  ;;  %v3464_v56 = vpop.eup %3463  ;;  %vm2604_vm12 = vcmp.eq.f32.partialorder %v4979_v3, 0.0  ;;  %v2798_v46 = vsel %vm2797_vm10, %v4953_v40, %v2796_v30  ;;  %v5062_v41 = vadd.f32 %v2742_v31, %v2664_v61 }
 0x1a1   :  { %v2468_v2 = vpop.permute.xlu1 %2467  ;;  %2947 = vperm.xlu1 %3414, %v2543_v6   ;;  %v2547_v50 = vsel %vm2546_vm7, %v4961_v57, %v2545_v52  ;;  %3471 = vrsqrt.f32 %v5024_v9  ;;  %v2800_v57 = vand.u32 2147483648, %v4953_v40  ;;  %v2852_v20 = vmul.f32 %v3464_v56, %v4971_v62 }
 0x1a2   :  { %v3466_v63 = vpop.eup %3465  ;;  %v5048_v1 = vadd.f32 %v2468_v2, %v2398_v14  ;;  %v2550_v4 = vsel %vm2548_vm8, %v2549_v28, %v2547_v50  ;;  %v2407_v29 = vmul.f32 %v2391_v49, %v2391_v49  ;;  %vm2799_vm13 = vcmp.eq.f32.partialorder %v4953_v40, 0.0 }
 0x1a3   :  { %2952 = vperm.xlu0 %3413, %v2550_v4   ;;  %v2601_v58 = vmul.f32 %v3466_v63, %v4979_v3  ;;  %vm2853_vm14 = vcmp.eq.f32.partialorder %v4971_v62, inf  ;;  %vm2804_vm15 = vcmp.eq.f32.partialorder %v4998_v7, inf  ;;  %v2807_v28 = vand.u32 2147483648, %v4998_v7  ;;  %v2488_v30 = vpop.permute.xlu0 %2487 }
 0x1a4   :  { %3473 = vrsqrt.f32 %v5048_v1  ;;  %vm2806_vm0 = vcmp.eq.f32.partialorder %v4998_v7, 0.0  ;;  %v2854_v49 = vsel %vm2853_vm14, %v4971_v62, %v2852_v20  ;;  %v2649_v40 = vsub.f32 %v4558_v37, %v4772_v11 }
 0x1a5   :  { %v2470_v14 = vpop.permute.xlu1 %2469  ;;  %2987 = vperm.xlu1 %3414, %v2599_v16   ;;  %v2603_v38 = vsel %vm2602_vm11, %v4979_v3, %v2601_v58  ;;  %3475 = vrsqrt.f32 %v5046_v33  ;;  %v2801_v3 = vsel %vm2799_vm13, %v2800_v57, %v2798_v46  ;;  %v2856_v26 = vand.u32 2147483648, %v4971_v62 }
 0x1a6   :  { %v3468_v54 = vpop.eup %3467  ;;  %v5064_v36 = vadd.f32 %v2470_v14, %v2399_v0  ;;  %v2606_v52 = vsel %vm2604_vm12, %v2605_v34, %v2603_v38  ;;  %v2657_v63 = vmul.f32 %v5031_v10, %v5031_v10  ;;  %vm2855_vm1 = vcmp.eq.f32.partialorder %v4971_v62, 0.0 }
 0x1a7   :  { %2992 = vperm.xlu0 %3413, %v2606_v52   ;;  %v2803_v6 = vmul.f32 %v3468_v54, %v4998_v7  ;;  %v2384_v4 = vsub.f32 %v4612_v59, %v4765_v51  ;;  %v2857_v58 = vsel %vm2855_vm1, %v2856_v26, %v2854_v49  ;;  %vm2860_vm3 = vcmp.eq.f32.partialorder %v5026_v12, inf }
 0x1a8   :  { %3477 = vrsqrt.f32 %v5064_v36  ;;  %v2863_v57 = vand.u32 2147483648, %v5026_v12  ;;  %vm2862_vm4 = vcmp.eq.f32.partialorder %v5026_v12, 0.0  ;;  %v2385_v62 = vsub.f32 %v4626_v25, %v4765_v51 }
 0x1a9   :  { %v2486_v61 = vpop.permute.xlu1 %2485  ;;  %3046 = vperm.xlu1 %3414, %v2801_v3   ;;  %v2805_v0 = vsel %vm2804_vm15, %v4998_v7, %v2803_v6  ;;  %3479 = vrsqrt.f32 %v5062_v41  ;;  %v2408_v14 = vmul.f32 %v4937_v35, %v4937_v35  ;;  %v2658_v38 = vmul.f32 %v5009_v44, %v5009_v44  ;;  %v2730_v6 = vpop.permute.xlu0 %2729 }
 0x1aa   :  { %v3470_v56 = vpop.eup %3469  ;;  %v5078_v2 = vadd.f32 %v2486_v61, %v2407_v29  ;;  %v2808_v50 = vsel %vm2806_vm0, %v2807_v28, %v2805_v0  ;;  %v2666_v54 = vmul.f32 %v5021_v15, %v5021_v15  ;;  %v2665_v52 = vmul.f32 %v2649_v40, %v2649_v40 }
 0x1ab   :  { %3051 = vperm.xlu0 %3413, %v2808_v50   ;;  %v2859_v7 = vmul.f32 %v3470_v56, %v5026_v12  ;;  %v3472_v31 = vpop.eup %3471  ;;  %vm2553_vm5 = vcmp.eq.f32.partialorder %v5048_v1, inf  ;;  %v2556_v35 = vand.u32 2147483648, %v5048_v1  ;;  %v2400_v44 = vmul.f32 %v2384_v4, %v2384_v4 }
 0x1ac   :  { %3481 = vrsqrt.f32 %v5078_v2  ;;  %v2608_v29 = vmul.f32 %v3472_v31, %v5024_v9  ;;  %vm2555_vm6 = vcmp.eq.f32.partialorder %v5048_v1, 0.0  ;;  %v2401_v15 = vmul.f32 %v2385_v62, %v2385_v62 }
 0x1ad   :  { %v2728_v16 = vpop.permute.xlu1 %2727  ;;  %3086 = vperm.xlu1 %3414, %v2857_v58   ;;  %v2861_v34 = vsel %vm2860_vm3, %v5026_v12, %v2859_v7  ;;  %v5111_v61 = vsub.f32 %v4626_v25, %v4772_v11  ;;  %v5113_v49 = vadd.f32 %v2488_v30, %v2408_v14  ;;  %vm2609_vm7 = vcmp.eq.f32.partialorder %v5024_v9, inf  ;;  %v2746_v62 = vpop.permute.xlu0 %2745 }
 0x1ae   :  { %v3474_v10 = vpop.eup %3473  ;;  %v5098_v46 = vadd.f32 %v2728_v16, %v2657_v63  ;;  %v2864_v20 = vsel %vm2862_vm4, %v2863_v57, %v2861_v34  ;;  %v2610_v26 = vsel %vm2609_vm7, %v5024_v9, %v2608_v29  ;;  %vm2611_vm8 = vcmp.eq.f32.partialorder %v5024_v9, 0.0 }
 0x1af   :  { %3091 = vperm.xlu0 %3413, %v2864_v20   ;;  %v2552_v12 = vmul.f32 %v3474_v10, %v5048_v1  ;;  %v3476_v51 = vpop.eup %3475  ;;  %vm2560_vm9 = vcmp.eq.f32.partialorder %v5064_v36, inf  ;;  %v2563_v11 = vand.u32 2147483648, %v5064_v36  ;;  %v2612_v30 = vand.u32 2147483648, %v5024_v9 }
 0x1b0   :  { %3483 = vrsqrt.f32 %v5098_v46  ;;  %v5126_v7 = vadd.f32 %v2730_v6, %v2658_v38  ;;  %vm2562_vm10 = vcmp.eq.f32.partialorder %v5064_v36, 0.0  ;;  %vm2811_vm11 = vcmp.eq.f32.partialorder %v5046_v33, inf }
 0x1b1   :  { %v2744_v3 = vpop.permute.xlu1 %2743  ;;  %v2554_v28 = vsel %vm2553_vm5, %v5048_v1, %v2552_v12  ;;  %v2810_v1 = vmul.f32 %v3476_v51, %v5046_v33  ;;  %v2613_v34 = vsel %vm2611_vm8, %v2612_v30, %v2610_v26  ;;  %vm2813_vm12 = vcmp.eq.f32.partialorder %v5046_v33, 0.0 }
 0x1b2   :  { %v3478_v0 = vpop.eup %3477  ;;  %v5115_v40 = vadd.f32 %v2744_v3, %v2665_v52  ;;  %v2557_v56 = vsel %vm2555_vm6, %v2556_v35, %v2554_v28  ;;  %vm2616_vm13 = vcmp.eq.f32.partialorder %v5078_v2, inf  ;;  %v2619_v38 = vand.u32 2147483648, %v5078_v2 }
 0x1b3   :  { %2957 = vperm.xlu1 %3414, %v2557_v56   ;;  %v2559_v50 = vmul.f32 %v3478_v0, %v5064_v36  ;;  %v3480_v63 = vpop.eup %3479  ;;  %v2812_v14 = vsel %vm2811_vm11, %v5046_v33, %v2810_v1  ;;  %v2814_v9 = vand.u32 2147483648, %v5046_v33  ;;  %vm2618_vm14 = vcmp.eq.f32.partialorder %v5078_v2, 0.0 }
 0x1b4   :  { %3485 = vrsqrt.f32 %v5115_v40  ;;  %vm2867_vm15 = vcmp.eq.f32.partialorder %v5062_v41, inf  ;;  %v5148_v29 = vadd.f32 %v2746_v62, %v2666_v54  ;;  %v2409_v33 = vmul.f32 %v4769_v39, %v4769_v39 }
 0x1b5   :  { %v2472_v4 = vpop.permute.xlu1 %2471  ;;  %v2561_v31 = vsel %vm2560_vm9, %v5064_v36, %v2559_v50  ;;  %3487 = vrsqrt.f32 %v5113_v49  ;;  %v2866_v36 = vmul.f32 %v3480_v63, %v5062_v41  ;;  %vm2818_vm0 = vcmp.eq.f32.partialorder %v5098_v46, inf }
 0x1b6   :  { %v3482_v58 = vpop.eup %3481  ;;  %v5132_v57 = vadd.f32 %v2472_v4, %v2400_v44  ;;  %v2564_v16 = vsel %vm2562_vm10, %v2563_v11, %v2561_v31  ;;  %v2815_v44 = vsel %vm2813_vm12, %v2814_v9, %v2812_v14  ;;  %v2870_v54 = vand.u32 2147483648, %v5062_v41 }
 0x1b7   :  { %2962 = vperm.xlu0 %3413, %v2564_v16   ;;  %2997 = vperm.xlu1 %3414, %v2613_v34   ;;  %v2615_v10 = vmul.f32 %v3482_v58, %v5078_v2  ;;  %v2868_v3 = vsel %vm2867_vm15, %v5062_v41, %v2866_v36  ;;  %vm2820_vm1 = vcmp.eq.f32.partialorder %v5098_v46, 0.0  ;;  %vm2869_vm3 = vcmp.eq.f32.partialorder %v5062_v41, 0.0 }
 0x1b8   :  { %3489 = vrsqrt.f32 %v5132_v57  ;;  %v2871_v50 = vsel %vm2869_vm3, %v2870_v54, %v2868_v3  ;;  %v2659_v63 = vmul.f32 %v5111_v61, %v5111_v61  ;;  %vm2874_vm4 = vcmp.eq.f32.partialorder %v5115_v40, inf }
 0x1b9   :  { %3491 = vrsqrt.f32 %v5126_v7  ;;  %v2474_v20 = vpop.permute.xlu1 %2473  ;;  %v2617_v52 = vsel %vm2616_vm13, %v5078_v2, %v2615_v10  ;;  %v2821_v2 = vand.u32 2147483648, %v5098_v46  ;;  %vm2876_vm5 = vcmp.eq.f32.partialorder %v5115_v40, 0.0 }
 0x1ba   :  { %v3484_v12 = vpop.eup %3483  ;;  %v5150_v51 = vadd.f32 %v2474_v20, %v2401_v15  ;;  %v2620_v35 = vsel %vm2618_vm14, %v2619_v38, %v2617_v52  ;;  %v2667_v61 = vmul.f32 %v4776_v24, %v4776_v24  ;;  %vm2567_vm6 = vcmp.eq.f32.partialorder %v5132_v57, inf }
 0x1bb   :  { %3002 = vperm.xlu0 %3413, %v2620_v35   ;;  %3056 = vperm.xlu1 %3414, %v2815_v44   ;;  %v2817_v6 = vmul.f32 %v3484_v12, %v5098_v46  ;;  %v2570_v62 = vand.u32 2147483648, %v5132_v57  ;;  %vm2569_vm7 = vcmp.eq.f32.partialorder %v5132_v57, 0.0  ;;  %vm2623_vm8 = vcmp.eq.f32.partialorder %v5113_v49, inf }
 0x1bc   :  { %3493 = vrsqrt.f32 %v5150_v51  ;;  %vm2574_vm9 = vcmp.eq.f32.partialorder %v5150_v51, inf  ;;  %v2577_v12 = vand.u32 2147483648, %v5150_v51  ;;  %vm2576_vm10 = vcmp.eq.f32.partialorder %v5150_v51, 0.0 }
 0x1bd   :  { %v2490_v28 = vpop.permute.xlu1 %2489  ;;  %v2819_v15 = vsel %vm2818_vm0, %v5098_v46, %v2817_v6  ;;  %3495 = vrsqrt.f32 %v5148_v29  ;;  %v2877_v46 = vand.u32 2147483648, %v5115_v40  ;;  %vm2625_vm11 = vcmp.eq.f32.partialorder %v5113_v49, 0.0 }
 0x1be   :  { %v3486_v39 = vpop.eup %3485  ;;  %v2522_v0 = vadd.f32 %v2490_v28, %v2409_v33  ;;  %v2822_v56 = vsel %vm2820_vm1, %v2821_v2, %v2819_v15  ;;  %vm2825_vm12 = vcmp.eq.f32.partialorder %v5126_v7, inf  ;;  %v2828_v15 = vand.u32 2147483648, %v5126_v7 }
 0x1bf   :  { %3061 = vperm.xlu0 %3413, %v2822_v56   ;;  %3096 = vperm.xlu1 %3414, %v2871_v50   ;;  %v2873_v26 = vmul.f32 %v3486_v39, %v5115_v40  ;;  %v3488_v1 = vpop.eup %3487  ;;  %vm2827_vm15 = vcmp.eq.f32.partialorder %v5126_v7, 0.0  ;;  %vm2881_vm0 = vcmp.eq.f32.partialorder %v5148_v29, inf }
 0x1c0   :  { %3497 = vrsqrt.f32 %v2522_v0  ;;  %v2622_v34 = vmul.f32 %v3488_v1, %v5113_v49  ;;  %vm2630_vm13 = vcmp.eq.f32.partialorder %v2522_v0, inf  ;;  %v2633_v28 = vand.u32 2147483648, %v2522_v0 }
 0x1c1   :  { %v2732_v41 = vpop.permute.xlu1 %2731  ;;  %v2875_v11 = vsel %vm2874_vm4, %v5115_v40, %v2873_v26  ;;  %vm2632_vm14 = vcmp.eq.f32.partialorder %v2522_v0, 0.0  ;;  %vm2883_vm4 = vcmp.eq.f32.partialorder %v5148_v29, 0.0 }
 0x1c2   :  { %v3490_v30 = vpop.eup %3489  ;;  %v2772_v4 = vadd.f32 %v2732_v41, %v2659_v63  ;;  %v2878_v31 = vsel %vm2876_vm5, %v2877_v46, %v2875_v11  ;;  %v2624_v20 = vsel %vm2623_vm8, %v5113_v49, %v2622_v34  ;;  %v2884_v63 = vand.u32 2147483648, %v5148_v29 }
 0x1c3   :  { %v3492_v58 = vpop.eup %3491  ;;  %3101 = vperm.xlu0 %3413, %v2878_v31   ;;  %v2566_v16 = vmul.f32 %v3490_v30, %v5132_v57  ;;  %vm3031_vm8 = vcmp.eq.s32.totalorder %v4759_v21, 33 }
 0x1c4   :  { %3499 = vrsqrt.f32 %v2772_v4  ;;  %v2824_v24 = vmul.f32 %v3492_v58, %v5126_v7  ;;  %vm2832_vm1 = vcmp.eq.f32.partialorder %v2772_v4, inf  ;;  %v2835_v1 = vand.u32 2147483648, %v2772_v4 }
 0x1c5   :  { %v2748_v10 = vpop.permute.xlu1 %2747  ;;  %v2568_v40 = vsel %vm2567_vm6, %v5132_v57, %v2566_v16  ;;  %v2626_v57 = vand.u32 2147483648, %v5113_v49  ;;  %vm2834_vm3 = vcmp.eq.f32.partialorder %v2772_v4, 0.0  ;;  %v5199_v16 = vshrl.u32 %v665_v8, 7 }
 0x1c6   :  { %v3494_v14 = vpop.eup %3493  ;;  %v2780_v36 = vadd.f32 %v2748_v10, %v2667_v61  ;;  %v2571_v38 = vsel %vm2569_vm7, %v2570_v62, %v2568_v40  ;;  %v2826_v2 = vsel %vm2825_vm12, %v5126_v7, %v2824_v24  ;;  %vm2932_vm7 = vcmp.eq.s32.totalorder %v4759_v21, 32 }
 0x1c7   :  { %2967 = vperm.xlu1 %3414, %v2571_v38   ;;  %v2573_v9 = vmul.f32 %v3494_v14, %v5150_v51  ;;  %v3496_v52 = vpop.eup %3495  ;;  %v2627_v6 = vsel %vm2625_vm11, %v2626_v57, %v2624_v20  ;;  %v2829_v56 = vsel %vm2827_vm15, %v2828_v15, %v2826_v2  ;;  %6424 = vst [vmem:[#allocation13_spill] sm:$0xff] %v5199_v16  ;;  %v667_v34 = vsub.s32 0, %v5199_v16 }
 0x1c8   :  { %3501 = vrsqrt.f32 %v2780_v36  ;;  %v2880_v54 = vmul.f32 %v3496_v52, %v5148_v29  ;;  %vm2888_vm5 = vcmp.eq.f32.partialorder %v2780_v36, inf  ;;  %v2891_v30 = vand.u32 2147483648, %v2780_v36 }
 0x1c9   :  { %v2575_v35 = vsel %vm2574_vm9, %v5150_v51, %v2573_v9  ;;  %vm2890_vm6 = vcmp.eq.f32.partialorder %v2780_v36, 0.0  ;;  %v671_v61 = vsub.s32 1, %v5199_v16  ;;  %v679_v62 = vsub.s32 3, %v5199_v16 }
 0x1ca   :  { %v3498_v44 = vpop.eup %3497  ;;  %v2578_v33 = vsel %vm2576_vm10, %v2577_v12, %v2575_v35  ;;  %v2882_v26 = vsel %vm2881_vm0, %v5148_v29, %v2880_v54  ;;  %v663_v29 = vld [vmem:[%s6393_s6] sm:$0xff]  ;;  %3503 = vrcp.f32 %v4837_v23  ;;  %vm3130_vm9 = vcmp.eq.s32.totalorder %v4759_v21, 34 }
 0x1cb   :  { %2972 = vperm.xlu0 %3413, %v2578_v33   ;;  %3007 = vperm.xlu1 %3414, %v2627_v6   ;;  %v2629_v3 = vmul.f32 %v3498_v44, %v2522_v0  ;;  %v2885_v41 = vsel %vm2883_vm4, %v2884_v63, %v2882_v26  ;;  %v5208_v10 = vrot.slane %v663_v29, %v667_v34 }
 0x1cc   :  { %v5212_v14 = vrot.slane %v663_v29, %v671_v61  ;;  %v5214_v8 = vrot.slane %v663_v29, %v679_v62 }
 0x1cd   :  { %v2631_v39 = vsel %vm2630_vm13, %v2522_v0, %v2629_v3 }
 0x1ce   :  { %v3500_v49 = vpop.eup %3499  ;;  %v2634_v51 = vsel %vm2632_vm14, %v2633_v28, %v2631_v39 }
 0x1cf   :  { %3012 = vperm.xlu0 %3413, %v2634_v51   ;;  %3066 = vperm.xlu1 %3414, %v2829_v56   ;;  %v2831_v50 = vmul.f32 %v3500_v49, %v2772_v4 }
 0x1d1   :  { %v2833_v46 = vsel %vm2832_vm1, %v2772_v4, %v2831_v50  ;;  %v675_v4 = vsub.s32 2, %v5199_v16 }
 0x1d2   :  { %v3502_v0 = vpop.eup %3501  ;;  %v2836_v7 = vsel %vm2834_vm3, %v2835_v1, %v2833_v46 }
 0x1d3   :  { %3071 = vperm.xlu0 %3413, %v2836_v7   ;;  %3106 = vperm.xlu1 %3414, %v2885_v41   ;;  %v2887_v11 = vmul.f32 %v3502_v0, %v2780_v36  ;;  %v5210_v40 = vrot.slane %v663_v29, %v675_v4 }
 0x1d5   :  { %v2889_v31 = vsel %vm2888_vm5, %v2780_v36, %v2887_v11 }
 0x1d6   :  { %v2892_v58 = vsel %vm2890_vm6, %v2891_v30, %v2889_v31 }
 0x1d7   :  { %3111 = vperm.xlu0 %3413, %v2892_v58  }
 0x1e2   :  { %v1059_v36 = vpop.f32.mrb[16].mxu1 }
 0x1e3   :  { %v1060_v38 = vadd.f32 %v1059_v36, %v5208_v10  ;;  %v1172_v9 = vpop.f32.mrb[16].mxu0  ;;  %v1061_v20 = vpop.f32.mrb[17].mxu1 }
 0x1e4   :  { %v1173_v24 = vadd.f32 %v1172_v9, %v5210_v40  ;;  %v1062_v52 = vadd.f32 %v1061_v20, %v5212_v14  ;;  %v1174_v12 = vpop.f32.mrb[17].mxu0  ;;  %v1063_v57 = vpop.f32.mrb[18].mxu1 }
 0x1e5   :  { %v3261_v35 = vmul.f32 -1.442695, %v1060_v38  ;;  %v1175_v44 = vadd.f32 %v1174_v12, %v5214_v8  ;;  %v1064_v33 = vadd.f32 %v1063_v57, %v5208_v10  ;;  %v1176_v6 = vpop.f32.mrb[18].mxu0  ;;  %v1065_v3 = vpop.f32.mrb[19].mxu1 }
 0x1e6   :  { %v3263_v2 = vmul.f32 -1.442695, %v1173_v24  ;;  %v3262_v54 = vmul.f32 -1.442695, %v1062_v52  ;;  %v1177_v28 = vadd.f32 %v1176_v6, %v5210_v40  ;;  %v1066_v15 = vadd.f32 %v1065_v3, %v5212_v14  ;;  %v1178_v39 = vpop.f32.mrb[19].mxu0  ;;  %v5230_v38 = vpop.eup %3503 }
 0x1e7   :  { %3505 = vpow2.f32 %v3261_v35  ;;  %v3264_v49 = vmul.f32 -1.442695, %v1175_v44  ;;  %v3269_v51 = vmul.f32 -1.442695, %v1064_v33  ;;  %v1179_v56 = vadd.f32 %v1178_v39, %v5214_v8 }
 0x1e8   :  { %3507 = vpow2.f32 %v3263_v2  ;;  %v3271_v23 = vmul.f32 -1.442695, %v1177_v28  ;;  %v3270_v50 = vmul.f32 -1.442695, %v1066_v15 }
 0x1e9   :  { %3509 = vpow2.f32 %v3262_v54  ;;  %v3272_v26 = vmul.f32 -1.442695, %v1179_v56 }
 0x1ea   :  { %3511 = vpow2.f32 %v3264_v49  ;;  %v1069_v1 = vpop.f32.mrb[20].mxu1 }
 0x1eb   :  { %3513 = vpow2.f32 %v3269_v51  ;;  %v1070_v63 = vadd.f32 %v1069_v1, %v5208_v10  ;;  %v1182_v46 = vpop.f32.mrb[20].mxu0  ;;  %v1071_v0 = vpop.f32.mrb[21].mxu1 }
 0x1ec   :  { %3515 = vpow2.f32 %v3271_v23  ;;  %v1183_v7 = vadd.f32 %v1182_v46, %v5210_v40  ;;  %v1072_v41 = vadd.f32 %v1071_v0, %v5212_v14  ;;  %v1184_v11 = vpop.f32.mrb[21].mxu0  ;;  %v1073_v30 = vpop.f32.mrb[22].mxu1 }
 0x1ed   :  { %3517 = vpow2.f32 %v3270_v50  ;;  %v3277_v31 = vmul.f32 -1.442695, %v1070_v63  ;;  %v1185_v58 = vadd.f32 %v1184_v11, %v5214_v8  ;;  %v1074_v34 = vadd.f32 %v1073_v30, %v5208_v10  ;;  %v1186_v29 = vpop.f32.mrb[22].mxu0  ;;  %v1075_v4 = vpop.f32.mrb[23].mxu1 }
 0x1ee   :  { %3519 = vpow2.f32 %v3272_v26  ;;  %v3279_v61 = vmul.f32 -1.442695, %v1183_v7  ;;  %v3278_v62 = vmul.f32 -1.442695, %v1072_v41  ;;  %v1188_v36 = vpop.f32.mrb[23].mxu0  ;;  %v1187_v41 = vadd.f32 %v1186_v29, %v5210_v40 }
 0x1ef   :  { %3521 = vpow2.f32 %v3277_v31  ;;  %v3280_v9 = vmul.f32 -1.442695, %v1185_v58  ;;  %v3285_v20 = vmul.f32 -1.442695, %v1074_v34  ;;  %v1076_v31 = vadd.f32 %v1075_v4, %v5212_v14 }
 0x1f0   :  { %3523 = vpow2.f32 %v3279_v61 }
 0x1f1   :  { %v3506_v24 = vpop.eup %3505  ;;  %3525 = vpow2.f32 %v3278_v62  ;;  %v1189_v62 = vadd.f32 %v1188_v36, %v5214_v8 }
 0x1f2   :  { %v3508_v52 = vpop.eup %3507  ;;  %v1861_v12 = vadd.f32 1.0, %v3506_v24  ;;  %3527 = vpow2.f32 %v3280_v9  ;;  %v1079_v57 = vpop.f32.mrb[24].mxu1 }
 0x1f3   :  { %v3510_v35 = vpop.eup %3509  ;;  %v1863_v44 = vadd.f32 1.0, %v3508_v52  ;;  %3529 = vpow2.f32 %v3285_v20  ;;  %v1192_v33 = vpop.f32.mrb[24].mxu0 }
 0x1f4   :  { %v1081_v6 = vpop.f32.mrb[25].mxu1  ;;  %v3512_v3 = vpop.eup %3511  ;;  %3531 = vrcp.f32 %v1861_v12  ;;  %v1862_v2 = vadd.f32 1.0, %v3510_v35  ;;  %v1080_v12 = vadd.f32 %v1079_v57, %v5208_v10 }
 0x1f5   :  { %v1194_v54 = vpop.f32.mrb[25].mxu0  ;;  %v1083_v28 = vpop.f32.mrb[26].mxu1  ;;  %3533 = vrcp.f32 %v1863_v44  ;;  %v1864_v39 = vadd.f32 1.0, %v3512_v3  ;;  %v3287_v3 = vmul.f32 -1.442695, %v1187_v41  ;;  %v1082_v57 = vadd.f32 %v1081_v6, %v5212_v14 }
 0x1f6   :  { %v3514_v15 = vpop.eup %3513  ;;  %v1196_v49 = vpop.f32.mrb[26].mxu0  ;;  %3535 = vrcp.f32 %v1862_v2  ;;  %v1193_v2 = vadd.f32 %v1192_v33, %v5210_v40  ;;  %v1195_v33 = vadd.f32 %v1194_v54, %v5214_v8  ;;  %v1084_v6 = vadd.f32 %v1083_v28, %v5208_v10 }
 0x1f7   :  { %v5232_v51 = vpop.f32.mrb[27].mxu1  ;;  %v3516_v56 = vpop.eup %3515  ;;  %v1869_v23 = vadd.f32 1.0, %v3514_v15  ;;  %3537 = vrcp.f32 %v1864_v39  ;;  %v3294_v54 = vmul.f32 -1.442695, %v1082_v57 }
 0x1f8   :  { %v5234_v50 = vpop.f32.mrb[27].mxu0  ;;  %v3518_v26 = vpop.eup %3517  ;;  %v1871_v1 = vadd.f32 1.0, %v3516_v56  ;;  %v3295_v41 = vmul.f32 -1.442695, %v1193_v2 }
 0x1f9   :  { %v3520_v63 = vpop.eup %3519  ;;  %3539 = vrcp.f32 %v1869_v23  ;;  %v1870_v46 = vadd.f32 1.0, %v3518_v26  ;;  %v3286_v23 = vmul.f32 -1.442695, %v1076_v31  ;;  %v1086_v31 = vadd.f32 %v5232_v51, %v5212_v14 }
 0x1fa   :  { %v3522_v0 = vpop.eup %3521  ;;  %3541 = vrcp.f32 %v1871_v1  ;;  %v1872_v7 = vadd.f32 1.0, %v3520_v63  ;;  %v1089_v58 = vpop.f32.mrb[28].mxu1  ;;  %v3288_v63 = vmul.f32 -1.442695, %v1189_v62 }
 0x1fb   :  { %v3524_v11 = vpop.eup %3523  ;;  %3543 = vrcp.f32 %v1870_v46  ;;  %v1877_v30 = vadd.f32 1.0, %v3522_v0  ;;  %v1202_v9 = vpop.f32.mrb[28].mxu0  ;;  %v3293_v0 = vmul.f32 -1.442695, %v1080_v12  ;;  %v3301_v12 = vmul.f32 -1.442695, %v1084_v6 }
 0x1fc   :  { %v3526_v34 = vpop.eup %3525  ;;  %3545 = vrcp.f32 %v1872_v7  ;;  %v1879_v61 = vadd.f32 1.0, %v3524_v11  ;;  %v5239_v20 = vpop.f32.mrb[29].mxu1  ;;  %v1197_v11 = vadd.f32 %v1196_v49, %v5210_v40  ;;  %v1199_v49 = vadd.f32 %v5234_v50, %v5214_v8 }
 0x1fd   :  { %v3528_v24 = vpop.eup %3527  ;;  %3547 = vrcp.f32 %v1877_v30  ;;  %v1878_v52 = vadd.f32 1.0, %v3526_v34  ;;  %v5242_v29 = vpop.f32.mrb[29].mxu0  ;;  %v5294_v50 = vmul.f32 0.0, %v4416_v55 }
 0x1fe   :  { %v5244_v35 = vpop.f32.mrb[30].mxu1  ;;  %v3530_v44 = vpop.eup %3529  ;;  %3549 = vrcp.f32 %v1879_v61  ;;  %v1880_v4 = vadd.f32 1.0, %v3528_v24  ;;  %v3296_v61 = vmul.f32 -1.442695, %v1195_v33  ;;  %v1092_v33 = vadd.f32 %v5239_v20, %v5212_v14 }
 0x1ff   :  { %v5247_v15 = vpop.f32.mrb[30].mxu0  ;;  %v5249_v36 = vpop.f32.mrb[31].mxu1  ;;  %3551 = vrcp.f32 %v1878_v52  ;;  %v1885_v56 = vadd.f32 1.0, %v3530_v44  ;;  %v5283_v52 = vmul.f32 0.0, %v4398_v43  ;;  %v1090_v44 = vadd.f32 %v1089_v58, %v5208_v10 }
 0x200   :  { %v3532_v39 = vpop.eup %3531  ;;  %v5252_v26 = vpop.f32.mrb[31].mxu0  ;;  %3553 = vrcp.f32 %v1880_v4  ;;  %v5305_v58 = vmul.f32 0.0, %v4413_v53  ;;  %v3304_v6 = vmul.f32 -1.442695, %v1199_v49  ;;  %v5343_v49 = vmul.f32 -1.442695, %v1092_v33 }
 0x201   :  { %v3534_v1 = vpop.eup %3533  ;;  %2245 = vst [vmem:[%s6397_s10] sm:$0xff] %v3532_v39  ;;  %3555 = vrcp.f32 %v1885_v56  ;;  %v3303_v39 = vmul.f32 -1.442695, %v1197_v11  ;;  %v1203_v56 = vadd.f32 %v1202_v9, %v5210_v40  ;;  %v5314_v9 = vmul.f32 %v5230_v38, %v4396_v42 }
 0x202   :  { %v3536_v46 = vpop.eup %3535  ;;  %2247 = vst [vmem:[%s6397_s10 + $0x10] sm:$0xff] %v3534_v1  ;;  %3557 = vpow2.f32 %v3287_v3  ;;  %v5271_v28 = vpop.f32.mrb[32].mxu1 }
 0x203   :  { %v3538_v7 = vpop.eup %3537  ;;  %2246 = vst [vmem:[%s6397_s10 + $0x8] sm:$0xff] %v3536_v46  ;;  %3559 = vpow2.f32 %v3286_v23  ;;  %v5278_v62 = vpop.f32.mrb[32].mxu0 }
 0x204   :  { %v3540_v30 = vpop.eup %3539  ;;  %2248 = vst [vmem:[%s6397_s10 + $0x18] sm:$0xff] %v3538_v7  ;;  %3561 = vpow2.f32 %v3288_v63  ;;  %v5280_v24 = vpop.f32.mrb[33].mxu1  ;;  %v3302_v63 = vmul.f32 -1.442695, %v1086_v31 }
 0x205   :  { %v3542_v34 = vpop.eup %3541  ;;  %2253 = vst [vmem:[%s6397_s10 + $0x40] sm:$0xff] %v3540_v30  ;;  %3563 = vpow2.f32 %v3293_v0  ;;  %v5289_v4 = vpop.f32.mrb[33].mxu0 }
 0x206   :  { %v3544_v51 = vpop.eup %3543  ;;  %2255 = vst [vmem:[%s6397_s10 + $0x50] sm:$0xff] %v3542_v34  ;;  %v5291_v3 = vpop.f32.mrb[34].mxu1  ;;  %3565 = vpow2.f32 %v3295_v41  ;;  %v3309_v41 = vmul.f32 -1.442695, %v1090_v44 }
 0x207   :  { %v3546_v2 = vpop.eup %3545  ;;  %2254 = vst [vmem:[%s6397_s10 + $0x48] sm:$0xff] %v3544_v51  ;;  %v5300_v23 = vpop.f32.mrb[34].mxu0  ;;  %3567 = vpow2.f32 %v3294_v54  ;;  %v3311_v54 = vmul.f32 -1.442695, %v1203_v56  ;;  %v1205_v51 = vadd.f32 %v5242_v29, %v5214_v8  ;;  %v1207_v56 = vadd.f32 %v5247_v15, %v5210_v40 }
 0x208   :  { %v5302_v57 = vpop.f32.mrb[35].mxu1  ;;  %v3548_v1 = vpop.eup %3547  ;;  %2256 = vst [vmem:[%s6397_s10 + $0x58] sm:$0xff] %v3546_v2  ;;  %3569 = vpow2.f32 %v3296_v61  ;;  %v1096_v15 = vadd.f32 %v5249_v36, %v5212_v14 }
 0x209   :  { %v1218_v46 = vpop.f32.mrb[35].mxu0  ;;  %v3550_v0 = vpop.eup %3549  ;;  %2261 = vst [vmem:[%s6397_s10 + $0x80] sm:$0xff] %v3548_v1  ;;  %3571 = vpow2.f32 %v3301_v12  ;;  %v5385_v11 = vmul.f32 -1.442695, %v1207_v56  ;;  %v1100_v56 = vadd.f32 %v5271_v28, %v5208_v10  ;;  %v1213_v28 = vadd.f32 %v5278_v62, %v5210_v40 }
 0x20a   :  { %v3552_v7 = vpop.eup %3551  ;;  %2263 = vst [vmem:[%s6397_s10 + $0x90] sm:$0xff] %v3550_v0  ;;  %v5323_v20 = vadd.f32 %v1218_v46, %v5214_v8  ;;  %3573 = vpow2.f32 %v3303_v39  ;;  %v1109_v12 = vpop.f32.mrb[36].mxu1  ;;  %v1094_v39 = vadd.f32 %v5244_v35, %v5208_v10 }
 0x20b   :  { %v3554_v30 = vpop.eup %3553  ;;  %2262 = vst [vmem:[%s6397_s10 + $0x88] sm:$0xff] %v3552_v7  ;;  %3575 = vpow2.f32 %v3302_v63  ;;  %v5359_v29 = vadd.f32 %v1109_v12, %v5208_v10  ;;  %v1222_v1 = vpop.f32.mrb[36].mxu0  ;;  %v5417_v62 = vmul.f32 -1.442695, %v1100_v56 }
 0x20c   :  { %v3556_v61 = vpop.eup %3555  ;;  %2264 = vst [vmem:[%s6397_s10 + $0x98] sm:$0xff] %v3554_v30  ;;  %3577 = vpow2.f32 %v3304_v6  ;;  %v1111_v63 = vpop.f32.mrb[37].mxu1  ;;  %v5362_v0 = vadd.f32 %v1222_v1, %v5210_v40  ;;  %v5373_v1 = vmul.f32 -1.442695, %v1205_v51 }
 0x20d   :  { %v3558_v2 = vpop.eup %3557  ;;  %2269 = vst [vmem:[%s6397_s10 + $0xc0] sm:$0xff] %v3556_v61  ;;  %3579 = vpow2.f32 %v3309_v41  ;;  %v5365_v7 = vadd.f32 %v1111_v63, %v5212_v14  ;;  %v1224_v6 = vpop.f32.mrb[37].mxu0  ;;  %v1209_v63 = vadd.f32 %v5252_v26, %v5214_v8 }
 0x20e   :  { %v3560_v33 = vpop.eup %3559  ;;  %v1887_v46 = vadd.f32 1.0, %v3558_v2  ;;  %v1113_v30 = vpop.f32.mrb[38].mxu1  ;;  %3581 = vpow2.f32 %v3311_v54  ;;  %v5370_v12 = vadd.f32 %v1224_v6, %v5214_v8  ;;  %v5380_v6 = vmul.f32 -1.442695, %v1094_v39 }
 0x20f   :  { %v3562_v35 = vpop.eup %3561  ;;  %v1886_v61 = vadd.f32 1.0, %v3560_v33  ;;  %v1226_v5 = vpop.f32.mrb[38].mxu0  ;;  %v5383_v31 = vadd.f32 %v1113_v30, %v5208_v10 }
 0x210   :  { %v3564_v41 = vpop.eup %3563  ;;  %3583 = vrcp.f32 %v1887_v46  ;;  %v1888_v2 = vadd.f32 1.0, %v3562_v35  ;;  %v5377_v34 = vpop.permute.xlu0 %2937  ;;  %v5388_v26 = vadd.f32 %v1226_v5, %v5210_v40 }
 0x211   :  { %v1115_v54 = vpop.f32.mrb[39].mxu1  ;;  %v3566_v36 = vpop.eup %3565  ;;  %3585 = vrcp.f32 %v1886_v61  ;;  %v1893_v33 = vadd.f32 1.0, %v3564_v41  ;;  %v5392_v41 = vmul.f32 -1.442695, %v1096_v15  ;;  %v5404_v15 = vmul.f32 -1.442695, %v1209_v63 }
 0x212   :  { %v1228_v46 = vpop.f32.mrb[39].mxu0  ;;  %v3568_v35 = vpop.eup %3567  ;;  %3587 = vrcp.f32 %v1888_v2  ;;  %v1895_v51 = vadd.f32 1.0, %v3566_v36  ;;  %v5395_v39 = vadd.f32 %v1115_v54, %v5212_v14  ;;  %v1102_v63 = vadd.f32 %v5280_v24, %v5212_v14 }
 0x213   :  { %v5390_v44 = vpop.permute.xlu1 %2977  ;;  %v3570_v13 = vpop.eup %3569  ;;  %3589 = vrcp.f32 %v1893_v33  ;;  %v1894_v61 = vadd.f32 1.0, %v3568_v35  ;;  %v5400_v2 = vadd.f32 %v1228_v46, %v5214_v8  ;;  %v5424_v24 = vadd.f32 %v5289_v4, %v5214_v8 }
 0x214   :  { %v3572_v30 = vpop.eup %3571  ;;  %3591 = vrcp.f32 %v1895_v51  ;;  %v1896_v45 = vadd.f32 1.0, %v3570_v13  ;;  %v1119_v5 = vpop.f32.mrb[40].mxu1 }
 0x215   :  { %v5402_v36 = vpop.permute.xlu0 %2982  ;;  %v3574_v25 = vpop.eup %3573  ;;  %3593 = vrcp.f32 %v1894_v61  ;;  %v1901_v33 = vadd.f32 1.0, %v3572_v30  ;;  %v5410_v46 = vadd.f32 %v1119_v5, %v5208_v10 }
 0x216   :  { %v1232_v35 = vpop.f32.mrb[40].mxu0  ;;  %v1121_v54 = vpop.f32.mrb[41].mxu1  ;;  %3595 = vrcp.f32 %v1896_v45  ;;  %v1903_v13 = vadd.f32 1.0, %v3574_v25 }
 0x217   :  { %v3576_v51 = vpop.eup %3575  ;;  %6425 = vst [vmem:[#allocation14_spill] sm:$0xff] %v5410_v46  ;;  %v1234_v32 = vpop.f32.mrb[41].mxu0  ;;  %3597 = vrcp.f32 %v1901_v33  ;;  %v5415_v30 = vadd.f32 %v1232_v35, %v5210_v40  ;;  %v5420_v5 = vadd.f32 %v1121_v54, %v5212_v14  ;;  %v6427_v54 = vsel %vm4789_vm2, %v5314_v9, %v4396_v42 }
 0x218   :  { %v1123_v59 = vpop.f32.mrb[42].mxu1  ;;  %v3578_v37 = vpop.eup %3577  ;;  %v1902_v61 = vadd.f32 1.0, %v3576_v51  ;;  %3599 = vrcp.f32 %v1903_v13  ;;  %v5427_v35 = vadd.f32 %v1234_v32, %v5214_v8  ;;  %v3015_v13 = vsel %vm2932_vm7, %v5377_v34, %v6427_v54 }
 0x219   :  { %6426 = vst [vmem:[#allocation15_spill] sm:$0xff] %v5415_v30  ;;  %v1236_v47 = vpop.f32.mrb[42].mxu0  ;;  %v3037_v45 = vpop.permute.xlu1 %3036  ;;  %v1904_v18 = vadd.f32 1.0, %v3578_v37  ;;  %v5440_v4 = vadd.f32 %v1123_v59, %v5208_v10  ;;  %v6428_v59 = vsel %vm4789_vm2, %v5283_v52, %v4398_v43  ;;  %v3327_v43 = vmul.f32 -1.442695, %v1213_v28 }
 0x21a   :  { %v3580_v25 = vpop.eup %3579  ;;  %v1125_v16 = vpop.f32.mrb[43].mxu1  ;;  %3601 = vrcp.f32 %v1902_v61  ;;  %v5448_v32 = vadd.f32 %v1236_v47, %v5210_v40  ;;  %v3114_v42 = vsel %vm3031_vm8, %v3037_v45, %v3015_v13  ;;  %v3023_v47 = vsel %vm2932_vm7, %v5390_v44, %v6428_v59 }
 0x21b   :  { %v1238_v46 = vpop.f32.mrb[43].mxu0  ;;  %v3582_v33 = vpop.eup %3581  ;;  %v1909_v51 = vadd.f32 1.0, %v3580_v25  ;;  %3603 = vrcp.f32 %v1904_v18  ;;  %v1104_v18 = vadd.f32 %v5291_v3, %v5208_v10  ;;  %v3133_v3 = vsel %vm3130_vm9, %v5230_v38, %v3114_v42 }
 0x21c   :  { %v5429_v30 = vpop.permute.xlu0 %3041  ;;  %v3584_v37 = vpop.eup %3583  ;;  %v1911_v56 = vadd.f32 1.0, %v3582_v33  ;;  %v5467_v45 = vadd.f32 %v1125_v16, %v5212_v14  ;;  %3149 = vst [vmem:[%s6396_s9] sm:$0xff] %v3133_v3  ;;  %v5477_v52 = vadd.f32 %v1238_v46, %v5214_v8 }
 0x21d   :  { %v3586_v61 = vpop.eup %3585  ;;  %2271 = vst [vmem:[%s6397_s10 + $0xd0] sm:$0xff] %v3584_v37  ;;  %3605 = vrcp.f32 %v1909_v51  ;;  %v3077_v9 = vpop.permute.xlu1 %3076 }
 0x21e   :  { %v3588_v34 = vpop.eup %3587  ;;  %2270 = vst [vmem:[%s6397_s10 + $0xc8] sm:$0xff] %v3586_v61  ;;  %3607 = vrcp.f32 %v1911_v56  ;;  %v1129_v25 = vpop.f32.mrb[44].mxu1  ;;  %v3122_v16 = vsel %vm3031_vm8, %v3077_v9, %v3023_v47 }
 0x21f   :  { %v3590_v33 = vpop.eup %3589  ;;  %2272 = vst [vmem:[%s6397_s10 + $0xd8] sm:$0xff] %v3588_v34  ;;  %3609 = vpow2.f32 %v5343_v49  ;;  %v1242_v38 = vpop.f32.mrb[44].mxu0  ;;  %v6429_v49 = vsel %vm4789_vm2, %v5294_v50, %v4416_v55  ;;  %v3141_v46 = vsel %vm3130_vm9, 0.0, %v3122_v16  ;;  %v5496_v37 = vadd.f32 %v1129_v25, %v5208_v10 }
 0x220   :  { %v3082_v44 = vpop.permute.xlu0 %3081  ;;  %v3592_v51 = vpop.eup %3591  ;;  %2277 = vst [vmem:[%s6397_s10 + $0x100] sm:$0xff] %v3590_v33  ;;  %3611 = vpow2.f32 %v5373_v1  ;;  %v3024_v28 = vsel %vm2932_vm7, %v5402_v36, %v6429_v49  ;;  %v3326_v55 = vmul.f32 -1.442695, %v1102_v63  ;;  %3157 = vst [vmem:[%s6396_s9 + $0x40] sm:$0xff] %v3141_v46  ;;  %v5506_v50 = vadd.f32 %v1242_v38, %v5210_v40 }
 0x221   :  { %v1131_v56 = vpop.f32.mrb[45].mxu1  ;;  %v1244_v54 = vpop.f32.mrb[45].mxu0  ;;  %2279 = vst [vmem:[%s6397_s10 + $0x110] sm:$0xff] %v3592_v51  ;;  %3613 = vpow2.f32 %v5380_v6  ;;  %v3123_v1 = vsel %vm3031_vm8, %v3082_v44, %v3024_v28  ;;  %v1217_v6 = vadd.f32 %v5300_v23, %v5210_v40  ;;  %v6430_v16 = vsel %vm4789_vm2, %v5305_v58, %v4413_v53 }
 0x222   :  { %v3594_v13 = vpop.eup %3593  ;;  %v1133_v36 = vpop.f32.mrb[46].mxu1  ;;  %3615 = vpow2.f32 %v5385_v11  ;;  %v3142_v63 = vsel %vm3130_vm9, 0.0, %v3123_v1  ;;  %v5519_v9 = vadd.f32 %v1131_v56, %v5212_v14  ;;  %v1106_v11 = vadd.f32 %v5302_v57, %v5212_v14 }
 0x223   :  { %v1246_v61 = vpop.f32.mrb[46].mxu0  ;;  %v3596_v42 = vpop.eup %3595  ;;  %2278 = vst [vmem:[%s6397_s10 + $0x108] sm:$0xff] %v3594_v13  ;;  %3617 = vpow2.f32 %v5392_v41  ;;  %3158 = vst [vmem:[%s6396_s9 + $0x48] sm:$0xff] %v3142_v63  ;;  %v5531_v23 = vadd.f32 %v1244_v54, %v5214_v8  ;;  %v5534_v3 = vadd.f32 %v1133_v36, %v5208_v10  ;;  %v3328_v57 = vmul.f32 -1.442695, %v5424_v24 }
 0x224   :  { %v2943_v34 = vpop.permute.xlu1 %2942  ;;  %v1135_v59 = vpop.f32.mrb[47].mxu1  ;;  %2280 = vst [vmem:[%s6397_s10 + $0x118] sm:$0xff] %v3596_v42  ;;  %3619 = vpow2.f32 %v5404_v15  ;;  %v5542_v41 = vadd.f32 %v1246_v61, %v5210_v40  ;;  %v3333_v15 = vmul.f32 -1.442695, %v1104_v18  ;;  %v3335_v53 = vmul.f32 -1.442695, %v1217_v6 }
 0x225   :  { %v3598_v47 = vpop.eup %3597  ;;  %v1248_v25 = vpop.f32.mrb[47].mxu0  ;;  %v3016_v10 = vsel %vm2932_vm7, %v2943_v34, %v6430_v16  ;;  %3621 = vpow2.f32 %v5417_v62  ;;  %v5564_v44 = vadd.f32 %v1135_v59, %v5212_v14  ;;  %v2900_v36 = vmul.f32 0.0, %v4459_v19 }
 0x226   :  { %v3600_v33 = vpop.eup %3599  ;;  %2285 = vst [vmem:[%s6397_s10 + $0x140] sm:$0xff] %v3598_v47  ;;  %v3115_v40 = vsel %vm3031_vm8, %v5429_v30, %v3016_v10  ;;  %3623 = vpow2.f32 %v3327_v43  ;;  %v5566_v62 = vpop.f32.mrb[48].mxu1  ;;  %v3334_v30 = vmul.f32 -1.442695, %v1106_v11  ;;  %v5575_v43 = vadd.f32 %v1248_v25, %v5214_v8 }
 0x227   :  { %v3602_v38 = vpop.eup %3601  ;;  %2287 = vst [vmem:[%s6397_s10 + $0x150] sm:$0xff] %v3600_v33  ;;  %v3134_v58 = vsel %vm3130_vm9, 0.0, %v3115_v40  ;;  %3625 = vpow2.f32 %v3326_v55  ;;  %v5577_v49 = vpop.f32.mrb[48].mxu0 }
 0x228   :  { %v3604_v24 = vpop.eup %3603  ;;  %2286 = vst [vmem:[%s6397_s10 + $0x148] sm:$0xff] %v3602_v38  ;;  %v2948_v51 = vpop.permute.xlu1 %2947  ;;  %3150 = vst [vmem:[%s6396_s9 + $0x8] sm:$0xff] %v3134_v58  ;;  %3627 = vpow2.f32 %v3328_v57  ;;  %v2901_v57 = vmul.f32 0.0, %v4475_v48  ;;  %v2918_v38 = vsel %vm4789_vm2, %v2900_v36, %v4459_v19 }
 0x229   :  { %v3606_v18 = vpop.eup %3605  ;;  %2288 = vst [vmem:[%s6397_s10 + $0x158] sm:$0xff] %v3604_v24  ;;  %v2953_v14 = vpop.permute.xlu0 %2952  ;;  %3629 = vpow2.f32 %v3333_v15  ;;  %v3017_v58 = vsel %vm2932_vm7, %v2948_v51, %v2918_v38 }
 0x22a   :  { %v3608_v28 = vpop.eup %3607  ;;  %2293 = vst [vmem:[%s6397_s10 + $0x180] sm:$0xff] %v3606_v18  ;;  %v5582_v46 = vpop.f32.mrb[49].mxu1  ;;  %3631 = vpow2.f32 %v3335_v53  ;;  %v2919_v51 = vsel %vm4789_vm2, %v2901_v57, %v4475_v48 }
 0x22b   :  { %v5584_v56 = vpop.f32.mrb[49].mxu0  ;;  %v3610_v54 = vpop.eup %3609  ;;  %2295 = vst [vmem:[%s6397_s10 + $0x190] sm:$0xff] %v3608_v28  ;;  %3633 = vpow2.f32 %v3334_v30 }
 0x22c   :  { %v5589_v8 = vpop.f32.mrb[50].mxu1  ;;  %v5591_v13 = vpop.f32.mrb[50].mxu0  ;;  %v1910_v1 = vadd.f32 1.0, %v3610_v54 }
 0x22d   :  { %v3612_v55 = vpop.eup %3611  ;;  %v5594_v61 = vpop.permute.xlu1 %2987 }
 0x22e   :  { %v5596_v42 = vpop.f32.mrb[51].mxu1  ;;  %v3614_v6 = vpop.eup %3613  ;;  %v1912_v63 = vadd.f32 1.0, %v3612_v55  ;;  %3635 = vrcp.f32 %v1910_v1  ;;  %v2908_v55 = vmul.f32 0.0, %v4463_v22 }
 0x22f   :  { %v5598_v34 = vpop.f32.mrb[51].mxu0  ;;  %v5600_v59 = vpop.permute.xlu0 %2992  ;;  %v1917_v11 = vadd.f32 1.0, %v3614_v6 }
 0x230   :  { %v3616_v47 = vpop.eup %3615  ;;  %3637 = vrcp.f32 %v1912_v63  ;;  %v5606_v40 = vpop.f32.mrb[52].mxu1 }
 0x231   :  { %v3618_v25 = vpop.eup %3617  ;;  %v1919_v33 = vadd.f32 1.0, %v3616_v47  ;;  %3639 = vrcp.f32 %v1917_v11  ;;  %v3047_v15 = vpop.permute.xlu1 %3046 }
 0x232   :  { %v3620_v16 = vpop.eup %3619  ;;  %v1918_v10 = vadd.f32 1.0, %v3618_v25  ;;  %v5610_v18 = vpop.f32.mrb[52].mxu0  ;;  %v3116_v19 = vsel %vm3031_vm8, %v3047_v15, %v3017_v58 }
 0x233   :  { %v3622_v24 = vpop.eup %3621  ;;  %3641 = vrcp.f32 %v1919_v33  ;;  %v1920_v53 = vadd.f32 1.0, %v3620_v16  ;;  %v3052_v30 = vpop.permute.xlu0 %3051  ;;  %v3135_v47 = vsel %vm3130_vm9, 0.0, %v3116_v19 }
 0x234   :  { %v3624_v28 = vpop.eup %3623  ;;  %3643 = vrcp.f32 %v1918_v10  ;;  %v1925_v54 = vadd.f32 1.0, %v3622_v24  ;;  %v5615_v1 = vpop.f32.mrb[53].mxu1  ;;  %v3018_v10 = vsel %vm2932_vm7, %v2953_v14, %v2919_v51  ;;  %3151 = vst [vmem:[%s6396_s9 + $0x10] sm:$0xff] %v3135_v47  ;;  %v2926_v14 = vsel %vm4789_vm2, %v2908_v55, %v4463_v22 }
 0x235   :  { %v5617_v36 = vpop.f32.mrb[53].mxu0  ;;  %v3626_v6 = vpop.eup %3625  ;;  %3645 = vrcp.f32 %v1920_v53  ;;  %v1927_v63 = vadd.f32 1.0, %v3624_v28  ;;  %v3117_v24 = vsel %vm3031_vm8, %v3052_v30, %v3018_v10  ;;  %v3025_v22 = vsel %vm2932_vm7, %v5594_v61, %v2926_v14 }
 0x236   :  { %v5624_v11 = vpop.f32.mrb[54].mxu1  ;;  %v5626_v25 = vpop.f32.mrb[54].mxu0  ;;  %3647 = vrcp.f32 %v1925_v54  ;;  %v1926_v16 = vadd.f32 1.0, %v3626_v6  ;;  %v2909_v54 = vmul.f32 0.0, %v4478_v60  ;;  %v3136_v51 = vsel %vm3130_vm9, 0.0, %v3117_v24 }
 0x237   :  { %v3628_v33 = vpop.eup %3627  ;;  %v3087_v38 = vpop.permute.xlu1 %3086  ;;  %3649 = vrcp.f32 %v1927_v63  ;;  %v3336_v63 = vmul.f32 -1.442695, %v5323_v20  ;;  %3152 = vst [vmem:[%s6396_s9 + $0x18] sm:$0xff] %v3136_v51 }
 0x238   :  { %v5633_v15 = vpop.f32.mrb[55].mxu1  ;;  %v3630_v48 = vpop.eup %3629  ;;  %v1928_v57 = vadd.f32 1.0, %v3628_v33  ;;  %3651 = vrcp.f32 %v1926_v16  ;;  %v3341_v16 = vmul.f32 -1.442695, %v5359_v29  ;;  %v3343_v29 = vmul.f32 -1.442695, %v5362_v0 }
 0x239   :  { %v5637_v53 = vpop.f32.mrb[55].mxu0  ;;  %v3632_v58 = vpop.eup %3631  ;;  %v1933_v28 = vadd.f32 1.0, %v3630_v48  ;;  %v3124_v48 = vsel %vm3031_vm8, %v3087_v38, %v3025_v22 }
 0x23a   :  { %v3634_v19 = vpop.eup %3633  ;;  %3653 = vrcp.f32 %v1928_v57  ;;  %v1935_v6 = vadd.f32 1.0, %v3632_v58  ;;  %v3092_v30 = vpop.permute.xlu0 %3091  ;;  %v3342_v58 = vmul.f32 -1.442695, %v5365_v7  ;;  %v3143_v0 = vsel %vm3130_vm9, 0.0, %v3124_v48 }
 0x23b   :  { %v3636_v47 = vpop.eup %3635  ;;  %3655 = vrcp.f32 %v1933_v28  ;;  %v1934_v33 = vadd.f32 1.0, %v3634_v19  ;;  %v5653_v55 = vpop.f32.mrb[56].mxu1  ;;  %v2927_v28 = vsel %vm4789_vm2, %v2909_v54, %v4478_v60  ;;  %v3344_v19 = vmul.f32 -1.442695, %v5370_v12  ;;  %3159 = vst [vmem:[%s6396_s9 + $0x50] sm:$0xff] %v3143_v0 }
 0x23c   :  { %v5655_v20 = vpop.permute.xlu1 %2957  ;;  %v3638_v10 = vpop.eup %3637  ;;  %2294 = vst [vmem:[%s6397_s10 + $0x188] sm:$0xff] %v3636_v47  ;;  %3657 = vrcp.f32 %v1935_v6  ;;  %v3026_v7 = vsel %vm2932_vm7, %v5600_v59, %v2927_v28  ;;  %v3349_v12 = vmul.f32 -1.442695, %v5383_v31  ;;  %v3352_v48 = vmul.f32 -1.442695, %v5400_v2 }
 0x23d   :  { %v5663_v61 = vpop.f32.mrb[56].mxu0  ;;  %v5665_v57 = vpop.f32.mrb[57].mxu1  ;;  %2296 = vst [vmem:[%s6397_s10 + $0x198] sm:$0xff] %v3638_v10  ;;  %3659 = vrcp.f32 %v1934_v33  ;;  %v3351_v33 = vmul.f32 -1.442695, %v5388_v26  ;;  %v2902_v26 = vmul.f32 0.0, %v4519_v17 }
 0x23e   :  { %v3640_v24 = vpop.eup %3639  ;;  %v5676_v38 = vpop.f32.mrb[57].mxu0  ;;  %3661 = vpow2.f32 %v3336_v63  ;;  %v3125_v63 = vsel %vm3031_vm8, %v3092_v30, %v3026_v7  ;;  %v3350_v10 = vmul.f32 -1.442695, %v5395_v39  ;;  %v6434_v39 = vld [vmem:[#allocation14_spill] sm:$0xff]  ;;  %v6437_v7 = vld [vmem:[#allocation13_spill] sm:$0xff] }
 0x23f   :  { %v3642_v14 = vpop.eup %3641  ;;  %2301 = vst [vmem:[%s6397_s10 + $0x1c0] sm:$0xff] %v3640_v24  ;;  %v5688_v60 = vpop.f32.mrb[58].mxu1  ;;  %3663 = vpow2.f32 %v3341_v16  ;;  %v3144_v16 = vsel %vm3130_vm9, 0.0, %v3125_v63  ;;  %v683_v2 = vsub.s32 4, %v6437_v7 }
 0x240   :  { %v5690_v54 = vpop.f32.mrb[58].mxu0  ;;  %v3644_v6 = vpop.eup %3643  ;;  %2303 = vst [vmem:[%s6397_s10 + $0x1d0] sm:$0xff] %v3642_v14  ;;  %3665 = vpow2.f32 %v3343_v29  ;;  %3160 = vst [vmem:[%s6396_s9 + $0x58] sm:$0xff] %v3144_v16  ;;  %v6436_v14 = vld [vmem:[#allocation15_spill] sm:$0xff]  ;;  %v2920_v16 = vsel %vm4789_vm2, %v2902_v26, %v4519_v17  ;;  %v6441_v26 = vld [vmem:[#allocation5_spill] sm:$0xff] }
 0x241   :  { %6431 = vst [vmem:[#allocation16_spill] sm:$0xff] %v5690_v54  ;;  %v5698_v59 = vpop.f32.mrb[59].mxu1  ;;  %v5700_v51 = vpop.f32.mrb[59].mxu0  ;;  %2302 = vst [vmem:[%s6397_s10 + $0x1c8] sm:$0xff] %v3644_v6  ;;  %3667 = vpow2.f32 %v3342_v58  ;;  %v3357_v58 = vmul.f32 -1.442695, %v6434_v39 }
 0x242   :  { %6432 = vst [vmem:[#allocation17_spill] sm:$0xff] %v5698_v59  ;;  %6433 = vst [vmem:[#allocation18_spill] sm:$0xff] %v5700_v51  ;;  %v3646_v47 = vpop.eup %3645  ;;  %v5708_v22 = vpop.permute.xlu1 %2997  ;;  %3669 = vpow2.f32 %v3344_v19  ;;  %v3359_v19 = vmul.f32 -1.442695, %v6436_v14  ;;  %v6442_v14 = vld [vmem:[#allocation6_spill] sm:$0xff] }
 0x243   :  { %v5710_v31 = vpop.permute.xlu0 %2962  ;;  %v3648_v30 = vpop.eup %3647  ;;  %2304 = vst [vmem:[%s6397_s10 + $0x1d8] sm:$0xff] %v3646_v47  ;;  %3671 = vpow2.f32 %v3349_v12  ;;  %v3358_v12 = vmul.f32 -1.442695, %v5420_v5  ;;  %v3019_v5 = vsel %vm2932_vm7, %v5655_v20, %v2920_v16 }
 0x244   :  { %v3650_v29 = vpop.eup %3649  ;;  %2309 = vst [vmem:[%s6397_s10 + $0x200] sm:$0xff] %v3648_v30  ;;  %v5728_v28 = vpop.f32.mrb[60].mxu1  ;;  %3673 = vpow2.f32 %v3351_v33 }
 0x245   :  { %v3652_v24 = vpop.eup %3651  ;;  %2311 = vst [vmem:[%s6397_s10 + $0x210] sm:$0xff] %v3650_v29  ;;  %6435 = vst [vmem:[#allocation14_spill] sm:$0xff] %v5728_v28  ;;  %3675 = vpow2.f32 %v3350_v10  ;;  %v5744_v33 = vpop.f32.mrb[60].mxu0 }
 0x246   :  { %v3654_v0 = vpop.eup %3653  ;;  %2310 = vst [vmem:[%s6397_s10 + $0x208] sm:$0xff] %v3652_v24  ;;  %v3057_v6 = vpop.permute.xlu1 %3056  ;;  %6438 = vst [vmem:[#allocation15_spill] sm:$0xff] %v5744_v33  ;;  %3677 = vpow2.f32 %v3352_v48  ;;  %v3360_v24 = vmul.f32 -1.442695, %v5427_v35 }
 0x247   :  { %v5735_v63 = vpop.permute.xlu0 %3002  ;;  %v3656_v47 = vpop.eup %3655  ;;  %2312 = vst [vmem:[%s6397_s10 + $0x218] sm:$0xff] %v3654_v0  ;;  %3679 = vpow2.f32 %v3357_v58  ;;  %v2910_v0 = vmul.f32 0.0, %v6441_v26  ;;  %v3118_v35 = vsel %vm3031_vm8, %v3057_v6, %v3019_v5  ;;  %v5774_v58 = vld [vmem:[%s6393_s6] sm:$0xff] }
 0x248   :  { %v5746_v30 = vpop.f32.mrb[61].mxu1  ;;  %v3658_v29 = vpop.eup %3657  ;;  %2317 = vst [vmem:[%s6397_s10 + $0x240] sm:$0xff] %v3656_v47  ;;  %v2903_v47 = vmul.f32 0.0, %v6442_v14  ;;  %3681 = vpow2.f32 %v3359_v19  ;;  %v5777_v16 = vrot.slane %v5774_v58, %v683_v2  ;;  %v3137_v6 = vsel %vm3130_vm9, 0.0, %v3118_v35 }
 0x249   :  { %6439 = vst [vmem:[#allocation13_spill] sm:$0xff] %v5746_v30  ;;  %v5755_v10 = vpop.f32.mrb[61].mxu0  ;;  %v1319_v39 = vpop.f32.mrb[62].mxu1  ;;  %2319 = vst [vmem:[%s6397_s10 + $0x250] sm:$0xff] %v3658_v29  ;;  %v6445_v29 = vld [vmem:[#allocation7_spill] sm:$0xff]  ;;  %3683 = vpow2.f32 %v3358_v12 }
 0x24a   :  { %6440 = vst [vmem:[#allocation19_spill] sm:$0xff] %v5755_v10  ;;  %v3660_v17 = vpop.eup %3659  ;;  %v5764_v48 = vpop.f32.mrb[62].mxu0  ;;  %v2911_v5 = vmul.f32 0.0, %v6445_v29  ;;  %3153 = vst [vmem:[%s6396_s9 + $0x20] sm:$0xff] %v3137_v6  ;;  %3685 = vpow2.f32 %v3360_v24  ;;  %v5788_v2 = vadd.f32 %v1319_v39, %v5777_v16 }
 0x24b   :  { %6443 = vst [vmem:[#allocation5_spill] sm:$0xff] %v5764_v48  ;;  %v5766_v30 = vpop.f32.mrb[63].mxu1  ;;  %v3662_v20 = vpop.eup %3661  ;;  %2318 = vst [vmem:[%s6397_s10 + $0x248] sm:$0xff] %v3660_v17 }
 0x24c   :  { %6444 = vst [vmem:[#allocation6_spill] sm:$0xff] %v5766_v30  ;;  %v5782_v30 = vpop.f32.mrb[63].mxu0  ;;  %v3664_v48 = vpop.eup %3663  ;;  %v1936_v10 = vadd.f32 1.0, %v3662_v20  ;;  %6447 = vst [vmem:[#allocation20_spill] sm:$0xff] %v5788_v2  ;;  %v2929_v24 = vsel %vm4789_vm2, %v2911_v5, %v6445_v29 }
 0x24d   :  { %6446 = vst [vmem:[#allocation7_spill] sm:$0xff] %v5782_v30  ;;  %v3062_v19 = vpop.permute.xlu0 %3061  ;;  %v3666_v17 = vpop.eup %3665  ;;  %v1941_v33 = vadd.f32 1.0, %v3664_v48  ;;  %v2928_v30 = vsel %vm4789_vm2, %v2910_v0, %v6441_v26  ;;  %v2921_v48 = vsel %vm4789_vm2, %v2903_v47, %v6442_v14 }
 0x24e   :  { %v3668_v28 = vpop.eup %3667  ;;  %3687 = vrcp.f32 %v1936_v10  ;;  %v1943_v35 = vadd.f32 1.0, %v3666_v17  ;;  %v3097_v20 = vpop.permute.xlu1 %3096  ;;  %v3027_v26 = vsel %vm2932_vm7, %v5708_v22, %v2928_v30 }
 0x24f   :  { %v1325_v12 = vpop.f32.mrb[64].mxu1  ;;  %v3670_v51 = vpop.eup %3669  ;;  %3689 = vrcp.f32 %v1941_v33  ;;  %v1942_v59 = vadd.f32 1.0, %v3668_v28  ;;  %v3020_v28 = vsel %vm2932_vm7, %v5710_v31, %v2921_v48  ;;  %v3126_v29 = vsel %vm3031_vm8, %v3097_v20, %v3027_v26 }
 0x250   :  { %v5799_v39 = vpop.f32.mrb[64].mxu0  ;;  %v3672_v10 = vpop.eup %3671  ;;  %3691 = vrcp.f32 %v1943_v35  ;;  %v1944_v6 = vadd.f32 1.0, %v3670_v51  ;;  %v3119_v51 = vsel %vm3031_vm8, %v3062_v19, %v3020_v28  ;;  %v3028_v31 = vsel %vm2932_vm7, %v5735_v63, %v2929_v24 }
 0x251   :  { %6448 = vst [vmem:[#allocation21_spill] sm:$0xff] %v5799_v39  ;;  %v3102_v33 = vpop.permute.xlu0 %3101  ;;  %v5807_v0 = vpop.f32.mrb[65].mxu1  ;;  %3693 = vrcp.f32 %v1942_v59  ;;  %v1949_v47 = vadd.f32 1.0, %v3672_v10  ;;  %v3145_v59 = vsel %vm3130_vm9, 0.0, %v3126_v29  ;;  %v3138_v10 = vsel %vm3130_vm9, 0.0, %v3119_v51 }
 0x252   :  { %6449 = vst [vmem:[#allocation22_spill] sm:$0xff] %v5807_v0  ;;  %v3674_v14 = vpop.eup %3673  ;;  %v5813_v5 = vpop.f32.mrb[65].mxu0  ;;  %3695 = vrcp.f32 %v1944_v6  ;;  %3161 = vst [vmem:[%s6396_s9 + $0x60] sm:$0xff] %v3145_v59  ;;  %v5830_v6 = vadd.f32 %v1325_v12, %v5777_v16  ;;  %v6456_v59 = vld [vmem:[#allocation9_spill] sm:$0xff]  ;;  %v3367_v0 = vmul.f32 -1.442695, %v5448_v32 }
 0x253   :  { %6450 = vst [vmem:[#allocation23_spill] sm:$0xff] %v5813_v5  ;;  %v1329_v17 = vpop.f32.mrb[66].mxu1  ;;  %v3676_v22 = vpop.eup %3675  ;;  %v1951_v30 = vadd.f32 1.0, %v3674_v14  ;;  %3697 = vrcp.f32 %v1949_v47  ;;  %3154 = vst [vmem:[%s6396_s9 + $0x28] sm:$0xff] %v3138_v10  ;;  %v3127_v14 = vsel %vm3031_vm8, %v3102_v33, %v3028_v31  ;;  %v6455_v47 = vld [vmem:[#allocation8_spill] sm:$0xff]  ;;  %v687_v10 = vsub.s32 5, %v6437_v7 }
 0x254   :  { %v5820_v35 = vpop.f32.mrb[66].mxu0  ;;  %v5822_v48 = vpop.f32.mrb[67].mxu1  ;;  %v1950_v19 = vadd.f32 1.0, %v3676_v22  ;;  %6453 = vst [vmem:[#allocation26_spill] sm:$0xff] %v5830_v6  ;;  %v5842_v29 = vmul.f32 0.0, %v6455_v47  ;;  %v3146_v22 = vsel %vm3130_vm9, 0.0, %v3127_v14 }
 0x255   :  { %6451 = vst [vmem:[#allocation24_spill] sm:$0xff] %v5820_v35  ;;  %6452 = vst [vmem:[#allocation25_spill] sm:$0xff] %v5822_v48  ;;  %v3678_v20 = vpop.eup %3677  ;;  %v5832_v63 = vpop.f32.mrb[67].mxu0  ;;  %3699 = vrcp.f32 %v1951_v30  ;;  %v6457_v31 = vld [vmem:[#allocation10_spill] sm:$0xff]  ;;  %v3365_v35 = vmul.f32 -1.442695, %v5440_v4 }
 0x256   :  { %6454 = vst [vmem:[#allocation27_spill] sm:$0xff] %v5832_v63  ;;  %v5834_v24 = vpop.permute.xlu1 %2967  ;;  %v3680_v26 = vpop.eup %3679  ;;  %v1952_v28 = vadd.f32 1.0, %v3678_v20  ;;  %3701 = vrcp.f32 %v1950_v19  ;;  %v5847_v63 = vmul.f32 0.0, %v6456_v59  ;;  %3162 = vst [vmem:[%s6396_s9 + $0x68] sm:$0xff] %v3146_v22  ;;  %v5854_v48 = vmul.f32 0.0, %v6457_v31 }
 0x257   :  { %v3682_v51 = vpop.eup %3681  ;;  %v1957_v12 = vadd.f32 1.0, %v3680_v26  ;;  %v1335_v33 = vpop.f32.mrb[68].mxu1  ;;  %v695_v39 = vsub.s32 7, %v6437_v7  ;;  %v3366_v4 = vmul.f32 -1.442695, %v5467_v45 }
 0x258   :  { %v3684_v30 = vpop.eup %3683  ;;  %3703 = vrcp.f32 %v1952_v28  ;;  %v1959_v20 = vadd.f32 1.0, %v3682_v51  ;;  %v5856_v19 = vpop.permute.xlu0 %2972  ;;  %v5860_v28 = vadd.f32 %v1329_v17, %v5777_v16  ;;  %v2922_v17 = vsel %vm4789_vm2, %v5842_v29, %v6455_v47 }
 0x259   :  { %v3686_v26 = vpop.eup %3685  ;;  %3705 = vrcp.f32 %v1957_v12  ;;  %v1958_v14 = vadd.f32 1.0, %v3684_v30  ;;  %v5862_v51 = vpop.f32.mrb[68].mxu0  ;;  %v2930_v45 = vsel %vm4789_vm2, %v5847_v63, %v6456_v59  ;;  %v5898_v63 = vadd.f32 %v1335_v33, %v5777_v16 }
 0x25a   :  { %v5864_v6 = vpop.permute.xlu1 %3007  ;;  %v3688_v5 = vpop.eup %3687  ;;  %3707 = vrcp.f32 %v1959_v20  ;;  %v1960_v22 = vadd.f32 1.0, %v3686_v26  ;;  %v3368_v26 = vmul.f32 -1.442695, %v5477_v52  ;;  %v3373_v52 = vmul.f32 -1.442695, %v5496_v37 }
 0x25b   :  { %v1337_v2 = vpop.f32.mrb[69].mxu1  ;;  %v1450_v54 = vpop.f32.mrb[69].mxu0  ;;  %2320 = vst [vmem:[%s6397_s10 + $0x258] sm:$0xff] %v3688_v5  ;;  %3709 = vrcp.f32 %v1958_v14  ;;  %v2923_v5 = vsel %vm4789_vm2, %v5854_v48, %v6457_v31  ;;  %v3375_v31 = vmul.f32 -1.442695, %v5506_v50  ;;  %v5908_v37 = vrot.slane %v5774_v58, %v695_v39 }
 0x25c   :  { %v3690_v12 = vpop.eup %3689  ;;  %v1339_v30 = vpop.f32.mrb[70].mxu1  ;;  %3711 = vrcp.f32 %v1960_v22  ;;  %v5895_v22 = vrot.slane %v5774_v58, %v687_v10  ;;  %v3374_v33 = vmul.f32 -1.442695, %v5519_v9  ;;  %v3381_v50 = vmul.f32 -1.442695, %v5534_v3 }
 0x25d   :  { %v5876_v20 = vpop.f32.mrb[70].mxu0  ;;  %v3692_v32 = vpop.eup %3691  ;;  %2325 = vst [vmem:[%s6397_s10 + $0x280] sm:$0xff] %v3690_v12  ;;  %3713 = vpow2.f32 %v3365_v35  ;;  %v691_v35 = vsub.s32 6, %v6437_v7  ;;  %v5923_v39 = vadd.f32 %v1450_v54, %v5908_v37 }
 0x25e   :  { %v1341_v47 = vpop.f32.mrb[71].mxu1  ;;  %v1454_v29 = vpop.f32.mrb[71].mxu0  ;;  %2327 = vst [vmem:[%s6397_s10 + $0x290] sm:$0xff] %v3692_v32  ;;  %3715 = vpow2.f32 %v3367_v0  ;;  %v3376_v32 = vmul.f32 -1.442695, %v5531_v23  ;;  %v1286_v23 = vadd.f32 %v5566_v62, %v5777_v16  ;;  %v3021_v62 = vsel %vm2932_vm7, %v5834_v24, %v2922_v17 }
 0x25f   :  { %v3694_v14 = vpop.eup %3693  ;;  %v3067_v59 = vpop.permute.xlu1 %3066  ;;  %3717 = vpow2.f32 %v3366_v4  ;;  %v5926_v4 = vadd.f32 %v1339_v30, %v5777_v16  ;;  %v5937_v3 = vadd.f32 %v1454_v29, %v5908_v37  ;;  %v3022_v17 = vsel %vm2932_vm7, %v5856_v19, %v2923_v5 }
 0x260   :  { %v5900_v12 = vpop.permute.xlu0 %3012  ;;  %v3696_v48 = vpop.eup %3695  ;;  %2326 = vst [vmem:[%s6397_s10 + $0x288] sm:$0xff] %v3694_v14  ;;  %v5916_v14 = vadd.f32 %v1337_v2, %v5895_v22  ;;  %3719 = vpow2.f32 %v3368_v26  ;;  %v5934_v2 = vadd.f32 %v1341_v47, %v5895_v22  ;;  %v3383_v26 = vmul.f32 -1.442695, %v5542_v41 }
 0x261   :  { %v3698_v10 = vpop.eup %3697  ;;  %2328 = vst [vmem:[%s6397_s10 + $0x298] sm:$0xff] %v3696_v48  ;;  %v1345_v9 = vpop.f32.mrb[72].mxu1  ;;  %3721 = vpow2.f32 %v3373_v52  ;;  %v3382_v52 = vmul.f32 -1.442695, %v5564_v44  ;;  %v3029_v41 = vsel %vm2932_vm7, %v5864_v6, %v2930_v45  ;;  %v3120_v44 = vsel %vm3031_vm8, %v3067_v59, %v3021_v62 }
 0x262   :  { %v3700_v0 = vpop.eup %3699  ;;  %2333 = vst [vmem:[%s6397_s10 + $0x2c0] sm:$0xff] %v3698_v10  ;;  %v5939_v54 = vpop.f32.mrb[72].mxu0  ;;  %3723 = vpow2.f32 %v3375_v31  ;;  %v5967_v6 = vadd.f32 %v1345_v9, %v5777_v16 }
 0x263   :  { %v3702_v48 = vpop.eup %3701  ;;  %2335 = vst [vmem:[%s6397_s10 + $0x2d0] sm:$0xff] %v3700_v0  ;;  %v3107_v47 = vpop.permute.xlu1 %3106  ;;  %3725 = vpow2.f32 %v3374_v33  ;;  %v3384_v0 = vmul.f32 -1.442695, %v5575_v43  ;;  %v3139_v43 = vsel %vm3130_vm9, 0.0, %v3120_v44 }
 0x264   :  { %v3704_v30 = vpop.eup %3703  ;;  %2334 = vst [vmem:[%s6397_s10 + $0x2c8] sm:$0xff] %v3702_v48  ;;  %v3072_v10 = vpop.permute.xlu0 %3071  ;;  %3727 = vpow2.f32 %v3376_v32  ;;  %v3265_v32 = vmul.f32 -1.442695, %v1286_v23  ;;  %3155 = vst [vmem:[%s6396_s9 + $0x30] sm:$0xff] %v3139_v43  ;;  %v3128_v19 = vsel %vm3031_vm8, %v3107_v47, %v3029_v41  ;;  %v6009_v43 = vrot.slane %v5774_v58, %v691_v35 }
 0x265   :  { %v3706_v29 = vpop.eup %3705  ;;  %2336 = vst [vmem:[%s6397_s10 + $0x2d8] sm:$0xff] %v3704_v30  ;;  %v1347_v31 = vpop.f32.mrb[73].mxu1  ;;  %3729 = vpow2.f32 %v3381_v50  ;;  %v3121_v5 = vsel %vm3031_vm8, %v3072_v10, %v3022_v17  ;;  %v3147_v50 = vsel %vm3130_vm9, 0.0, %v3128_v19 }
 0x266   :  { %v1460_v48 = vpop.f32.mrb[73].mxu0  ;;  %v3708_v24 = vpop.eup %3707  ;;  %2341 = vst [vmem:[%s6397_s10 + $0x300] sm:$0xff] %v3706_v29  ;;  %3731 = vpow2.f32 %v3383_v26  ;;  %v3140_v23 = vsel %vm3130_vm9, 0.0, %v3121_v5  ;;  %3163 = vst [vmem:[%s6396_s9 + $0x70] sm:$0xff] %v3147_v50  ;;  %v5998_v26 = vadd.f32 %v1347_v31, %v5895_v22 }
 0x267   :  { %v1349_v45 = vpop.f32.mrb[74].mxu1  ;;  %v5969_v59 = vpop.f32.mrb[74].mxu0  ;;  %2343 = vst [vmem:[%s6397_s10 + $0x310] sm:$0xff] %v3708_v24  ;;  %3733 = vpow2.f32 %v3382_v52  ;;  %3156 = vst [vmem:[%s6396_s9 + $0x38] sm:$0xff] %v3140_v23  ;;  %v6001_v47 = vadd.f32 %v1460_v48, %v5908_v37 }
 0x268   :  { %v3710_v33 = vpop.eup %3709  ;;  %v1351_v9 = vpop.f32.mrb[75].mxu1  ;;  %3735 = vpow2.f32 %v3384_v0  ;;  %v6004_v44 = vadd.f32 %v1349_v45, %v5777_v16  ;;  %v6458_v0 = vld [vmem:[#allocation12_spill] sm:$0xff]  ;;  %v6459_v45 = vld [vmem:[#allocation11_spill] sm:$0xff] }
 0x269   :  { %v1464_v30 = vpop.f32.mrb[75].mxu0  ;;  %v3712_v62 = vpop.eup %3711  ;;  %2342 = vst [vmem:[%s6397_s10 + $0x308] sm:$0xff] %v3710_v33  ;;  %3737 = vpow2.f32 %v3265_v32  ;;  %v6460_v5 = vsel %vm4789_vm2, %v6458_v0, %v6459_v45  ;;  %v6022_v35 = vadd.f32 %v1351_v9, %v5895_v22 }
 0x26a   :  { %v3714_v29 = vpop.eup %3713  ;;  %2344 = vst [vmem:[%s6397_s10 + $0x318] sm:$0xff] %v3712_v62  ;;  %v1355_v52 = vpop.f32.mrb[76].mxu1  ;;  %v3030_v32 = vsel %vm2932_vm7, %v5900_v12, %v6460_v5  ;;  %v6025_v50 = vadd.f32 %v1464_v30, %v5908_v37  ;;  %v1399_v30 = vadd.f32 %v5577_v49, %v6009_v43  ;;  %v1288_v5 = vadd.f32 %v5582_v46, %v5895_v22 }
 0x26b   :  { %v3716_v10 = vpop.eup %3715  ;;  %v1965_v41 = vadd.f32 1.0, %v3714_v29  ;;  %v3112_v31 = vpop.permute.xlu0 %3111  ;;  %v6030_v12 = vadd.f32 %v1355_v52, %v5777_v16 }
 0x26c   :  { %v3718_v24 = vpop.eup %3717  ;;  %v1967_v17 = vadd.f32 1.0, %v3716_v10  ;;  %v6011_v33 = vpop.f32.mrb[76].mxu0 }
 0x26d   :  { %v3720_v48 = vpop.eup %3719  ;;  %3739 = vrcp.f32 %v1965_v41  ;;  %v1966_v19 = vadd.f32 1.0, %v3718_v24  ;;  %v1357_v62 = vpop.f32.mrb[77].mxu1  ;;  %v3129_v41 = vsel %vm3031_vm8, %v3112_v31, %v3030_v32 }
 0x26e   :  { %v3722_v7 = vpop.eup %3721  ;;  %3741 = vrcp.f32 %v1967_v17  ;;  %v1968_v58 = vadd.f32 1.0, %v3720_v48  ;;  %v1470_v23 = vpop.f32.mrb[77].mxu0  ;;  %v3148_v52 = vsel %vm3130_vm9, 0.0, %v3129_v41  ;;  %v3267_v41 = vmul.f32 -1.442695, %v1399_v30 }
 0x26f   :  { %v1359_v29 = vpop.f32.mrb[78].mxu1  ;;  %v3724_v27 = vpop.eup %3723  ;;  %3743 = vrcp.f32 %v1966_v19  ;;  %v1973_v10 = vadd.f32 1.0, %v3722_v7  ;;  %3164 = vst [vmem:[%s6396_s9 + $0x78] sm:$0xff] %v3148_v52  ;;  %v6044_v7 = vadd.f32 %v1357_v62, %v5895_v22 }
 0x270   :  { %v6032_v24 = vpop.f32.mrb[78].mxu0  ;;  %v1361_v17 = vpop.f32.mrb[79].mxu1  ;;  %3745 = vrcp.f32 %v1968_v58  ;;  %v1975_v9 = vadd.f32 1.0, %v3724_v27  ;;  %v6047_v27 = vadd.f32 %v1470_v23, %v5908_v37  ;;  %v6050_v46 = vadd.f32 %v1359_v29, %v5777_v16 }
 0x271   :  { %v3726_v48 = vpop.eup %3725  ;;  %v1474_v0 = vpop.f32.mrb[79].mxu0  ;;  %3747 = vrcp.f32 %v1973_v10  ;;  %v1403_v29 = vadd.f32 %v5591_v13, %v6009_v43  ;;  %v1405_v13 = vadd.f32 %v5598_v34, %v5908_v37  ;;  %v1409_v34 = vadd.f32 %v5610_v18, %v6009_v43 }
 0x272   :  { %v3728_v45 = vpop.eup %3727  ;;  %v1974_v19 = vadd.f32 1.0, %v3726_v48  ;;  %3749 = vrcp.f32 %v1975_v9  ;;  %v1401_v48 = vadd.f32 %v5584_v56, %v5908_v37  ;;  %v1292_v56 = vadd.f32 %v5596_v42, %v5895_v22 }
 0x273   :  { %v3730_v31 = vpop.eup %3729  ;;  %v1976_v32 = vadd.f32 1.0, %v3728_v45  ;;  %v3266_v45 = vmul.f32 -1.442695, %v1288_v5  ;;  %v6064_v5 = vadd.f32 %v1474_v0, %v5908_v37  ;;  %v1296_v0 = vadd.f32 %v5606_v40, %v5777_v16 }
 0x274   :  { %v3732_v49 = vpop.eup %3731  ;;  %3751 = vrcp.f32 %v1974_v19  ;;  %v1981_v58 = vadd.f32 1.0, %v3730_v31  ;;  %v1290_v19 = vadd.f32 %v5589_v8, %v5777_v16  ;;  %v6059_v31 = vadd.f32 %v1361_v17, %v5895_v22 }
 0x275   :  { %v3734_v21 = vpop.eup %3733  ;;  %3753 = vrcp.f32 %v1976_v32  ;;  %v1983_v10 = vadd.f32 1.0, %v3732_v49  ;;  %v3268_v8 = vmul.f32 -1.442695, %v1401_v48  ;;  %v3274_v48 = vmul.f32 -1.442695, %v1292_v56 }
 0x276   :  { %v3736_v9 = vpop.eup %3735  ;;  %3755 = vrcp.f32 %v1981_v58  ;;  %v1982_v62 = vadd.f32 1.0, %v3734_v21  ;;  %v3273_v42 = vmul.f32 -1.442695, %v1290_v19  ;;  %v3275_v21 = vmul.f32 -1.442695, %v1403_v29 }
 0x277   :  { %v3738_v52 = vpop.eup %3737  ;;  %3757 = vrcp.f32 %v1983_v10  ;;  %v1984_v23 = vadd.f32 1.0, %v3736_v9  ;;  %v1298_v40 = vadd.f32 %v5615_v1, %v5895_v22  ;;  %v1411_v18 = vadd.f32 %v5617_v36, %v5908_v37 }
 0x278   :  { %v3740_v30 = vpop.eup %3739  ;;  %3759 = vrcp.f32 %v1982_v62  ;;  %v1865_v32 = vadd.f32 1.0, %v3738_v52  ;;  %v1300_v1 = vadd.f32 %v5624_v11, %v5777_v16  ;;  %v3283_v52 = vmul.f32 -1.442695, %v1409_v34 }
 0x279   :  { %v3742_v49 = vpop.eup %3741  ;;  %2349 = vst [vmem:[%s6397_s10 + $0x340] sm:$0xff] %v3740_v30  ;;  %3761 = vrcp.f32 %v1984_v23  ;;  %v1413_v36 = vadd.f32 %v5626_v25, %v6009_v43  ;;  %v3282_v29 = vmul.f32 -1.442695, %v1298_v40  ;;  %v3284_v11 = vmul.f32 -1.442695, %v1411_v18 }
 0x27a   :  { %v3744_v17 = vpop.eup %3743  ;;  %2351 = vst [vmem:[%s6397_s10 + $0x350] sm:$0xff] %v3742_v49  ;;  %3763 = vrcp.f32 %v1865_v32  ;;  %v3289_v25 = vmul.f32 -1.442695, %v1300_v1 }
 0x27b   :  { %v3746_v58 = vpop.eup %3745  ;;  %2350 = vst [vmem:[%s6397_s10 + $0x348] sm:$0xff] %v3744_v17  ;;  %3765 = vpow2.f32 %v3267_v41  ;;  %v3276_v41 = vmul.f32 -1.442695, %v1405_v13  ;;  %v3291_v49 = vmul.f32 -1.442695, %v1413_v36 }
 0x27c   :  { %v3748_v10 = vpop.eup %3747  ;;  %2352 = vst [vmem:[%s6397_s10 + $0x358] sm:$0xff] %v3746_v58  ;;  %3767 = vpow2.f32 %v3266_v45  ;;  %v3281_v45 = vmul.f32 -1.442695, %v1296_v0 }
 0x27d   :  { %v3750_v9 = vpop.eup %3749  ;;  %2357 = vst [vmem:[%s6397_s10 + $0x380] sm:$0xff] %v3748_v10  ;;  %3769 = vpow2.f32 %v3268_v8 }
 0x27e   :  { %v3752_v62 = vpop.eup %3751  ;;  %2359 = vst [vmem:[%s6397_s10 + $0x390] sm:$0xff] %v3750_v9  ;;  %3771 = vpow2.f32 %v3273_v42 }
 0x27f   :  { %v3754_v19 = vpop.eup %3753  ;;  %2358 = vst [vmem:[%s6397_s10 + $0x388] sm:$0xff] %v3752_v62  ;;  %3773 = vpow2.f32 %v3275_v21 }
 0x280   :  { %v3756_v23 = vpop.eup %3755  ;;  %2360 = vst [vmem:[%s6397_s10 + $0x398] sm:$0xff] %v3754_v19  ;;  %3775 = vpow2.f32 %v3274_v48 }
 0x281   :  { %v3758_v30 = vpop.eup %3757  ;;  %2365 = vst [vmem:[%s6397_s10 + $0x3c0] sm:$0xff] %v3756_v23  ;;  %3777 = vpow2.f32 %v3276_v41 }
 0x282   :  { %v3760_v32 = vpop.eup %3759  ;;  %2367 = vst [vmem:[%s6397_s10 + $0x3d0] sm:$0xff] %v3758_v30  ;;  %3779 = vpow2.f32 %v3281_v45 }
 0x283   :  { %v3762_v56 = vpop.eup %3761  ;;  %2366 = vst [vmem:[%s6397_s10 + $0x3c8] sm:$0xff] %v3760_v32  ;;  %3781 = vpow2.f32 %v3283_v52  ;;  %v1302_v52 = vadd.f32 %v5633_v15, %v5895_v22  ;;  %v1306_v32 = vadd.f32 %v5653_v55, %v5777_v16  ;;  %v1421_v55 = vadd.f32 %v5676_v38, %v5908_v37 }
 0x284   :  { %v3764_v8 = vpop.eup %3763  ;;  %2368 = vst [vmem:[%s6397_s10 + $0x3d8] sm:$0xff] %v3762_v56  ;;  %3783 = vpow2.f32 %v3282_v29  ;;  %v1415_v29 = vadd.f32 %v5637_v53, %v5908_v37 }
 0x285   :  { %v3766_v13 = vpop.eup %3765  ;;  %2249 = vst [vmem:[%s6397_s10 + $0x20] sm:$0xff] %v3764_v8  ;;  %3785 = vpow2.f32 %v3284_v11 }
 0x286   :  { %v3768_v17 = vpop.eup %3767  ;;  %v1867_v42 = vadd.f32 1.0, %v3766_v13  ;;  %3787 = vpow2.f32 %v3289_v25  ;;  %v3290_v13 = vmul.f32 -1.442695, %v1302_v52  ;;  %v6464_v52 = vld [vmem:[#allocation14_spill] sm:$0xff] }
 0x287   :  { %v3770_v0 = vpop.eup %3769  ;;  %v1866_v58 = vadd.f32 1.0, %v3768_v17  ;;  %3789 = vpow2.f32 %v3291_v49  ;;  %v1419_v49 = vadd.f32 %v5663_v61, %v6009_v43  ;;  %v1308_v17 = vadd.f32 %v5665_v57, %v5895_v22 }
 0x288   :  { %v3772_v21 = vpop.eup %3771  ;;  %3791 = vrcp.f32 %v1867_v42  ;;  %v1868_v34 = vadd.f32 1.0, %v3770_v0  ;;  %v3292_v0 = vmul.f32 -1.442695, %v1415_v29  ;;  %v3297_v61 = vmul.f32 -1.442695, %v1306_v32 }
 0x289   :  { %v3774_v10 = vpop.eup %3773  ;;  %3793 = vrcp.f32 %v1866_v58  ;;  %v1873_v48 = vadd.f32 1.0, %v3772_v21  ;;  %v1310_v21 = vadd.f32 %v5688_v60, %v5777_v16  ;;  %v3299_v57 = vmul.f32 -1.442695, %v1419_v49 }
 0x28a   :  { %v3776_v40 = vpop.eup %3775  ;;  %3795 = vrcp.f32 %v1868_v34  ;;  %v1875_v9 = vadd.f32 1.0, %v3774_v10  ;;  %v6461_v10 = vld [vmem:[#allocation16_spill] sm:$0xff] }
 0x28b   :  { %v3778_v41 = vpop.eup %3777  ;;  %3797 = vrcp.f32 %v1873_v48  ;;  %v1874_v18 = vadd.f32 1.0, %v3776_v40  ;;  %v1423_v38 = vadd.f32 %v6461_v10, %v6009_v43  ;;  %v3298_v40 = vmul.f32 -1.442695, %v1308_v17 }
 0x28c   :  { %v3780_v62 = vpop.eup %3779  ;;  %3799 = vrcp.f32 %v1875_v9  ;;  %v1876_v45 = vadd.f32 1.0, %v3778_v41  ;;  %v6462_v9 = vld [vmem:[#allocation17_spill] sm:$0xff] }
 0x28d   :  { %v3782_v1 = vpop.eup %3781  ;;  %3801 = vrcp.f32 %v1874_v18  ;;  %v1881_v19 = vadd.f32 1.0, %v3780_v62  ;;  %v1312_v60 = vadd.f32 %v6462_v9, %v5895_v22  ;;  %v3300_v18 = vmul.f32 -1.442695, %v1421_v55  ;;  %v6463_v62 = vld [vmem:[#allocation18_spill] sm:$0xff] }
 0x28e   :  { %v3784_v36 = vpop.eup %3783  ;;  %3803 = vrcp.f32 %v1876_v45  ;;  %v1883_v23 = vadd.f32 1.0, %v3782_v1  ;;  %v1425_v45 = vadd.f32 %v6463_v62, %v5908_v37  ;;  %v3307_v29 = vmul.f32 -1.442695, %v1423_v38 }
 0x28f   :  { %v3786_v30 = vpop.eup %3785  ;;  %3805 = vrcp.f32 %v1881_v19  ;;  %v1882_v11 = vadd.f32 1.0, %v3784_v36  ;;  %v3305_v19 = vmul.f32 -1.442695, %v1310_v21  ;;  %v1316_v36 = vadd.f32 %v6464_v52, %v5777_v16  ;;  %v6467_v52 = vld [vmem:[#allocation19_spill] sm:$0xff] }
 0x290   :  { %v3788_v25 = vpop.eup %3787  ;;  %3807 = vrcp.f32 %v1883_v23  ;;  %v1884_v56 = vadd.f32 1.0, %v3786_v30  ;;  %v6465_v30 = vld [vmem:[#allocation15_spill] sm:$0xff] }
 0x291   :  { %v3790_v8 = vpop.eup %3789  ;;  %3809 = vrcp.f32 %v1882_v11  ;;  %v1889_v15 = vadd.f32 1.0, %v3788_v25  ;;  %v1429_v11 = vadd.f32 %v6465_v30, %v6009_v43  ;;  %v3306_v25 = vmul.f32 -1.442695, %v1312_v60 }
 0x292   :  { %v3792_v53 = vpop.eup %3791  ;;  %3811 = vrcp.f32 %v1884_v56  ;;  %v1891_v42 = vadd.f32 1.0, %v3790_v8  ;;  %v6466_v56 = vld [vmem:[#allocation13_spill] sm:$0xff]  ;;  %v3308_v8 = vmul.f32 -1.442695, %v1425_v45 }
 0x293   :  { %v3794_v58 = vpop.eup %3793  ;;  %2251 = vst [vmem:[%s6397_s10 + $0x30] sm:$0xff] %v3792_v53  ;;  %3813 = vrcp.f32 %v1889_v15  ;;  %v1318_v16 = vadd.f32 %v6466_v56, %v5895_v22  ;;  %v3315_v53 = vmul.f32 -1.442695, %v1429_v11 }
 0x294   :  { %v3796_v34 = vpop.eup %3795  ;;  %2250 = vst [vmem:[%s6397_s10 + $0x28] sm:$0xff] %v3794_v58  ;;  %3815 = vrcp.f32 %v1891_v42 }
 0x295   :  { %v3798_v48 = vpop.eup %3797  ;;  %2252 = vst [vmem:[%s6397_s10 + $0x38] sm:$0xff] %v3796_v34  ;;  %3817 = vpow2.f32 %v3290_v13  ;;  %v3313_v13 = vmul.f32 -1.442695, %v1316_v36  ;;  %v1431_v36 = vadd.f32 %v6467_v52, %v5908_v37 }
 0x296   :  { %v3800_v41 = vpop.eup %3799  ;;  %2257 = vst [vmem:[%s6397_s10 + $0x60] sm:$0xff] %v3798_v48  ;;  %3819 = vpow2.f32 %v3292_v0  ;;  %v3314_v0 = vmul.f32 -1.442695, %v1318_v16 }
 0x297   :  { %v3802_v1 = vpop.eup %3801  ;;  %2259 = vst [vmem:[%s6397_s10 + $0x70] sm:$0xff] %v3800_v41  ;;  %3821 = vpow2.f32 %v3297_v61 }
 0x298   :  { %v3804_v23 = vpop.eup %3803  ;;  %2258 = vst [vmem:[%s6397_s10 + $0x68] sm:$0xff] %v3802_v1  ;;  %3823 = vpow2.f32 %v3299_v57 }
 0x299   :  { %v3806_v32 = vpop.eup %3805  ;;  %2260 = vst [vmem:[%s6397_s10 + $0x78] sm:$0xff] %v3804_v23  ;;  %3825 = vpow2.f32 %v3298_v40 }
 0x29a   :  { %v3808_v49 = vpop.eup %3807  ;;  %2265 = vst [vmem:[%s6397_s10 + $0xa0] sm:$0xff] %v3806_v32  ;;  %3827 = vpow2.f32 %v3300_v18  ;;  %v6468_v32 = vld [vmem:[#allocation5_spill] sm:$0xff] }
 0x29b   :  { %v3810_v15 = vpop.eup %3809  ;;  %2267 = vst [vmem:[%s6397_s10 + $0xb0] sm:$0xff] %v3808_v49  ;;  %3829 = vpow2.f32 %v3305_v19  ;;  %v6469_v49 = vld [vmem:[#allocation6_spill] sm:$0xff] }
 0x29c   :  { %v3812_v17 = vpop.eup %3811  ;;  %2266 = vst [vmem:[%s6397_s10 + $0xa8] sm:$0xff] %v3810_v15  ;;  %3831 = vpow2.f32 %v3307_v29 }
 0x29d   :  { %v3814_v42 = vpop.eup %3813  ;;  %2268 = vst [vmem:[%s6397_s10 + $0xb8] sm:$0xff] %v3812_v17  ;;  %3833 = vpow2.f32 %v3306_v25  ;;  %v1433_v25 = vadd.f32 %v6468_v32, %v6009_v43  ;;  %v3316_v17 = vmul.f32 -1.442695, %v1431_v36  ;;  %v6477_v32 = vld [vmem:[#allocation25_spill] sm:$0xff] }
 0x29e   :  { %v3816_v55 = vpop.eup %3815  ;;  %2273 = vst [vmem:[%s6397_s10 + $0xe0] sm:$0xff] %v3814_v42  ;;  %3835 = vpow2.f32 %v3308_v8  ;;  %v1322_v8 = vadd.f32 %v6469_v49, %v5895_v22  ;;  %v6478_v49 = vld [vmem:[#allocation27_spill] sm:$0xff] }
 0x29f   :  { %v3818_v58 = vpop.eup %3817  ;;  %2275 = vst [vmem:[%s6397_s10 + $0xf0] sm:$0xff] %v3816_v55  ;;  %3837 = vpow2.f32 %v3313_v13 }
 0x2a0   :  { %v3820_v61 = vpop.eup %3819  ;;  %v1890_v21 = vadd.f32 1.0, %v3818_v58  ;;  %3839 = vpow2.f32 %v3315_v53  ;;  %v6470_v53 = vld [vmem:[#allocation7_spill] sm:$0xff]  ;;  %v6471_v58 = vld [vmem:[#allocation20_spill] sm:$0xff] }
 0x2a1   :  { %v3822_v34 = vpop.eup %3821  ;;  %v1892_v57 = vadd.f32 1.0, %v3820_v61  ;;  %3841 = vpow2.f32 %v3314_v0  ;;  %v1435_v42 = vadd.f32 %v6470_v53, %v5908_v37  ;;  %v3321_v61 = vmul.f32 -1.442695, %v6471_v58 }
 0x2a2   :  { %v3824_v10 = vpop.eup %3823  ;;  %3843 = vrcp.f32 %v1890_v21  ;;  %v1897_v38 = vadd.f32 1.0, %v3822_v34  ;;  %v3323_v34 = vmul.f32 -1.442695, %v1433_v25  ;;  %v1332_v25 = vadd.f32 %v6477_v32, %v5895_v22 }
 0x2a3   :  { %v3826_v48 = vpop.eup %3825  ;;  %3845 = vrcp.f32 %v1892_v57  ;;  %v1899_v40 = vadd.f32 1.0, %v3824_v10  ;;  %v6472_v57 = vld [vmem:[#allocation21_spill] sm:$0xff] }
 0x2a4   :  { %v3828_v9 = vpop.eup %3827  ;;  %3847 = vrcp.f32 %v1897_v38  ;;  %v1898_v60 = vadd.f32 1.0, %v3826_v48  ;;  %v1439_v10 = vadd.f32 %v6472_v57, %v6009_v43  ;;  %v3322_v48 = vmul.f32 -1.442695, %v1322_v8 }
 0x2a5   :  { %v3830_v41 = vpop.eup %3829  ;;  %3849 = vrcp.f32 %v1899_v40  ;;  %v1900_v18 = vadd.f32 1.0, %v3828_v9  ;;  %v6473_v40 = vld [vmem:[#allocation22_spill] sm:$0xff]  ;;  %v1445_v8 = vadd.f32 %v6478_v49, %v5908_v37 }
 0x2a6   :  { %v3832_v62 = vpop.eup %3831  ;;  %3851 = vrcp.f32 %v1898_v60  ;;  %v1905_v45 = vadd.f32 1.0, %v3830_v41  ;;  %v1328_v9 = vadd.f32 %v6473_v40, %v5895_v22  ;;  %v3324_v41 = vmul.f32 -1.442695, %v1435_v42 }
 0x2a7   :  { %v3834_v1 = vpop.eup %3833  ;;  %3853 = vrcp.f32 %v1900_v18  ;;  %v1907_v19 = vadd.f32 1.0, %v3832_v62  ;;  %v6474_v18 = vld [vmem:[#allocation23_spill] sm:$0xff]  ;;  %v3331_v36 = vmul.f32 -1.442695, %v1439_v10 }
 0x2a8   :  { %v3836_v23 = vpop.eup %3835  ;;  %3855 = vrcp.f32 %v1905_v45  ;;  %v1906_v29 = vadd.f32 1.0, %v3834_v1  ;;  %v1441_v62 = vadd.f32 %v6474_v18, %v5908_v37  ;;  %v6475_v1 = vld [vmem:[#allocation26_spill] sm:$0xff]  ;;  %v3338_v37 = vmul.f32 -1.442695, %v1332_v25 }
 0x2a9   :  { %v3838_v30 = vpop.eup %3837  ;;  %3857 = vrcp.f32 %v1907_v19  ;;  %v1908_v11 = vadd.f32 1.0, %v3836_v23  ;;  %v3329_v19 = vmul.f32 -1.442695, %v6475_v1  ;;  %v6476_v23 = vld [vmem:[#allocation24_spill] sm:$0xff] }
 0x2aa   :  { %v3840_v56 = vpop.eup %3839  ;;  %3859 = vrcp.f32 %v1906_v29  ;;  %v1913_v16 = vadd.f32 1.0, %v3838_v30  ;;  %v1443_v29 = vadd.f32 %v6476_v23, %v6009_v43 }
 0x2ab   :  { %v3842_v15 = vpop.eup %3841  ;;  %3861 = vrcp.f32 %v1908_v11  ;;  %v1915_v13 = vadd.f32 1.0, %v3840_v56  ;;  %v3330_v11 = vmul.f32 -1.442695, %v1328_v9 }
 0x2ac   :  { %v3844_v0 = vpop.eup %3843  ;;  %3863 = vrcp.f32 %v1913_v16  ;;  %v1914_v55 = vadd.f32 1.0, %v3842_v15  ;;  %v3332_v16 = vmul.f32 -1.442695, %v1441_v62  ;;  %v3339_v22 = vmul.f32 -1.442695, %v1443_v29 }
 0x2ad   :  { %v3846_v21 = vpop.eup %3845  ;;  %2274 = vst [vmem:[%s6397_s10 + $0xe8] sm:$0xff] %v3844_v0  ;;  %3865 = vrcp.f32 %v1915_v13  ;;  %v3337_v13 = vmul.f32 -1.442695, %v5860_v28  ;;  %v3340_v28 = vmul.f32 -1.442695, %v1445_v8 }
 0x2ae   :  { %v3848_v38 = vpop.eup %3847  ;;  %2276 = vst [vmem:[%s6397_s10 + $0xf8] sm:$0xff] %v3846_v21  ;;  %3867 = vrcp.f32 %v1914_v55 }
 0x2af   :  { %v3850_v60 = vpop.eup %3849  ;;  %2281 = vst [vmem:[%s6397_s10 + $0x120] sm:$0xff] %v3848_v38  ;;  %3869 = vpow2.f32 %v3316_v17 }
 0x2b0   :  { %v3852_v45 = vpop.eup %3851  ;;  %2283 = vst [vmem:[%s6397_s10 + $0x130] sm:$0xff] %v3850_v60  ;;  %3871 = vpow2.f32 %v3321_v61 }
 0x2b1   :  { %v3854_v52 = vpop.eup %3853  ;;  %2282 = vst [vmem:[%s6397_s10 + $0x128] sm:$0xff] %v3852_v45  ;;  %3873 = vpow2.f32 %v3323_v34 }
 0x2b2   :  { %v3856_v30 = vpop.eup %3855  ;;  %2284 = vst [vmem:[%s6397_s10 + $0x138] sm:$0xff] %v3854_v52  ;;  %3875 = vpow2.f32 %v3322_v48 }
 0x2b3   :  { %v3858_v56 = vpop.eup %3857  ;;  %2289 = vst [vmem:[%s6397_s10 + $0x160] sm:$0xff] %v3856_v30  ;;  %3877 = vpow2.f32 %v3324_v41 }
 0x2b4   :  { %v3860_v15 = vpop.eup %3859  ;;  %2291 = vst [vmem:[%s6397_s10 + $0x170] sm:$0xff] %v3858_v56  ;;  %3879 = vpow2.f32 %v3329_v19  ;;  %v3345_v56 = vmul.f32 -1.442695, %v5898_v63  ;;  %v3348_v63 = vmul.f32 -1.442695, %v5923_v39 }
 0x2b5   :  { %v3862_v17 = vpop.eup %3861  ;;  %2290 = vst [vmem:[%s6397_s10 + $0x168] sm:$0xff] %v3860_v15  ;;  %3881 = vpow2.f32 %v3331_v36  ;;  %v1449_v36 = vadd.f32 %v5862_v51, %v6009_v43  ;;  %v1453_v15 = vadd.f32 %v5876_v20, %v6009_v43  ;;  %v3346_v51 = vmul.f32 -1.442695, %v5916_v14 }
 0x2b6   :  { %v3864_v53 = vpop.eup %3863  ;;  %2292 = vst [vmem:[%s6397_s10 + $0x178] sm:$0xff] %v3862_v17  ;;  %3883 = vpow2.f32 %v3330_v11  ;;  %v3353_v20 = vmul.f32 -1.442695, %v5926_v4  ;;  %v3354_v39 = vmul.f32 -1.442695, %v5934_v2 }
 0x2b7   :  { %v3866_v42 = vpop.eup %3865  ;;  %2297 = vst [vmem:[%s6397_s10 + $0x1a0] sm:$0xff] %v3864_v53  ;;  %3885 = vpow2.f32 %v3332_v16  ;;  %v3347_v8 = vmul.f32 -1.442695, %v1449_v36  ;;  %v3355_v14 = vmul.f32 -1.442695, %v1453_v15  ;;  %v1469_v15 = vadd.f32 %v6011_v33, %v6009_v43 }
 0x2b8   :  { %v3868_v0 = vpop.eup %3867  ;;  %2299 = vst [vmem:[%s6397_s10 + $0x1b0] sm:$0xff] %v3866_v42  ;;  %3887 = vpow2.f32 %v3337_v13  ;;  %v3356_v4 = vmul.f32 -1.442695, %v5937_v3  ;;  %v3362_v3 = vmul.f32 -1.442695, %v5998_v26 }
 0x2b9   :  { %v3870_v55 = vpop.eup %3869  ;;  %2298 = vst [vmem:[%s6397_s10 + $0x1a8] sm:$0xff] %v3868_v0  ;;  %3889 = vpow2.f32 %v3339_v22  ;;  %v3377_v33 = vmul.f32 -1.442695, %v6030_v12  ;;  %v3380_v12 = vmul.f32 -1.442695, %v6047_v27 }
 0x2ba   :  { %v3872_v58 = vpop.eup %3871  ;;  %v1916_v61 = vadd.f32 1.0, %v3870_v55  ;;  %3891 = vpow2.f32 %v3338_v37  ;;  %v1459_v37 = vadd.f32 %v5939_v54, %v6009_v43  ;;  %v3361_v54 = vmul.f32 -1.442695, %v5967_v6 }
 0x2bb   :  { %v3874_v21 = vpop.eup %3873  ;;  %v1921_v34 = vadd.f32 1.0, %v3872_v58  ;;  %3893 = vpow2.f32 %v3340_v28  ;;  %v3364_v6 = vmul.f32 -1.442695, %v6001_v47  ;;  %v3386_v27 = vmul.f32 -1.442695, %v6059_v31 }
 0x2bc   :  { %v3876_v57 = vpop.eup %3875  ;;  %3895 = vrcp.f32 %v1916_v61  ;;  %v1923_v10 = vadd.f32 1.0, %v3874_v21  ;;  %v3363_v2 = vmul.f32 -1.442695, %v1459_v37 }
 0x2bd   :  { %v3878_v38 = vpop.eup %3877  ;;  %3897 = vrcp.f32 %v1921_v34  ;;  %v1922_v48 = vadd.f32 1.0, %v3876_v57  ;;  %v3369_v34 = vmul.f32 -1.442695, %v6004_v44 }
 0x2be   :  { %v3880_v40 = vpop.eup %3879  ;;  %3899 = vrcp.f32 %v1923_v10  ;;  %v1924_v9 = vadd.f32 1.0, %v3878_v38 }
 0x2bf   :  { %v3882_v60 = vpop.eup %3881  ;;  %3901 = vrcp.f32 %v1922_v48  ;;  %v1929_v41 = vadd.f32 1.0, %v3880_v40 }
 0x2c0   :  { %v3884_v18 = vpop.eup %3883  ;;  %3903 = vrcp.f32 %v1924_v9  ;;  %v1931_v62 = vadd.f32 1.0, %v3882_v60 }
 0x2c1   :  { %v3886_v45 = vpop.eup %3885  ;;  %3905 = vrcp.f32 %v1929_v41  ;;  %v1930_v1 = vadd.f32 1.0, %v3884_v18 }
 0x2c2   :  { %v3888_v19 = vpop.eup %3887  ;;  %3907 = vrcp.f32 %v1931_v62  ;;  %v1932_v52 = vadd.f32 1.0, %v3886_v45 }
 0x2c3   :  { %v3890_v23 = vpop.eup %3889  ;;  %3909 = vrcp.f32 %v1930_v1  ;;  %v1937_v29 = vadd.f32 1.0, %v3888_v19 }
 0x2c4   :  { %v3892_v30 = vpop.eup %3891  ;;  %3911 = vrcp.f32 %v1932_v52  ;;  %v1939_v11 = vadd.f32 1.0, %v3890_v23  ;;  %v1463_v23 = vadd.f32 %v5969_v59, %v6009_v43  ;;  %v3370_v59 = vmul.f32 -1.442695, %v6022_v35 }
 0x2c5   :  { %v3894_v32 = vpop.eup %3893  ;;  %3913 = vrcp.f32 %v1937_v29  ;;  %v1938_v25 = vadd.f32 1.0, %v3892_v30  ;;  %v3379_v35 = vmul.f32 -1.442695, %v1469_v15 }
 0x2c6   :  { %v3896_v16 = vpop.eup %3895  ;;  %3915 = vrcp.f32 %v1939_v11  ;;  %v1940_v49 = vadd.f32 1.0, %v3894_v32 }
 0x2c7   :  { %v3898_v13 = vpop.eup %3897  ;;  %2300 = vst [vmem:[%s6397_s10 + $0x1b8] sm:$0xff] %v3896_v16  ;;  %3917 = vrcp.f32 %v1938_v25 }
 0x2c8   :  { %v3900_v17 = vpop.eup %3899  ;;  %2305 = vst [vmem:[%s6397_s10 + $0x1e0] sm:$0xff] %v3898_v13  ;;  %3919 = vrcp.f32 %v1940_v49 }
 0x2c9   :  { %v3902_v22 = vpop.eup %3901  ;;  %2307 = vst [vmem:[%s6397_s10 + $0x1f0] sm:$0xff] %v3900_v17  ;;  %3921 = vpow2.f32 %v3345_v56 }
 0x2ca   :  { %v3904_v53 = vpop.eup %3903  ;;  %2306 = vst [vmem:[%s6397_s10 + $0x1e8] sm:$0xff] %v3902_v22  ;;  %3923 = vpow2.f32 %v3347_v8  ;;  %v3371_v8 = vmul.f32 -1.442695, %v1463_v23 }
 0x2cb   :  { %v3906_v42 = vpop.eup %3905  ;;  %2308 = vst [vmem:[%s6397_s10 + $0x1f8] sm:$0xff] %v3904_v53  ;;  %3925 = vpow2.f32 %v3346_v51  ;;  %v1473_v53 = vadd.f32 %v6032_v24, %v6009_v43  ;;  %v3385_v43 = vmul.f32 -1.442695, %v6050_v46  ;;  %v3388_v46 = vmul.f32 -1.442695, %v6064_v5 }
 0x2cc   :  { %v3908_v28 = vpop.eup %3907  ;;  %2313 = vst [vmem:[%s6397_s10 + $0x220] sm:$0xff] %v3906_v42  ;;  %3927 = vpow2.f32 %v3348_v63  ;;  %v3372_v63 = vmul.f32 -1.442695, %v6025_v50  ;;  %v3378_v50 = vmul.f32 -1.442695, %v6044_v7 }
 0x2cd   :  { %v3910_v0 = vpop.eup %3909  ;;  %2315 = vst [vmem:[%s6397_s10 + $0x230] sm:$0xff] %v3908_v28  ;;  %3929 = vpow2.f32 %v3353_v20  ;;  %v3387_v7 = vmul.f32 -1.442695, %v1473_v53 }
 0x2ce   :  { %v3912_v55 = vpop.eup %3911  ;;  %2314 = vst [vmem:[%s6397_s10 + $0x228] sm:$0xff] %v3910_v0  ;;  %3931 = vpow2.f32 %v3355_v14 }
 0x2cf   :  { %v3914_v58 = vpop.eup %3913  ;;  %2316 = vst [vmem:[%s6397_s10 + $0x238] sm:$0xff] %v3912_v55  ;;  %3933 = vpow2.f32 %v3354_v39 }
 0x2d0   :  { %v3916_v61 = vpop.eup %3915  ;;  %2321 = vst [vmem:[%s6397_s10 + $0x260] sm:$0xff] %v3914_v58  ;;  %3935 = vpow2.f32 %v3356_v4 }
 0x2d1   :  { %v3918_v21 = vpop.eup %3917  ;;  %2323 = vst [vmem:[%s6397_s10 + $0x270] sm:$0xff] %v3916_v61  ;;  %3937 = vpow2.f32 %v3361_v54 }
 0x2d2   :  { %v3920_v57 = vpop.eup %3919  ;;  %2322 = vst [vmem:[%s6397_s10 + $0x268] sm:$0xff] %v3918_v21  ;;  %3939 = vpow2.f32 %v3363_v2 }
 0x2d3   :  { %v3922_v26 = vpop.eup %3921  ;;  %2324 = vst [vmem:[%s6397_s10 + $0x278] sm:$0xff] %v3920_v57  ;;  %3941 = vpow2.f32 %v3362_v3 }
 0x2d4   :  { %v3924_v47 = vpop.eup %3923  ;;  %v1945_v10 = vadd.f32 1.0, %v3922_v26  ;;  %3943 = vpow2.f32 %v3364_v6 }
 0x2d5   :  { %v3926_v38 = vpop.eup %3925  ;;  %v1947_v48 = vadd.f32 1.0, %v3924_v47  ;;  %3945 = vpow2.f32 %v3369_v34 }
 0x2d6   :  { %v3928_v40 = vpop.eup %3927  ;;  %3947 = vrcp.f32 %v1945_v10  ;;  %v1946_v44 = vadd.f32 1.0, %v3926_v38 }
 0x2d7   :  { %v3930_v9 = vpop.eup %3929  ;;  %3949 = vrcp.f32 %v1947_v48  ;;  %v1948_v60 = vadd.f32 1.0, %v3928_v40 }
 0x2d8   :  { %v3932_v41 = vpop.eup %3931  ;;  %3951 = vrcp.f32 %v1946_v44  ;;  %v1953_v18 = vadd.f32 1.0, %v3930_v9 }
 0x2d9   :  { %v3934_v62 = vpop.eup %3933  ;;  %3953 = vrcp.f32 %v1948_v60  ;;  %v1955_v45 = vadd.f32 1.0, %v3932_v41 }
 0x2da   :  { %v3936_v1 = vpop.eup %3935  ;;  %3955 = vrcp.f32 %v1953_v18  ;;  %v1954_v19 = vadd.f32 1.0, %v3934_v62 }
 0x2db   :  { %v3938_v52 = vpop.eup %3937  ;;  %3957 = vrcp.f32 %v1955_v45  ;;  %v1956_v36 = vadd.f32 1.0, %v3936_v1 }
 0x2dc   :  { %v3940_v29 = vpop.eup %3939  ;;  %3959 = vrcp.f32 %v1954_v19  ;;  %v1961_v30 = vadd.f32 1.0, %v3938_v52 }
 0x2dd   :  { %v3942_v11 = vpop.eup %3941  ;;  %3961 = vrcp.f32 %v1956_v36  ;;  %v1963_v32 = vadd.f32 1.0, %v3940_v29 }
 0x2de   :  { %v3944_v25 = vpop.eup %3943  ;;  %3963 = vrcp.f32 %v1961_v30  ;;  %v1962_v56 = vadd.f32 1.0, %v3942_v11 }
 0x2df   :  { %v3946_v16 = vpop.eup %3945  ;;  %3965 = vrcp.f32 %v1963_v32  ;;  %v1964_v49 = vadd.f32 1.0, %v3944_v25 }
 0x2e0   :  { %v3948_v13 = vpop.eup %3947  ;;  %3967 = vrcp.f32 %v1962_v56  ;;  %v1969_v51 = vadd.f32 1.0, %v3946_v16 }
 0x2e1   :  { %v3950_v17 = vpop.eup %3949  ;;  %2329 = vst [vmem:[%s6397_s10 + $0x2a0] sm:$0xff] %v3948_v13  ;;  %3969 = vrcp.f32 %v1964_v49 }
 0x2e2   :  { %v3952_v22 = vpop.eup %3951  ;;  %2331 = vst [vmem:[%s6397_s10 + $0x2b0] sm:$0xff] %v3950_v17  ;;  %3971 = vrcp.f32 %v1969_v51 }
 0x2e3   :  { %v3954_v20 = vpop.eup %3953  ;;  %2330 = vst [vmem:[%s6397_s10 + $0x2a8] sm:$0xff] %v3952_v22  ;;  %3973 = vpow2.f32 %v3371_v8 }
 0x2e4   :  { %v3956_v14 = vpop.eup %3955  ;;  %2332 = vst [vmem:[%s6397_s10 + $0x2b8] sm:$0xff] %v3954_v20  ;;  %3975 = vpow2.f32 %v3370_v59 }
 0x2e5   :  { %v3958_v37 = vpop.eup %3957  ;;  %2337 = vst [vmem:[%s6397_s10 + $0x2e0] sm:$0xff] %v3956_v14  ;;  %3977 = vpow2.f32 %v3372_v63 }
 0x2e6   :  { %v3960_v42 = vpop.eup %3959  ;;  %2339 = vst [vmem:[%s6397_s10 + $0x2f0] sm:$0xff] %v3958_v37  ;;  %3979 = vpow2.f32 %v3377_v33 }
 0x2e7   :  { %v3962_v24 = vpop.eup %3961  ;;  %2338 = vst [vmem:[%s6397_s10 + $0x2e8] sm:$0xff] %v3960_v42  ;;  %3981 = vpow2.f32 %v3379_v35 }
 0x2e8   :  { %v3964_v39 = vpop.eup %3963  ;;  %2340 = vst [vmem:[%s6397_s10 + $0x2f8] sm:$0xff] %v3962_v24  ;;  %3983 = vpow2.f32 %v3378_v50 }
 0x2e9   :  { %v3966_v28 = vpop.eup %3965  ;;  %2345 = vst [vmem:[%s6397_s10 + $0x320] sm:$0xff] %v3964_v39  ;;  %3985 = vpow2.f32 %v3380_v12 }
 0x2ea   :  { %v3968_v4 = vpop.eup %3967  ;;  %2347 = vst [vmem:[%s6397_s10 + $0x330] sm:$0xff] %v3966_v28  ;;  %3987 = vpow2.f32 %v3385_v43 }
 0x2eb   :  { %v3970_v0 = vpop.eup %3969  ;;  %2346 = vst [vmem:[%s6397_s10 + $0x328] sm:$0xff] %v3968_v4  ;;  %3989 = vpow2.f32 %v3387_v7 }
 0x2ec   :  { %v3972_v31 = vpop.eup %3971  ;;  %2348 = vst [vmem:[%s6397_s10 + $0x338] sm:$0xff] %v3970_v0  ;;  %3991 = vpow2.f32 %v3386_v27 }
 0x2ed   :  { %v3974_v54 = vpop.eup %3973  ;;  %2353 = vst [vmem:[%s6397_s10 + $0x360] sm:$0xff] %v3972_v31  ;;  %3993 = vpow2.f32 %v3388_v46 }
 0x2ee   :  { %v3976_v5 = vpop.eup %3975  ;;  %v1971_v55 = vadd.f32 1.0, %v3974_v54 }
 0x2ef   :  { %v3978_v2 = vpop.eup %3977  ;;  %v1970_v58 = vadd.f32 1.0, %v3976_v5 }
 0x2f0   :  { %v3980_v3 = vpop.eup %3979  ;;  %3995 = vrcp.f32 %v1971_v55  ;;  %v1972_v61 = vadd.f32 1.0, %v3978_v2 }
 0x2f1   :  { %v3982_v6 = vpop.eup %3981  ;;  %3997 = vrcp.f32 %v1970_v58  ;;  %v1977_v21 = vadd.f32 1.0, %v3980_v3 }
 0x2f2   :  { %v3984_v34 = vpop.eup %3983  ;;  %3999 = vrcp.f32 %v1972_v61  ;;  %v1979_v57 = vadd.f32 1.0, %v3982_v6 }
 0x2f3   :  { %v3986_v26 = vpop.eup %3985  ;;  %4001 = vrcp.f32 %v1977_v21  ;;  %v1978_v47 = vadd.f32 1.0, %v3984_v34 }
 0x2f4   :  { %v3988_v10 = vpop.eup %3987  ;;  %4003 = vrcp.f32 %v1979_v57  ;;  %v1980_v38 = vadd.f32 1.0, %v3986_v26 }
 0x2f5   :  { %v3990_v48 = vpop.eup %3989  ;;  %4005 = vrcp.f32 %v1978_v47  ;;  %v1985_v40 = vadd.f32 1.0, %v3988_v10 }
 0x2f6   :  { %v3992_v44 = vpop.eup %3991  ;;  %4007 = vrcp.f32 %v1980_v38  ;;  %v1987_v9 = vadd.f32 1.0, %v3990_v48 }
 0x2f7   :  { %v3994_v60 = vpop.eup %3993  ;;  %4009 = vrcp.f32 %v1985_v40  ;;  %v1986_v41 = vadd.f32 1.0, %v3992_v44 }
 0x2f8   :  { %4011 = vrcp.f32 %v1987_v9  ;;  %v1988_v18 = vadd.f32 1.0, %v3994_v60 }
 0x2f9   :  { %4013 = vrcp.f32 %v1986_v41 }
 0x2fa   :  { %v3996_v62 = vpop.eup %3995  ;;  %4015 = vrcp.f32 %v1988_v18 }
 0x2fb   :  { %v3998_v45 = vpop.eup %3997  ;;  %2355 = vst [vmem:[%s6397_s10 + $0x370] sm:$0xff] %v3996_v62 }
 0x2fc   :  { %v4000_v1 = vpop.eup %3999  ;;  %2354 = vst [vmem:[%s6397_s10 + $0x368] sm:$0xff] %v3998_v45 }
 0x2fd   :  { %v4002_v19 = vpop.eup %4001  ;;  %2356 = vst [vmem:[%s6397_s10 + $0x378] sm:$0xff] %v4000_v1 }
 0x2fe   :  { %v4004_v52 = vpop.eup %4003  ;;  %2361 = vst [vmem:[%s6397_s10 + $0x3a0] sm:$0xff] %v4002_v19 }
 0x2ff   :  { %v4006_v36 = vpop.eup %4005  ;;  %2363 = vst [vmem:[%s6397_s10 + $0x3b0] sm:$0xff] %v4004_v52 }
 0x300   :  { %v4008_v23 = vpop.eup %4007  ;;  %2362 = vst [vmem:[%s6397_s10 + $0x3a8] sm:$0xff] %v4006_v36 }
 0x301   :  { %v4010_v29 = vpop.eup %4009  ;;  %2364 = vst [vmem:[%s6397_s10 + $0x3b8] sm:$0xff] %v4008_v23 }
 0x302   :  { %v4012_v30 = vpop.eup %4011  ;;  %2369 = vst [vmem:[%s6397_s10 + $0x3e0] sm:$0xff] %v4010_v29 }
 0x303   :  { %v4014_v11 = vpop.eup %4013  ;;  %2371 = vst [vmem:[%s6397_s10 + $0x3f0] sm:$0xff] %v4012_v30 }
 0x304   :  { %v4016_v32 = vpop.eup %4015  ;;  %2370 = vst [vmem:[%s6397_s10 + $0x3e8] sm:$0xff] %v4014_v11 }
 0x305   :  { %2372 = vst [vmem:[%s6397_s10 + $0x3f8] sm:$0xff] %v4016_v32 }
 0x306   :  { %3177 = vsyncpa [#allocation3], 1 }

</bundles_post_ra>
